<compile_context>
chip_gen: v6e
topology: v6e:2x2x1
jax: 0.10.0
libtpu: 0.0.40
codegen_flags: <defaults>
</compile_context>

<pallas_src>
import functools
import math

import jax
import jax.numpy as jnp
from jax.experimental import pallas as pl
from jax.experimental.pallas import tpu as pltpu


_COMPUTE_DTYPE = jnp.bfloat16          # HBM storage dtype for activations/weights
_VMEM_LIMIT = 64 * 1024 * 1024


def _round_up(x, m):
    return ((x + m - 1) // m) * m


def _pick_tile(dim, target, quantum):
    """Largest multiple of `quantum` that divides `dim` and is <= target.
    Falls back to `dim` itself (whole axis) if no such tile exists."""
    if dim <= target:
        return dim
    t = (min(target, dim) // quantum) * quantum
    while t >= quantum:
        if dim % t == 0:
            return t
        t -= quantum
    return dim


# ----------------------------------------------------------------------------
# Fused Conv 3x3 (pad=1, stride=1) + folded BN + ReLU [+ MaxPool2d(2,2)]
# ----------------------------------------------------------------------------
def _conv_bn_relu_pool_kernel(x_ref, w_ref, scale_ref, shift_ref, o_ref,
                              xpad_ref, *, H, W, Cin, Cco, pool):
    # Zero-pad the input tile inside VMEM (no HBM-side jnp.pad).
    xpad_ref[...] = jnp.zeros_like(xpad_ref)
    xpad_ref[1:H + 1, 1:W + 1, :] = x_ref[0]

    if Cin == 1:
        # First layer: contraction depth 1 -> dense VPU broadcast-multiplies.
        # The accumulator is lane-dense over the Cco output channels.
        acc = jnp.zeros((H, W, Cco), jnp.float32)
        for kh in range(3):
            for kw in range(3):
                win = xpad_ref[kh:kh + H, kw:kw + W, :].astype(jnp.float32)  # (H,W,1)
                wt = w_ref[kh, kw].astype(jnp.float32)                       # (1,Cco)
                acc = acc + win * wt
        y = acc
    else:
        # 9 shifted MXU matmuls accumulating into one f32 accumulator.
        acc = jnp.zeros((H * W, Cco), jnp.float32)
        for kh in range(3):
            for kw in range(3):
                win = xpad_ref[kh:kh + H, kw:kw + W, :].reshape(H * W, Cin)
                acc = acc + jnp.dot(win, w_ref[kh, kw],
                                    preferred_element_type=jnp.float32)
        y = acc.reshape(H, W, Cco)

    # Folded (eval-mode) BatchNorm + conv bias + ReLU, all in f32.
    y = y * scale_ref[...] + shift_ref[...]
    y = jnp.maximum(y, 0.0)

    if pool:
        # Fused MaxPool2d(kernel=2, stride=2), floor mode like PyTorch.
        Hp, Wp = (H // 2) * 2, (W // 2) * 2
        if Hp != H or Wp != W:
            y = y[:Hp, :Wp, :]
        y = jnp.max(y.reshape(Hp // 2, 2, Wp, Cco), axis=1)
        y = jnp.max(y.reshape(Hp // 2, Wp // 2, 2, Cco), axis=2)

    o_ref[0] = y.astype(o_ref.dtype)


def conv3x3_bn_relu(x, w, scale, shift, *, pool=False, tco=128):
    """x: (B,H,W,Cin) bf16, w: (3,3,Cin,Cout) bf16, scale/shift: (Cout,) f32."""
    B, H, W, Cin = x.shape
    Cout = w.shape[-1]
    tco = _pick_tile(Cout, tco, 128)
    OH, OW = ((H // 2, W // 2) if pool else (H, W))
    kernel = functools.partial(_conv_bn_relu_pool_kernel,
                               H=H, W=W, Cin=Cin, Cco=tco, pool=pool)
    return pl.pallas_call(
        kernel,
        out_shape=jax.ShapeDtypeStruct((B, OH, OW, Cout), x.dtype),
        grid=(B, Cout // tco),
        in_specs=[
            pl.BlockSpec((1, H, W, Cin), lambda b, co: (b, 0, 0, 0)),
            pl.BlockSpec((3, 3, Cin, tco), lambda b, co: (0, 0, 0, co)),
            pl.BlockSpec((1, tco), lambda b, co: (0, co)),
            pl.BlockSpec((1, tco), lambda b, co: (0, co)),
        ],
        out_specs=pl.BlockSpec((1, OH, OW, tco), lambda b, co: (b, 0, 0, co)),
        scratch_shapes=[pltpu.VMEM((H + 2, W + 2, Cin), x.dtype)],
        compiler_params=pltpu.CompilerParams(
            dimension_semantics=("parallel", "parallel"),
            vmem_limit_bytes=_VMEM_LIMIT),
    )(x, w, scale.reshape(1, Cout), shift.reshape(1, Cout))


# ----------------------------------------------------------------------------
# Standalone MaxPool2d(2,2) — only used if an 'MP' does not follow a conv.
# (No strided ref reads: reshape + max, which also matches floor mode.)
# ----------------------------------------------------------------------------
def _maxpool2x2_kernel(x_ref, o_ref, *, H, W, C):
    x = x_ref[0]
    Hp, Wp = (H // 2) * 2, (W // 2) * 2
    if Hp != H or Wp != W:
        x = x[:Hp, :Wp, :]
    x = jnp.max(x.reshape(Hp // 2, 2, Wp, C), axis=1)
    x = jnp.max(x.reshape(Hp // 2, Wp // 2, 2, C), axis=2)
    o_ref[0] = x.astype(o_ref.dtype)


def maxpool2x2(x):
    B, H, W, C = x.shape
    kernel = functools.partial(_maxpool2x2_kernel, H=H, W=W, C=C)
    return pl.pallas_call(
        kernel,
        out_shape=jax.ShapeDtypeStruct((B, H // 2, W // 2, C), x.dtype),
        grid=(B,),
        in_specs=[pl.BlockSpec((1, H, W, C), lambda b: (b, 0, 0, 0))],
        out_specs=pl.BlockSpec((1, H // 2, W // 2, C), lambda b: (b, 0, 0, 0)),
        compiler_params=pltpu.CompilerParams(
            dimension_semantics=("parallel",),
            vmem_limit_bytes=_VMEM_LIMIT),
    )(x)


# ----------------------------------------------------------------------------
# AdaptiveAvgPool2d((5, 10)) as one matmul with kron(Ph, Pw)
# ----------------------------------------------------------------------------
def _adaptive_pool_matrix(in_size, out_size):
    rows = []
    for i in range(out_size):
        s = (i * in_size) // out_size
        e = -((-(i + 1) * in_size) // out_size)          # ceil((i+1)*in/out)
        row = [0.0] * in_size
        for t in range(s, e):
            row[t] = 1.0 / (e - s)
        rows.append(row)
    return jnp.array(rows, jnp.float32)


def _adaptive_avgpool_kernel(k_ref, x_ref, o_ref, *, H, W, C, OH, OW):
    xf = x_ref[0].astype(jnp.float32).reshape(H * W, C)
    pooled = jnp.dot(k_ref[...], xf, preferred_element_type=jnp.float32)
    o_ref[0] = pooled.reshape(OH, OW, C).astype(o_ref.dtype)


def adaptive_avgpool(x, oh, ow):
    B, H, W, C = x.shape
    Ph = _adaptive_pool_matrix(H, oh)                     # (oh, H)
    Pw = _adaptive_pool_matrix(W, ow)                     # (ow, W)
    K = jnp.kron(Ph, Pw)                                  # (oh*ow, H*W)
    kernel = functools.partial(_adaptive_avgpool_kernel,
                               H=H, W=W, C=C, OH=oh, OW=ow)
    return pl.pallas_call(
        kernel,
        out_shape=jax.ShapeDtypeStruct((B, oh, ow, C), x.dtype),
        grid=(B,),
        in_specs=[
            pl.BlockSpec((oh * ow, H * W), lambda b: (0, 0)),
            pl.BlockSpec((1, H, W, C), lambda b: (b, 0, 0, 0)),
        ],
        out_specs=pl.BlockSpec((1, oh, ow, C), lambda b: (b, 0, 0, 0)),
        compiler_params=pltpu.CompilerParams(
            dimension_semantics=("parallel",),
            vmem_limit_bytes=_VMEM_LIMIT),
    )(K, x)


# ----------------------------------------------------------------------------
# Linear (+ optional ReLU): K-tiled weight-streaming matmul, f32 accumulator
# ----------------------------------------------------------------------------
def _linear_kernel(x_ref, w_ref, b_ref, o_ref, acc_ref, *, relu):
    k = pl.program_id(1)

    @pl.when(k == 0)
    def _():
        acc_ref[...] = jnp.zeros_like(acc_ref)

    acc_ref[...] += jnp.dot(x_ref[...], w_ref[...],
                            preferred_element_type=jnp.float32)

    @pl.when(k == pl.num_programs(1) - 1)
    def _():
        y = acc_ref[...] + b_ref[...]
        if relu:
            y = jnp.maximum(y, 0.0)
        o_ref[...] = y.astype(o_ref.dtype)


def linear(x, w, b, *, relu, tk=2048, tn=1024, out_dtype=None):
    """x: (M,K), w: (K,N), b: (N,) -> (M,N).  y = x @ w + b (== torch Linear)."""
    M, K = x.shape
    Kw, N = w.shape
    assert Kw == K
    out_dtype = out_dtype if out_dtype is not None else x.dtype

    # Pad N (lane dim) to a multiple of 128 to avoid masked partial stores
    # (this is what saves the tiny num_classes head).
    Np = _round_up(N, 128)
    if Np != N:
        w = jnp.pad(w, ((0, 0), (0, Np - N)))
        b = jnp.pad(b, ((0, Np - N),))
    # Pad K to a multiple of 128 (zeros don't change the product).
    Kp = _round_up(K, 128)
    if Kp != K:
        x = jnp.pad(x, ((0, 0), (0, Kp - K)))
        w = jnp.pad(w, ((0, Kp - K), (0, 0)))

    tk = _pick_tile(Kp, tk, 128)
    tn = _pick_tile(Np, tn, 128)
    kernel = functools.partial(_linear_kernel, relu=relu)
    out = pl.pallas_call(
        kernel,
        out_shape=jax.ShapeDtypeStruct((M, Np), out_dtype),
        grid=(Np // tn, Kp // tk),
        in_specs=[
            pl.BlockSpec((M, tk), lambda j, k: (0, k)),
            pl.BlockSpec((tk, tn), lambda j, k: (k, j)),
            pl.BlockSpec((1, tn), lambda j, k: (0, j)),
        ],
        out_specs=pl.BlockSpec((M, tn), lambda j, k: (0, j)),
        scratch_shapes=[pltpu.VMEM((M, tn), jnp.float32)],
        compiler_params=pltpu.CompilerParams(
            dimension_semantics=("parallel", "arbitrary"),
            vmem_limit_bytes=_VMEM_LIMIT),
    )(x, w, b.reshape(1, Np).astype(jnp.float32))
    return out[:, :N] if Np != N else out


# ----------------------------------------------------------------------------
# Parameter init (matches VGGishish.reset_parameters, eval-mode BN stats)
# ----------------------------------------------------------------------------
def init_params(key, conv_layers, use_bn, num_classes,
                *, compute_dtype=_COMPUTE_DTYPE):
    eps = 1e-5
    params = {'convs': []}
    n_conv = sum(1 for v in conv_layers if v != 'MP')
    keys = list(jax.random.split(key, n_conv + 3))
    ki = 0
    in_ch = 1
    for v in conv_layers:
        if v == 'MP':
            continue
        cout = int(v)
        # kaiming_normal_(mode='fan_out', nonlinearity='relu')
        std = math.sqrt(2.0 / (cout * 3 * 3))
        w = jax.random.normal(keys[ki], (3, 3, in_ch, cout), jnp.float32) * std
        ki += 1
        bias = jnp.zeros((cout,), jnp.float32)            # constant_(bias, 0)
        if use_bn:
            gamma = jnp.ones((cout,), jnp.float32)
            beta = jnp.zeros((cout,), jnp.float32)
            rmean = jnp.zeros((cout,), jnp.float32)
            rvar = jnp.ones((cout,), jnp.float32)
            s = gamma / jnp.sqrt(rvar + eps)
            shift = (bias - rmean) * s + beta
        else:
            s = jnp.ones((cout,), jnp.float32)
            shift = bias
        params['convs'].append((w.astype(compute_dtype),
                                s.astype(jnp.float32),
                                shift.astype(jnp.float32)))
        in_ch = cout
    # The classifier input dim 512*5*10 is hardcoded in the PyTorch module.
    assert in_ch == 512, "conv_layers must end with 512 channels"

    fin1 = 512 * 5 * 10
    # fc1: weights generated in NCHW-flatten row order (as in torch), then the
    # rows are permuted ONCE here to the NHWC flatten order so the forward
    # pass needs no runtime transpose of the pooled activations.
    w1 = jax.random.normal(keys[ki], (fin1, 4096), jnp.float32) * 0.01
    w1 = w1.reshape(512, 5, 10, 4096).transpose(1, 2, 0, 3).reshape(fin1, 4096)
    params['fc1'] = (w1.astype(compute_dtype), jnp.zeros((4096,), jnp.float32))
    w2 = jax.random.normal(keys[ki + 1], (4096, 4096), jnp.float32) * 0.01
    params['fc2'] = (w2.astype(compute_dtype), jnp.zeros((4096,), jnp.float32))
    w3 = jax.random.normal(keys[ki + 2], (4096, num_classes), jnp.float32) * 0.01
    params['fc3'] = (w3.astype(compute_dtype),
                     jnp.zeros((num_classes,), jnp.float32))
    return params


# ----------------------------------------------------------------------------
# Full forward pass
# ----------------------------------------------------------------------------
def vggishish_forward(x, params, conv_layers):
    """x: (B, mel, time) float32 — same input the PyTorch forward receives."""
    h = x.astype(_COMPUTE_DTYPE)[..., None]   # unsqueeze channel (NHWC trailing)
    layers = list(conv_layers)
    ci = 0
    i = 0
    while i < len(layers):
        v = layers[i]
        if v == 'MP':
            h = maxpool2x2(h)                 # fallback: 'MP' without preceding conv
            i += 1
        else:
            w, scale, shift = params['convs'][ci]
            fuse_pool = (i + 1 < len(layers)) and (layers[i + 1] == 'MP')
            h = conv3x3_bn_relu(h, w, scale, shift, pool=fuse_pool)
            ci += 1
            i += 2 if fuse_pool else 1

    h = adaptive_avgpool(h, 5, 10)            # (B, 5, 10, 512) bf16
    B = h.shape[0]
    # NHWC flatten; fc1's weight rows were pre-permuted at init to match the
    # PyTorch NCHW nn.Flatten ordering, so no runtime transpose is needed.
    h = h.reshape(B, -1)                      # (B, 5*10*512)

    w1, b1 = params['fc1']
    w2, b2 = params['fc2']
    w3, b3 = params['fc3']
    h = linear(h, w1, b1, relu=True)
    h = linear(h, w2, b2, relu=True)
    h = linear(h, w3, b3, relu=False, out_dtype=jnp.float32)
    return h


if __name__ == "__main__":
    # conv_layers must end with 512 channels: the classifier input dim
    # 512*5*10 is hardcoded in the PyTorch module.
    conv_layers = (64, 'MP', 128, 'MP', 512)
    use_bn = True
    num_classes = 10

    key = jax.random.PRNGKey(0)
    kp, kx = jax.random.split(key)
    params = init_params(kp, conv_layers, use_bn, num_classes)

    # Small input: batch=2, 16x16 "spectrogram" (B, mel, time)
    x = jax.random.normal(kx, (2, 16, 16), jnp.float32)

    out = vggishish_forward(x, params, conv_layers)
    out = jax.block_until_ready(out)
    assert out.shape == (2, num_classes), out.shape
    assert bool(jnp.all(jnp.isfinite(out)))
    print("KERNEL_OK")
</pallas_src>

<mosaic_0001>
module attributes {stable_mosaic.version = 11 : i64} {
  func.func @_conv_bn_relu_pool_kernel(%arg0: i32, %arg1: i32, %arg2: memref<1x16x16x1xbf16, #tpu.memory_space<vmem>>, %arg3: memref<3x3x1x64xbf16, #tpu.memory_space<vmem>>, %arg4: memref<1x64xf32, #tpu.memory_space<vmem>>, %arg5: memref<1x64xf32, #tpu.memory_space<vmem>>, %arg6: memref<1x8x8x64xbf16, #tpu.memory_space<vmem>>, %arg7: memref<18x18x1xbf16, #tpu.memory_space<vmem>>) attributes {dimension_semantics = [#tpu.dimension_semantics<parallel>, #tpu.dimension_semantics<parallel>], iteration_bounds = array<i64: 2, 1>, scalar_prefetch = 0 : i64, scratch_operands = 1 : i64, tpu.core_type = #tpu.core_type<tc>, window_params = [{transform_indices = @transform_0, window_bounds = array<i64: 1, 16, 16, 1>}, {transform_indices = @transform_1, window_bounds = array<i64: 3, 3, 1, 64>}, {transform_indices = @transform_2, window_bounds = array<i64: 1, 64>}, {transform_indices = @transform_3, window_bounds = array<i64: 1, 64>}, {transform_indices = @transform_4, window_bounds = array<i64: 1, 8, 8, 64>}]} {
    %cst = arith.constant 0.000000e+00 : bf16
    %0 = vector.broadcast %cst : bf16 to vector<18x18x1xbf16>
    %c0 = arith.constant 0 : index
    %c0_0 = arith.constant 0 : index
    %c0_1 = arith.constant 0 : index
    %1 = vector.load %arg7[%c0, %c0_0, %c0_1] : memref<18x18x1xbf16, #tpu.memory_space<vmem>>, vector<18x18x1xbf16>
    tpu.vector_store %arg7[%c0, %c0_0, %c0_1], %0 {strides = array<i32>} : memref<18x18x1xbf16, #tpu.memory_space<vmem>>, vector<18x18x1xbf16>,
    %c0_2 = arith.constant 0 : index
    %c0_3 = arith.constant 0 : index
    %c0_4 = arith.constant 0 : index
    %c0_5 = arith.constant 0 : index
    %2 = vector.load %arg2[%c0_2, %c0_3, %c0_4, %c0_5] : memref<1x16x16x1xbf16, #tpu.memory_space<vmem>>, vector<1x16x16x1xbf16>
    %3 = vector.shape_cast %2 : vector<1x16x16x1xbf16> to vector<16x16x1xbf16>
    %c1 = arith.constant 1 : index
    %c1_6 = arith.constant 1 : index
    %c0_7 = arith.constant 0 : index
    %4 = vector.load %arg7[%c1, %c1_6, %c0_7] : memref<18x18x1xbf16, #tpu.memory_space<vmem>>, vector<16x16x1xbf16>
    tpu.vector_store %arg7[%c1, %c1_6, %c0_7], %3 {strides = array<i32>} : memref<18x18x1xbf16, #tpu.memory_space<vmem>>, vector<16x16x1xbf16>,
    %cst_8 = arith.constant 0.000000e+00 : f32
    %5 = vector.broadcast %cst_8 : f32 to vector<16x16x64xf32>
    %c0_9 = arith.constant 0 : index
    %c0_10 = arith.constant 0 : index
    %c0_11 = arith.constant 0 : index
    %6 = vector.load %arg7[%c0_9, %c0_10, %c0_11] : memref<18x18x1xbf16, #tpu.memory_space<vmem>>, vector<16x16x1xbf16>
    %7 = arith.extf %6 : vector<16x16x1xbf16> to vector<16x16x1xf32>
    %c0_12 = arith.constant 0 : index
    %c0_13 = arith.constant 0 : index
    %c0_14 = arith.constant 0 : index
    %c0_15 = arith.constant 0 : index
    %8 = vector.load %arg3[%c0_12, %c0_13, %c0_14, %c0_15] : memref<3x3x1x64xbf16, #tpu.memory_space<vmem>>, vector<1x1x1x64xbf16>
    %9 = vector.shape_cast %8 : vector<1x1x1x64xbf16> to vector<1x64xbf16>
    %10 = arith.extf %9 : vector<1x64xbf16> to vector<1x64xf32>
    %11 = vector.shape_cast %10 : vector<1x64xf32> to vector<1x1x64xf32>
    %12 = vector.broadcast %7 : vector<16x16x1xf32> to vector<16x16x64xf32>
    %13 = vector.broadcast %11 : vector<1x1x64xf32> to vector<16x16x64xf32>
    %14 = arith.mulf %12, %13 : vector<16x16x64xf32>
    %15 = arith.addf %5, %14 : vector<16x16x64xf32>
    %c0_16 = arith.constant 0 : index
    %c1_17 = arith.constant 1 : index
    %c0_18 = arith.constant 0 : index
    %16 = vector.load %arg7[%c0_16, %c1_17, %c0_18] : memref<18x18x1xbf16, #tpu.memory_space<vmem>>, vector<16x16x1xbf16>
    %17 = arith.extf %16 : vector<16x16x1xbf16> to vector<16x16x1xf32>
    %c0_19 = arith.constant 0 : index
    %c1_20 = arith.constant 1 : index
    %c0_21 = arith.constant 0 : index
    %c0_22 = arith.constant 0 : index
    %18 = vector.load %arg3[%c0_19, %c1_20, %c0_21, %c0_22] : memref<3x3x1x64xbf16, #tpu.memory_space<vmem>>, vector<1x1x1x64xbf16>
    %19 = vector.shape_cast %18 : vector<1x1x1x64xbf16> to vector<1x64xbf16>
    %20 = arith.extf %19 : vector<1x64xbf16> to vector<1x64xf32>
    %21 = vector.shape_cast %20 : vector<1x64xf32> to vector<1x1x64xf32>
    %22 = vector.broadcast %17 : vector<16x16x1xf32> to vector<16x16x64xf32>
    %23 = vector.broadcast %21 : vector<1x1x64xf32> to vector<16x16x64xf32>
    %24 = arith.mulf %22, %23 : vector<16x16x64xf32>
    %25 = arith.addf %15, %24 : vector<16x16x64xf32>
    %c0_23 = arith.constant 0 : index
    %c2 = arith.constant 2 : index
    %c0_24 = arith.constant 0 : index
    %26 = vector.load %arg7[%c0_23, %c2, %c0_24] : memref<18x18x1xbf16, #tpu.memory_space<vmem>>, vector<16x16x1xbf16>
    %27 = arith.extf %26 : vector<16x16x1xbf16> to vector<16x16x1xf32>
    %c0_25 = arith.constant 0 : index
    %c2_26 = arith.constant 2 : index
    %c0_27 = arith.constant 0 : index
    %c0_28 = arith.constant 0 : index
    %28 = vector.load %arg3[%c0_25, %c2_26, %c0_27, %c0_28] : memref<3x3x1x64xbf16, #tpu.memory_space<vmem>>, vector<1x1x1x64xbf16>
    %29 = vector.shape_cast %28 : vector<1x1x1x64xbf16> to vector<1x64xbf16>
    %30 = arith.extf %29 : vector<1x64xbf16> to vector<1x64xf32>
    %31 = vector.shape_cast %30 : vector<1x64xf32> to vector<1x1x64xf32>
    %32 = vector.broadcast %27 : vector<16x16x1xf32> to vector<16x16x64xf32>
    %33 = vector.broadcast %31 : vector<1x1x64xf32> to vector<16x16x64xf32>
    %34 = arith.mulf %32, %33 : vector<16x16x64xf32>
    %35 = arith.addf %25, %34 : vector<16x16x64xf32>
    %c1_29 = arith.constant 1 : index
    %c0_30 = arith.constant 0 : index
    %c0_31 = arith.constant 0 : index
    %36 = vector.load %arg7[%c1_29, %c0_30, %c0_31] : memref<18x18x1xbf16, #tpu.memory_space<vmem>>, vector<16x16x1xbf16>
    %37 = arith.extf %36 : vector<16x16x1xbf16> to vector<16x16x1xf32>
    %c1_32 = arith.constant 1 : index
    %c0_33 = arith.constant 0 : index
    %c0_34 = arith.constant 0 : index
    %c0_35 = arith.constant 0 : index
    %38 = vector.load %arg3[%c1_32, %c0_33, %c0_34, %c0_35] : memref<3x3x1x64xbf16, #tpu.memory_space<vmem>>, vector<1x1x1x64xbf16>
    %39 = vector.shape_cast %38 : vector<1x1x1x64xbf16> to vector<1x64xbf16>
    %40 = arith.extf %39 : vector<1x64xbf16> to vector<1x64xf32>
    %41 = vector.shape_cast %40 : vector<1x64xf32> to vector<1x1x64xf32>
    %42 = vector.broadcast %37 : vector<16x16x1xf32> to vector<16x16x64xf32>
    %43 = vector.broadcast %41 : vector<1x1x64xf32> to vector<16x16x64xf32>
    %44 = arith.mulf %42, %43 : vector<16x16x64xf32>
    %45 = arith.addf %35, %44 : vector<16x16x64xf32>
    %c1_36 = arith.constant 1 : index
    %c1_37 = arith.constant 1 : index
    %c0_38 = arith.constant 0 : index
    %46 = vector.load %arg7[%c1_36, %c1_37, %c0_38] : memref<18x18x1xbf16, #tpu.memory_space<vmem>>, vector<16x16x1xbf16>
    %47 = arith.extf %46 : vector<16x16x1xbf16> to vector<16x16x1xf32>
    %c1_39 = arith.constant 1 : index
    %c1_40 = arith.constant 1 : index
    %c0_41 = arith.constant 0 : index
    %c0_42 = arith.constant 0 : index
    %48 = vector.load %arg3[%c1_39, %c1_40, %c0_41, %c0_42] : memref<3x3x1x64xbf16, #tpu.memory_space<vmem>>, vector<1x1x1x64xbf16>
    %49 = vector.shape_cast %48 : vector<1x1x1x64xbf16> to vector<1x64xbf16>
    %50 = arith.extf %49 : vector<1x64xbf16> to vector<1x64xf32>
    %51 = vector.shape_cast %50 : vector<1x64xf32> to vector<1x1x64xf32>
    %52 = vector.broadcast %47 : vector<16x16x1xf32> to vector<16x16x64xf32>
    %53 = vector.broadcast %51 : vector<1x1x64xf32> to vector<16x16x64xf32>
    %54 = arith.mulf %52, %53 : vector<16x16x64xf32>
    %55 = arith.addf %45, %54 : vector<16x16x64xf32>
    %c1_43 = arith.constant 1 : index
    %c2_44 = arith.constant 2 : index
    %c0_45 = arith.constant 0 : index
    %56 = vector.load %arg7[%c1_43, %c2_44, %c0_45] : memref<18x18x1xbf16, #tpu.memory_space<vmem>>, vector<16x16x1xbf16>
    %57 = arith.extf %56 : vector<16x16x1xbf16> to vector<16x16x1xf32>
    %c1_46 = arith.constant 1 : index
    %c2_47 = arith.constant 2 : index
    %c0_48 = arith.constant 0 : index
    %c0_49 = arith.constant 0 : index
    %58 = vector.load %arg3[%c1_46, %c2_47, %c0_48, %c0_49] : memref<3x3x1x64xbf16, #tpu.memory_space<vmem>>, vector<1x1x1x64xbf16>
    %59 = vector.shape_cast %58 : vector<1x1x1x64xbf16> to vector<1x64xbf16>
    %60 = arith.extf %59 : vector<1x64xbf16> to vector<1x64xf32>
    %61 = vector.shape_cast %60 : vector<1x64xf32> to vector<1x1x64xf32>
    %62 = vector.broadcast %57 : vector<16x16x1xf32> to vector<16x16x64xf32>
    %63 = vector.broadcast %61 : vector<1x1x64xf32> to vector<16x16x64xf32>
    %64 = arith.mulf %62, %63 : vector<16x16x64xf32>
    %65 = arith.addf %55, %64 : vector<16x16x64xf32>
    %c2_50 = arith.constant 2 : index
    %c0_51 = arith.constant 0 : index
    %c0_52 = arith.constant 0 : index
    %66 = vector.load %arg7[%c2_50, %c0_51, %c0_52] : memref<18x18x1xbf16, #tpu.memory_space<vmem>>, vector<16x16x1xbf16>
    %67 = arith.extf %66 : vector<16x16x1xbf16> to vector<16x16x1xf32>
    %c2_53 = arith.constant 2 : index
    %c0_54 = arith.constant 0 : index
    %c0_55 = arith.constant 0 : index
    %c0_56 = arith.constant 0 : index
    %68 = vector.load %arg3[%c2_53, %c0_54, %c0_55, %c0_56] : memref<3x3x1x64xbf16, #tpu.memory_space<vmem>>, vector<1x1x1x64xbf16>
    %69 = vector.shape_cast %68 : vector<1x1x1x64xbf16> to vector<1x64xbf16>
    %70 = arith.extf %69 : vector<1x64xbf16> to vector<1x64xf32>
    %71 = vector.shape_cast %70 : vector<1x64xf32> to vector<1x1x64xf32>
    %72 = vector.broadcast %67 : vector<16x16x1xf32> to vector<16x16x64xf32>
    %73 = vector.broadcast %71 : vector<1x1x64xf32> to vector<16x16x64xf32>
    %74 = arith.mulf %72, %73 : vector<16x16x64xf32>
    %75 = arith.addf %65, %74 : vector<16x16x64xf32>
    %c2_57 = arith.constant 2 : index
    %c1_58 = arith.constant 1 : index
    %c0_59 = arith.constant 0 : index
    %76 = vector.load %arg7[%c2_57, %c1_58, %c0_59] : memref<18x18x1xbf16, #tpu.memory_space<vmem>>, vector<16x16x1xbf16>
    %77 = arith.extf %76 : vector<16x16x1xbf16> to vector<16x16x1xf32>
    %c2_60 = arith.constant 2 : index
    %c1_61 = arith.constant 1 : index
    %c0_62 = arith.constant 0 : index
    %c0_63 = arith.constant 0 : index
    %78 = vector.load %arg3[%c2_60, %c1_61, %c0_62, %c0_63] : memref<3x3x1x64xbf16, #tpu.memory_space<vmem>>, vector<1x1x1x64xbf16>
    %79 = vector.shape_cast %78 : vector<1x1x1x64xbf16> to vector<1x64xbf16>
    %80 = arith.extf %79 : vector<1x64xbf16> to vector<1x64xf32>
    %81 = vector.shape_cast %80 : vector<1x64xf32> to vector<1x1x64xf32>
    %82 = vector.broadcast %77 : vector<16x16x1xf32> to vector<16x16x64xf32>
    %83 = vector.broadcast %81 : vector<1x1x64xf32> to vector<16x16x64xf32>
    %84 = arith.mulf %82, %83 : vector<16x16x64xf32>
    %85 = arith.addf %75, %84 : vector<16x16x64xf32>
    %c2_64 = arith.constant 2 : index
    %c2_65 = arith.constant 2 : index
    %c0_66 = arith.constant 0 : index
    %86 = vector.load %arg7[%c2_64, %c2_65, %c0_66] : memref<18x18x1xbf16, #tpu.memory_space<vmem>>, vector<16x16x1xbf16>
    %87 = arith.extf %86 : vector<16x16x1xbf16> to vector<16x16x1xf32>
    %c2_67 = arith.constant 2 : index
    %c2_68 = arith.constant 2 : index
    %c0_69 = arith.constant 0 : index
    %c0_70 = arith.constant 0 : index
    %88 = vector.load %arg3[%c2_67, %c2_68, %c0_69, %c0_70] : memref<3x3x1x64xbf16, #tpu.memory_space<vmem>>, vector<1x1x1x64xbf16>
    %89 = vector.shape_cast %88 : vector<1x1x1x64xbf16> to vector<1x64xbf16>
    %90 = arith.extf %89 : vector<1x64xbf16> to vector<1x64xf32>
    %91 = vector.shape_cast %90 : vector<1x64xf32> to vector<1x1x64xf32>
    %92 = vector.broadcast %87 : vector<16x16x1xf32> to vector<16x16x64xf32>
    %93 = vector.broadcast %91 : vector<1x1x64xf32> to vector<16x16x64xf32>
    %94 = arith.mulf %92, %93 : vector<16x16x64xf32>
    %95 = arith.addf %85, %94 : vector<16x16x64xf32>
    %c0_71 = arith.constant 0 : index
    %c0_72 = arith.constant 0 : index
    %96 = vector.load %arg4[%c0_71, %c0_72] : memref<1x64xf32, #tpu.memory_space<vmem>>, vector<1x64xf32>
    %97 = vector.shape_cast %96 : vector<1x64xf32> to vector<1x1x64xf32>
    %98 = vector.broadcast %97 : vector<1x1x64xf32> to vector<16x16x64xf32>
    %99 = arith.mulf %95, %98 : vector<16x16x64xf32>
    %c0_73 = arith.constant 0 : index
    %c0_74 = arith.constant 0 : index
    %100 = vector.load %arg5[%c0_73, %c0_74] : memref<1x64xf32, #tpu.memory_space<vmem>>, vector<1x64xf32>
    %101 = vector.shape_cast %100 : vector<1x64xf32> to vector<1x1x64xf32>
    %102 = vector.broadcast %101 : vector<1x1x64xf32> to vector<16x16x64xf32>
    %103 = arith.addf %99, %102 : vector<16x16x64xf32>
    %cst_75 = arith.constant 0.000000e+00 : f32
    %104 = vector.broadcast %cst_75 : f32 to vector<16x16x64xf32>
    %105 = arith.maximumf %103, %104 : vector<16x16x64xf32>
    %106 = vector.shape_cast %105 : vector<16x16x64xf32> to vector<8x2x16x64xf32>
    %cst_76 = arith.constant dense<0xFF800000> : vector<8x16x64xf32>
    %107 = vector.multi_reduction <maximumf>, %106, %cst_76 [1] : vector<8x2x16x64xf32> to vector<8x16x64xf32>
    %108 = vector.shape_cast %107 : vector<8x16x64xf32> to vector<8x8x2x64xf32>
    %cst_77 = arith.constant dense<0xFF800000> : vector<8x8x64xf32>
    %109 = vector.multi_reduction <maximumf>, %108, %cst_77 [2] : vector<8x8x2x64xf32> to vector<8x8x64xf32>
    %110 = arith.truncf %109 : vector<8x8x64xf32> to vector<8x8x64xbf16>
    %c0_78 = arith.constant 0 : index
    %c0_79 = arith.constant 0 : index
    %c0_80 = arith.constant 0 : index
    %c0_81 = arith.constant 0 : index
    %111 = vector.load %arg6[%c0_78, %c0_79, %c0_80, %c0_81] : memref<1x8x8x64xbf16, #tpu.memory_space<vmem>>, vector<1x8x8x64xbf16>
    %112 = vector.shape_cast %111 : vector<1x8x8x64xbf16> to vector<8x8x64xbf16>
    %113 = vector.shape_cast %110 : vector<8x8x64xbf16> to vector<1x8x8x64xbf16>
    tpu.vector_store %arg6[%c0_78, %c0_79, %c0_80, %c0_81], %113 {strides = array<i32>} : memref<1x8x8x64xbf16, #tpu.memory_space<vmem>>, vector<1x8x8x64xbf16>,
    return
  }
  func.func @transform_0(%arg0: i32, %arg1: i32) -> (i32, i32, i32, i32) {
    %c0_i32 = arith.constant 0 : i32
    %c0_i32_0 = arith.constant 0 : i32
    %c0_i32_1 = arith.constant 0 : i32
    %c0_i32_2 = arith.constant 0 : i32
    return %arg0, %c0_i32, %c0_i32_0, %c0_i32_1 : i32, i32, i32, i32
  }
  func.func @transform_1(%arg0: i32, %arg1: i32) -> (i32, i32, i32, i32) {
    %c0_i32 = arith.constant 0 : i32
    %c0_i32_0 = arith.constant 0 : i32
    %c0_i32_1 = arith.constant 0 : i32
    %c0_i32_2 = arith.constant 0 : i32
    return %c0_i32, %c0_i32_0, %c0_i32_1, %arg1 : i32, i32, i32, i32
  }
  func.func @transform_2(%arg0: i32, %arg1: i32) -> (i32, i32) {
    %c0_i32 = arith.constant 0 : i32
    %c0_i32_0 = arith.constant 0 : i32
    return %c0_i32, %arg1 : i32, i32
  }
  func.func @transform_3(%arg0: i32, %arg1: i32) -> (i32, i32) {
    %c0_i32 = arith.constant 0 : i32
    %c0_i32_0 = arith.constant 0 : i32
    return %c0_i32, %arg1 : i32, i32
  }
  func.func @transform_4(%arg0: i32, %arg1: i32) -> (i32, i32, i32, i32) {
    %c0_i32 = arith.constant 0 : i32
    %c0_i32_0 = arith.constant 0 : i32
    %c0_i32_1 = arith.constant 0 : i32
    return %arg0, %c0_i32, %c0_i32_0, %arg1 : i32, i32, i32, i32
  }
}

</mosaic_0001>

<bundles_post_ra>
// kernel: tpu_custom_call.1
= control target key start
LH: loop header
LB: loop body
LE: loop exit
PB: predicated region body
PF: predicated region fallthrough
CT: control target
= control target key end

     0   :  { %9 = vsyncpa [#allocation4], 0  ;;  %s10699_s0 = inlined_call_operand.vmem [shape: bf16[2,16,16,1], index: 0, kind: input, shape index: {}]   ;;  %s10700_s1 = inlined_call_operand.vmem [shape: bf16[3,3,1,64], index: 1, kind: input, shape index: {}]   ;;  %s10701_s2 = inlined_call_operand.vmem [shape: f32[1,64], index: 2, kind: input, shape index: {}]   ;;  %s10702_s3 = inlined_call_operand.vmem [shape: f32[1,64], index: 3, kind: input, shape index: {}]   ;;  %s10703_s4 = inlined_call_operand.hbm [shape: bf16[2,8,8,64], index: 4, kind: output, shape index: {}]  }
   0x1   :  { %11 = vsyncpa [#allocation4 + $0x1], 0  ;;  %s7271_s15 = smov 0   ;;  %s7273_s16 = smov 0  }
   0x2   :  { %s7275_s17 = smov 0   ;;  %s7277_s18 = smov 0  }
   0x3   :  { %s7279_s19 = smov 0   ;;  %s7281_s20 = smov 0  }
   0x4 LB: > { %s5986_s21 = sadd.s32 4294967295, %s7239_s20   ;;  %s5987_s22 = sadd.s32 4294967294, %s7239_s20   ;;  %s7239_s20 = sphi %s7281_s20, %s17_s20   ;;  %s7235_s19 = sphi %s7279_s19, %s11402_s19   ;;  %s7231_s18 = sphi %s7277_s18, %s11401_s18   ;;  %s7227_s17 = sphi %s7275_s17, %s11400_s17   ;;  %s7223_s16 = sphi %s7273_s16, %s11399_s16   ;;  %s7219_s15 = sphi %s7271_s15, %s11398_s15  }
   0x5   : > { %s29_s23 = sadd.s32 1, %s7235_s19  ;;  %s142_s24 = sadd.s32 1, %s7227_s17 }
   0x6   : > { %p31_p0 = scmp.ge.s32.totalorder %s29_s23, 2  ;;  %p152_p1 = scmp.ne.s32.totalorder %s7227_s17, %s7223_s16 }
   0x7   : > { %p153_p2 = scmp.eq.s32.totalorder %s5986_s21, 1  ;;  %p158_p3 = scmp.ne.s32.totalorder %s7223_s16, %s7219_s15 }
   0x8   : > { %s11404_s23 = smov (%p31_p0, %s29_s23), 0  ;;  %p159_p5 = scmp.eq.s32.totalorder %s5987_s22, 1 }
   0x9   : > { %p7311_p4 = por %p153_p2, %p152_p1  ;;  %s137_s26 = ssub.s32 %s7235_s19, %s11404_s23 }
   0xa   : > { %p5993_p6 = scmp.ge.s32.totalorder %s7239_s20, 1  ;;  %p140_p7 = scmp.eq.s32.totalorder %s137_s26, 0 }
   0xb   : > { %p7318_p8 = por %p159_p5, %p158_p3  ;;  %p203_p9 = scmp.lt.s32.totalorder %s7239_s20, 3 }
   0xc   : > { %s7324_s28 = scalar_select %p140_p7, %s7227_s17, %s142_s24  }
   0xd   : > { %p204_p10 = pnand %p5993_p6, %p203_p9 }
   0xf   : > { %207 = sbr.rel (%p204_p10) target bundleno = 848 (0x350), region = 36 }
  0x14   : > { %vm253_vm0 = vcmask 3072   ;;  %p238_p11 = scmp.lt.s32.totalorder %s7231_s18, 1  ;;  %vm256_vm1 = vcmask 0   ;;  %v7241_v0 = vmov 0   ;;  %vm341_vm2 = vsmask.f32 256 }
  0x15   : > { %6437 = vset.pattern.permute.xlu0 %v7241_v0  ;;  %254 = vst.msk [vmem:[#allocation2] sm:$0xf] %vm253_vm0, %v7241_v0  ;;  %255 = vst.msk [vmem:[#allocation2 + $0x4] sm:$0xf] %vm253_vm0, %v7241_v0  ;;  %6448 = vset.pattern.permute.xlu1 %v7241_v0  ;;  %vm342_vm3 = vsmask.f32 4368 }
  0x16   : > { %258 = vst.msk [vmem:[#allocation2 + $0xc] sm:$0xf] %vm253_vm0, %v7241_v0  ;;  %259 = vst.msk [vmem:[#allocation2 + $0x10] sm:$0xf] %vm253_vm0, %v7241_v0  ;;  %s239_s29 = scalar_select %p238_p11, %s7231_s18, 1  ;;  %vm1515_vm8 = vcmask 1046528  }
  0x17   : > { %261 = vst.msk [vmem:[#allocation2 + $0x18] sm:$0xf] %vm253_vm0, %v7241_v0  ;;  %262 = vst.msk [vmem:[#allocation2 + $0x1c] sm:$0xf] %vm253_vm0, %v7241_v0  ;;  %vm666_vm4 = vsmask.f32 7938 }
  0x18   : > { %264 = vst.msk [vmem:[#allocation2 + $0x24] sm:$0xf] %vm253_vm0, %v7241_v0  ;;  %265 = vst.msk [vmem:[#allocation2 + $0x28] sm:$0xf] %vm253_vm0, %v7241_v0  ;;  %s6076_s30 = sshll.u32 %s239_s29, 7  ;;  %vm1875_vm9 = vcmask 1045504  }
  0x19   : > { %267 = vst.msk [vmem:[#allocation2 + $0x30] sm:$0xf] %vm253_vm0, %v7241_v0  ;;  %268 = vst.msk [vmem:[#allocation2 + $0x34] sm:$0xf] %vm253_vm0, %v7241_v0  ;;  %s7387_s7 = scalar_lea.vmem %s10699_s0, %s6076_s30  ;;  %vm4605_vm10 = vcmask 523264   ;;  %vm5006_vm11 = vcmask 517120  }
  0x1a   : > { %270 = vst.msk [vmem:[#allocation2 + $0x3c] sm:$0xf] %vm253_vm0, %v7241_v0  ;;  %271 = vst.msk [vmem:[#allocation2 + $0x40] sm:$0xf] %vm253_vm0, %v7241_v0  ;;  %v311_v1 = vld [vmem:[%s7387_s7 + $0x8] sm:$0xf] }
  0x1b   : > { %273 = vst.msk [vmem:[#allocation2 + $0x48] sm:$0xf] %vm253_vm0, %v7241_v0  ;;  %274 = vst.msk [vmem:[#allocation2 + $0x4c] sm:$0xf] %vm253_vm0, %v7241_v0  ;;  %v312_v2 = vld [vmem:[%s7387_s7 + $0xc] sm:$0xf] }
  0x1c   : > { %276 = vst.msk [vmem:[#allocation2 + $0x54] sm:$0xf] %vm253_vm0, %v7241_v0  ;;  %277 = vst.msk [vmem:[#allocation2 + $0x58] sm:$0xf] %vm253_vm0, %v7241_v0  ;;  %v309_v3 = vld [vmem:[%s7387_s7] sm:$0xf] }
  0x1d   : > { %279 = vst.msk [vmem:[#allocation2 + $0x60] sm:$0xf] %vm253_vm0, %v7241_v0  ;;  %280 = vst.msk [vmem:[#allocation2 + $0x64] sm:$0xf] %vm253_vm0, %v7241_v0  ;;  %v362_v4 = vshrl.u32 %v311_v1, 16  ;;  %v365_v5 = vshll.u32 %v311_v1, 16 }
  0x1e   : > { %282 = vst.msk [vmem:[#allocation2 + $0x6c] sm:$0xf] %vm253_vm0, %v7241_v0  ;;  %283 = vst.msk [vmem:[#allocation2 + $0x70] sm:$0xf] %vm253_vm0, %v7241_v0  ;;  %v370_v6 = vshrl.u32 %v312_v2, 16  ;;  %v373_v7 = vshll.u32 %v312_v2, 16 }
  0x1f   : > { %285 = vst.msk [vmem:[#allocation2 + $0x78] sm:$0xf] %vm253_vm0, %v7241_v0  ;;  %286 = vst.msk [vmem:[#allocation2 + $0x7c] sm:$0xf] %vm253_vm0, %v7241_v0  ;;  %v310_v8 = vld [vmem:[%s7387_s7 + $0x4] sm:$0xf] }
  0x20   : > { %288 = vst.msk [vmem:[#allocation2 + $0x84] sm:$0xf] %vm253_vm0, %v7241_v0  ;;  %289 = vst.msk [vmem:[#allocation2 + $0x88] sm:$0xf] %vm253_vm0, %v7241_v0  ;;  %v6143_v9 = vld [vmem:[#allocation2] sm:$0xff]   ;;  %v345_v10 = vshrl.u32 %v309_v3, 16 }
  0x21   : > { %291 = vst.msk [vmem:[#allocation2 + $0x90] sm:$0xf] %vm253_vm0, %v7241_v0  ;;  %292 = vst.msk [vmem:[#allocation2 + $0x94] sm:$0xf] %vm253_vm0, %v7241_v0  ;;  %v348_v11 = vshll.u32 %v309_v3, 16  ;;  %v353_v12 = vshrl.u32 %v310_v8, 16  ;;  %v6144_v13 = vunpack.c.l.bf16 %v6143_v9  ;;  %v6145_v14 = vunpack.c.h.bf16 %v6143_v9 }
  0x22   : > { %294 = vst.msk [vmem:[#allocation2 + $0x9c] sm:$0xf] %vm253_vm0, %v7241_v0  ;;  %295 = vst.msk [vmem:[#allocation2 + $0xa0] sm:$0xf] %vm253_vm0, %v7241_v0  ;;  %v364_v16 = vrot.slane %v362_v4, 7  ;;  %v7399_v17 = vrot.slane %v370_v6, 7 }
  0x23   : > { %297 = vst.msk [vmem:[#allocation2 + $0xa8] sm:$0xf] %vm253_vm0, %v7241_v0  ;;  %298 = vst.msk [vmem:[#allocation2 + $0xac] sm:$0xf] %vm253_vm0, %v7241_v0  ;;  %v677_v18 = vld [vmem:[#allocation2 + $0x18] sm:$0xf]  ;;  %v7411_v26 = vpack.i.bf16 %v6145_v14, %v6144_v13 }
  0x24   : > { %300 = vst.msk [vmem:[#allocation2 + $0xb4] sm:$0xf] %vm253_vm0, %v7241_v0  ;;  %301 = vst.msk [vmem:[#allocation2 + $0xb8] sm:$0xf] %vm253_vm0, %v7241_v0  ;;  %v313_v19 = vld [vmem:[%s7387_s7 + $0x10] sm:$0xf]  ;;  %v367_v27 = vor.u32 %v365_v5, %v364_v16  ;;  %v375_v29 = vor.u32 %v373_v7, %v7399_v17 }
  0x25   : > { %303 = vst.msk [vmem:[#allocation2 + $0xc0] sm:$0xf] %vm253_vm0, %v7241_v0  ;;  %304 = vst.msk [vmem:[#allocation2 + $0xc4] sm:$0xf] %vm253_vm0, %v7241_v0  ;;  %v347_v21 = vrot.slane %v345_v10, 7  ;;  %v7408_v22 = vrot.slane %v353_v12, 7  ;;  %6439 = vperm.xlu0 %6437, %v7411_v26  }
  0x26   : > { %306 = vst.msk [vmem:[#allocation2 + $0xcc] sm:$0xf] %vm253_vm0, %v7241_v0  ;;  %307 = vst.msk [vmem:[#allocation2 + $0xd0] sm:$0xf] %vm253_vm0, %v7241_v0  ;;  %v356_v23 = vshll.u32 %v310_v8, 16  ;;  %v379_v25 = vshrl.u32 %v313_v19, 16 }
  0x27   : > { %257 = vst.msk [vmem:[#allocation2 + $0x8] sm:$0x1] %vm256_vm1, %v7241_v0  ;;  %260 = vst.msk [vmem:[#allocation2 + $0x14] sm:$0x1] %vm256_vm1, %v7241_v0  ;;  %v314_v24 = vld [vmem:[%s7387_s7 + $0x14] sm:$0xf]  ;;  %v350_v31 = vor.u32 %v348_v11, %v347_v21 }
  0x28   : > { %263 = vst.msk [vmem:[#allocation2 + $0x20] sm:$0x1] %vm256_vm1, %v7241_v0  ;;  %266 = vst.msk [vmem:[#allocation2 + $0x2c] sm:$0x1] %vm256_vm1, %v7241_v0  ;;  %v368_v28 = vrot.slane %v364_v16, 4  ;;  %v351_v32 = vrot.slane %v347_v21, 4  ;;  %v358_v33 = vor.u32 %v356_v23, %v7408_v22 }
  0x29   : > { %269 = vst.msk [vmem:[#allocation2 + $0x38] sm:$0x1] %vm256_vm1, %v7241_v0  ;;  %272 = vst.msk [vmem:[#allocation2 + $0x44] sm:$0x1] %vm256_vm1, %v7241_v0  ;;  %v668_v30 = vld [vmem:[#allocation2 + $0xc] sm:$0xf] }
  0x2a   : > { %275 = vst.msk [vmem:[#allocation2 + $0x50] sm:$0x1] %vm256_vm1, %v7241_v0  ;;  %278 = vst.msk [vmem:[#allocation2 + $0x5c] sm:$0x1] %vm256_vm1, %v7241_v0  ;;  %v381_v34 = vrot.slane %v379_v25, 7  ;;  %v382_v38 = vshll.u32 %v313_v19, 16 }
  0x2b   : > { %281 = vst.msk [vmem:[#allocation2 + $0x68] sm:$0x1] %vm256_vm1, %v7241_v0  ;;  %284 = vst.msk [vmem:[#allocation2 + $0x74] sm:$0x1] %vm256_vm1, %v7241_v0  ;;  %v315_v35 = vld [vmem:[%s7387_s7 + $0x18] sm:$0xf] }
  0x2c   : > { %287 = vst.msk [vmem:[#allocation2 + $0x80] sm:$0x1] %vm256_vm1, %v7241_v0  ;;  %290 = vst.msk [vmem:[#allocation2 + $0x8c] sm:$0x1] %vm256_vm1, %v7241_v0  ;;  %v387_v39 = vshrl.u32 %v314_v24, 16  ;;  %v385_v44 = vrot.slane %v381_v34, 4  ;;  %v384_v48 = vor.u32 %v382_v38, %v381_v34 }
  0x2d   : > { %293 = vst.msk [vmem:[#allocation2 + $0x98] sm:$0x1] %vm256_vm1, %v7241_v0  ;;  %296 = vst.msk [vmem:[#allocation2 + $0xa4] sm:$0x1] %vm256_vm1, %v7241_v0  ;;  %v316_v40 = vld [vmem:[%s7387_s7 + $0x1c] sm:$0xf] }
  0x2e   : > { %299 = vst.msk [vmem:[#allocation2 + $0xb0] sm:$0x1] %vm256_vm1, %v7241_v0  ;;  %302 = vst.msk [vmem:[#allocation2 + $0xbc] sm:$0x1] %vm256_vm1, %v7241_v0  ;;  %v317_v41 = vld [vmem:[%s7387_s7 + $0x20] sm:$0xf] }
  0x2f   : > { %305 = vst.msk [vmem:[#allocation2 + $0xc8] sm:$0x1] %vm256_vm1, %v7241_v0  ;;  %308 = vst.msk [vmem:[#allocation2 + $0xd4] sm:$0x1] %vm256_vm1, %v7241_v0  ;;  %v390_v45 = vshll.u32 %v314_v24, 16  ;;  %v7430_v49 = vrot.slane %v387_v39, 7 }
  0x30   : > { %vm7395_vm5 = vmor %vm341_vm2, %vm342_vm3  ;;  %v684_v46 = vld [vmem:[#allocation2 + $0x24] sm:$0xf]  ;;  %v396_v50 = vshrl.u32 %v315_v35, 16  ;;  %v399_v51 = vshll.u32 %v315_v35, 16  ;;  %v319_v52 = vld [vmem:[%s7387_s7 + $0x28] sm:$0xf] }
  0x31   : > { %vm7404_vm6 = vmand %vm253_vm0, %vm666_vm4  ;;  %v376_v36 = vsel %vm7395_vm5, %v368_v28, %v375_v29  ;;  %v359_v42 = vsel %vm7395_vm5, %v351_v32, %v358_v33  ;;  %v318_v47 = vld [vmem:[%s7387_s7 + $0x24] sm:$0xf]  ;;  %v404_v53 = vshrl.u32 %v316_v40, 16  ;;  %v407_v54 = vshll.u32 %v316_v40, 16  ;;  %v691_v60 = vld [vmem:[#allocation2 + $0x30] sm:$0xf] }
  0x32   : > { %v678_v37 = vsel %vm7404_vm6, %v367_v27, %v677_v18  ;;  %680 = vst.msk [vmem:[#allocation2 + $0x1c] sm:$0xf] %vm253_vm0, %v376_v36  ;;  %v669_v43 = vsel %vm7404_vm6, %v350_v31, %v668_v30  ;;  %671 = vst.msk [vmem:[#allocation2 + $0x10] sm:$0xf] %vm253_vm0, %v359_v42  ;;  %v413_v55 = vshrl.u32 %v317_v41, 16  ;;  %v416_v56 = vshll.u32 %v317_v41, 16 }
  0x33   : > { %679 = vst [vmem:[#allocation2 + $0x18] sm:$0xf] %v678_v37  ;;  %670 = vst [vmem:[#allocation2 + $0xc] sm:$0xf] %v669_v43  ;;  %v392_v57 = vor.u32 %v390_v45, %v7430_v49  ;;  %v685_v58 = vsel %vm7404_vm6, %v384_v48, %v684_v46  ;;  %v398_v59 = vrot.slane %v396_v50, 7  ;;  %v421_v61 = vshrl.u32 %v318_v47, 16 }
  0x34   : > { %686 = vst [vmem:[#allocation2 + $0x24] sm:$0xf] %v685_v58  ;;  %v7436_v62 = vrot.slane %v404_v53, 7  ;;  %v415_v63 = vrot.slane %v413_v55, 7  ;;  %v424_v0 = vshll.u32 %v318_v47, 16  ;;  %v430_v2 = vshrl.u32 %v319_v52, 16  ;;  %vm7562_vm7 = vmand %vm256_vm1, %vm341_vm2 }
  0x35   : > { %v320_v1 = vld [vmem:[%s7387_s7 + $0x2c] sm:$0xf]  ;;  %v393_v3 = vsel %vm7395_vm5, %v385_v44, %v392_v57  ;;  %v401_v4 = vor.u32 %v399_v51, %v398_v59  ;;  %v402_v5 = vrot.slane %v398_v59, 4  ;;  %v7441_v6 = vrot.slane %v421_v61, 7  ;;  %v698_v7 = vld [vmem:[#allocation2 + $0x3c] sm:$0xf] }
  0x36   : > { %687 = vst.msk [vmem:[#allocation2 + $0x28] sm:$0xf] %vm253_vm0, %v393_v3  ;;  %v409_v8 = vor.u32 %v407_v54, %v7436_v62  ;;  %v418_v9 = vor.u32 %v416_v56, %v415_v63  ;;  %v419_v10 = vrot.slane %v415_v63, 4  ;;  %v432_v11 = vrot.slane %v430_v2, 7  ;;  %v705_v27 = vld [vmem:[#allocation2 + $0x48] sm:$0xf] }
  0x37   : > { %v692_v13 = vsel %vm7404_vm6, %v401_v4, %v691_v60  ;;  %v426_v14 = vor.u32 %v424_v0, %v7441_v6  ;;  %v433_v16 = vshll.u32 %v319_v52, 16  ;;  %v438_v18 = vshrl.u32 %v320_v1, 16  ;;  %v321_v28 = vld [vmem:[%s7387_s7 + $0x30] sm:$0xf]  ;;  %v322_v33 = vld [vmem:[%s7387_s7 + $0x34] sm:$0xf] }
  0x38   : > { %v410_v24 = vsel %vm7395_vm5, %v402_v5, %v409_v8  ;;  %693 = vst [vmem:[#allocation2 + $0x30] sm:$0xf] %v692_v13  ;;  %v699_v25 = vsel %vm7404_vm6, %v418_v9, %v698_v7  ;;  %v323_v34 = vld [vmem:[%s7387_s7 + $0x38] sm:$0xf]  ;;  %v436_v36 = vrot.slane %v432_v11, 4  ;;  %v441_v38 = vshll.u32 %v320_v1, 16 }
  0x39   : > { %694 = vst.msk [vmem:[#allocation2 + $0x34] sm:$0xf] %vm253_vm0, %v410_v24  ;;  %v427_v31 = vsel %vm7395_vm5, %v419_v10, %v426_v14  ;;  %700 = vst [vmem:[#allocation2 + $0x3c] sm:$0xf] %v699_v25  ;;  %v435_v32 = vor.u32 %v433_v16, %v432_v11  ;;  %v7461_v37 = vrot.slane %v438_v18, 7  ;;  %v447_v42 = vshrl.u32 %v321_v28, 16 }
  0x3a   : > { %v6334_v12 = vld [vmem:[#allocation2 + $0x18] sm:$0xff]   ;;  %v784_v23 = vld [vmem:[#allocation2 + $0xc] sm:$0xff]   ;;  %701 = vst.msk [vmem:[#allocation2 + $0x40] sm:$0xf] %vm253_vm0, %v427_v31  ;;  %v450_v43 = vshll.u32 %v321_v28, 16  ;;  %v455_v45 = vshrl.u32 %v322_v33, 16 }
  0x3b   : > { %v6148_v19 = vunpack.c.l.bf16 %v6334_v12  ;;  %v6149_v21 = vunpack.c.h.bf16 %v6334_v12  ;;  %v816_v29 = vunpack.c.l.bf16 %v784_v23  ;;  %v817_v30 = vunpack.c.h.bf16 %v784_v23  ;;  %v324_v39 = vld [vmem:[%s7387_s7 + $0x3c] sm:$0xf]  ;;  %v325_v48 = vld [vmem:[%s7387_s7 + $0x40] sm:$0xf]  ;;  %v712_v59 = vld [vmem:[#allocation2 + $0x54] sm:$0xf] }
  0x3c   : > { %v706_v41 = vsel %vm7404_vm6, %v435_v32, %v705_v27  ;;  %v443_v44 = vor.u32 %v441_v38, %v7461_v37  ;;  %v458_v46 = vshll.u32 %v322_v33, 16  ;;  %v464_v47 = vshrl.u32 %v323_v34, 16  ;;  %v719_v4 = vld [vmem:[#allocation2 + $0x60] sm:$0xf]  ;;  %v326_v13 = vld [vmem:[%s7387_s7 + $0x44] sm:$0xf] }
  0x3d   : > { %v7458_v35 = vpack.i.bf16 %v6149_v21, %v6148_v19  ;;  %v6443_v40 = vpack.i.bf16 %v817_v30, %v816_v29  ;;  %707 = vst [vmem:[#allocation2 + $0x48] sm:$0xf] %v706_v41  ;;  %v788_v50 = vld [vmem:[#allocation2 + $0x24] sm:$0xff]   ;;  %v449_v51 = vrot.slane %v447_v42, 7  ;;  %v467_v52 = vshll.u32 %v323_v34, 16  ;;  %s235_s26 = sand.u32 1, %s7223_s16  }
  0x3e   : > { %v472_v53 = vshrl.u32 %v324_v39, 16  ;;  %v475_v54 = vshll.u32 %v324_v39, 16  ;;  %v820_v55 = vunpack.c.l.bf16 %v788_v50  ;;  %v821_v56 = vunpack.c.h.bf16 %v788_v50  ;;  %v327_v14 = vld [vmem:[%s7387_s7 + $0x48] sm:$0xf]  ;;  %v726_v28 = vld [vmem:[#allocation2 + $0x6c] sm:$0xf] }
  0x3f   : > { %6450 = vperm.xlu1 %6448, %v7458_v35   ;;  %6444 = vperm.xlu0 %6437, %v6443_v40   ;;  %v444_v57 = vsel %vm7395_vm5, %v436_v36, %v443_v44  ;;  %v7471_v58 = vrot.slane %v455_v45, 7  ;;  %v452_v60 = vor.u32 %v450_v43, %v449_v51  ;;  %v453_v61 = vrot.slane %v449_v51, 4  ;;  %v328_v29 = vld [vmem:[%s7387_s7 + $0x4c] sm:$0xf]  ;;  %v329_v34 = vld [vmem:[%s7387_s7 + $0x50] sm:$0xf] }
  0x40   : > { %708 = vst.msk [vmem:[#allocation2 + $0x4c] sm:$0xf] %vm253_vm0, %v444_v57  ;;  %v466_v63 = vrot.slane %v464_v47, 7  ;;  %v7474_v0 = vrot.slane %v472_v53, 7  ;;  %v6454_v1 = vpack.i.bf16 %v821_v56, %v820_v55  ;;  %v6335_v2 = vld [vmem:[#allocation2 + $0x30] sm:$0xff]   ;;  %v481_v5 = vshrl.u32 %v325_v48, 16 }
  0x41   : > { %v460_v3 = vor.u32 %v458_v46, %v7471_v58  ;;  %v484_v7 = vshll.u32 %v325_v48, 16  ;;  %v6152_v8 = vunpack.c.l.bf16 %v6335_v2  ;;  %v6153_v9 = vunpack.c.h.bf16 %v6335_v2  ;;  %v792_v10 = vld [vmem:[#allocation2 + $0x3c] sm:$0xff]   ;;  %v330_v41 = vld [vmem:[%s7387_s7 + $0x54] sm:$0xf]  ;;  %v733_v51 = vld [vmem:[#allocation2 + $0x78] sm:$0xf] }
  0x42   : > { %v713_v11 = vsel %vm7404_vm6, %v452_v60, %v712_v59  ;;  %v469_v12 = vor.u32 %v467_v52, %v466_v63  ;;  %v824_v16 = vunpack.c.l.bf16 %v792_v10  ;;  %v825_v18 = vunpack.c.h.bf16 %v792_v10  ;;  %s5994_s29 = sshll.u32 %s235_s26, 5  ;;  %s6141_s9 = sshll.u32 %s7231_s18, 9 }
  0x43   : > { %6455 = vperm.xlu1 %6448, %v6454_v1   ;;  %v461_v19 = vsel %vm7395_vm5, %v453_v61, %v460_v3  ;;  %714 = vst [vmem:[#allocation2 + $0x54] sm:$0xf] %v713_v11  ;;  %v470_v21 = vrot.slane %v466_v63, 4  ;;  %v7483_v23 = vpack.i.bf16 %v6153_v9, %v6152_v8  ;;  %v477_v24 = vor.u32 %v475_v54, %v7474_v0  ;;  %v331_v63 = vld [vmem:[%s7387_s7 + $0x58] sm:$0xf]  ;;  %s10529_s30 = scalar_lea.vmem [#allocation3], %s5994_s29  ;;  %s10646_s13 = scalar_lea.hbm %s10703_s4, %s6141_s9 }
  0x44   : > { %715 = vst.msk [vmem:[#allocation2 + $0x58] sm:$0xf] %vm253_vm0, %v461_v19  ;;  %v720_v25 = vsel %vm7404_vm6, %v469_v12, %v719_v4  ;;  %v483_v27 = vrot.slane %v481_v5, 7  ;;  %v6464_v30 = vpack.i.bf16 %v825_v18, %v824_v16  ;;  %v489_v31 = vshrl.u32 %v326_v13, 16  ;;  %v332_v8 = vld [vmem:[%s7387_s7 + $0x5c] sm:$0xf] }
  0x45   : > { %721 = vst [vmem:[#allocation2 + $0x60] sm:$0xf] %v720_v25  ;;  %v492_v32 = vshll.u32 %v326_v13, 16  ;;  %v498_v33 = vshrl.u32 %v327_v14, 16  ;;  %6460 = vperm.xlu0 %6437, %v7483_v23   ;;  %v478_v36 = vsel %vm7395_vm5, %v470_v21, %v477_v24  ;;  %v501_v40 = vshll.u32 %v327_v14, 16  ;;  %s5878_s10 = sshll.u32 %s10529_s30, 4  ;;  %s10648_s10 = int_to_ptr.vmem [resolvable:$true] %s5878_s10 }
  0x46   : > { %v486_v38 = vor.u32 %v484_v7, %v483_v27  ;;  %v487_v39 = vrot.slane %v483_v27, 4  ;;  %722 = vst.msk [vmem:[#allocation2 + $0x64] sm:$0xf] %vm253_vm0, %v478_v36  ;;  %v7496_v43 = vrot.slane %v489_v31, 7  ;;  %v506_v45 = vshrl.u32 %v328_v29, 16  ;;  %s10654_s18 = scalar_lea.sflag [#allocation4], %s235_s26 }
  0x47   : > { %6465 = vperm.xlu1 %6448, %v6464_v30   ;;  %v6336_v42 = vld [vmem:[#allocation2 + $0x48] sm:$0xff]   ;;  %v500_v44 = vrot.slane %v498_v33, 7  ;;  %v509_v46 = vshll.u32 %v328_v29, 16  ;;  %v515_v52 = vshrl.u32 %v329_v34, 16  ;;  %v518_v60 = vshll.u32 %v329_v34, 16  ;;  %s7163_s14 = scalar_lea.vmem %s10648_s10, 512 }
  0x48   : > { %v6156_v47 = vunpack.c.l.bf16 %v6336_v42  ;;  %v6157_v48 = vunpack.c.h.bf16 %v6336_v42  ;;  %v727_v50 = vsel %vm7404_vm6, %v486_v38, %v726_v28  ;;  %v494_v53 = vor.u32 %v492_v32, %v7496_v43  ;;  %v740_v7 = vld [vmem:[#allocation2 + $0x84] sm:$0xf]  ;;  %v333_v13 = vld [vmem:[%s7387_s7 + $0x60] sm:$0xf]  ;;  %v747_v34 = vld [vmem:[#allocation2 + $0x90] sm:$0xf]  ;;  %p7164_p12 = scmp.ne.s32.totalorder %s10648_s10, %s7163_s14 }
  0x49   : > { %728 = vst [vmem:[#allocation2 + $0x6c] sm:$0xf] %v727_v50  ;;  %v503_v54 = vor.u32 %v501_v40, %v500_v44  ;;  %v504_v55 = vrot.slane %v500_v44, 4  ;;  %v7501_v56 = vrot.slane %v506_v45, 7  ;;  %v517_v59 = vrot.slane %v515_v52, 7  ;;  %s7243_s21 = smov [#allocation3]  }
  0x4a   : > { %v7503_v57 = vpack.i.bf16 %v6157_v48, %v6156_v47  ;;  %v523_v61 = vshrl.u32 %v330_v41, 16  ;;  %v495_v2 = vsel %vm7395_vm5, %v487_v39, %v494_v53  ;;  %v526_v5 = vshll.u32 %v330_v41, 16  ;;  %v334_v21 = vld [vmem:[%s7387_s7 + $0x64] sm:$0xf]  ;;  %v335_v36 = vld [vmem:[%s7387_s7 + $0x68] sm:$0xf]  ;;  %p7165_p13 = pnand %p7164_p12, %p7311_p4 }
  0x4b   : > { %v796_v1 = vld [vmem:[#allocation2 + $0x54] sm:$0xff]   ;;  %v511_v3 = vor.u32 %v509_v46, %v7501_v56  ;;  %v734_v4 = vsel %vm7404_vm6, %v503_v54, %v733_v51  ;;  %729 = vst.msk [vmem:[#allocation2 + $0x70] sm:$0xf] %vm253_vm0, %v495_v2  ;;  %v520_v11 = vor.u32 %v518_v60, %v517_v59  ;;  %v521_v12 = vrot.slane %v517_v59, 4  ;;  %v336_v42 = vld [vmem:[%s7387_s7 + $0x6c] sm:$0xf] }
  0x4c   : > { %6470 = vperm.xlu0 %6437, %v7503_v57   ;;  %v828_v9 = vunpack.c.l.bf16 %v796_v1  ;;  %v829_v10 = vunpack.c.h.bf16 %v796_v1  ;;  %735 = vst [vmem:[#allocation2 + $0x78] sm:$0xf] %v734_v4  ;;  %v7517_v16 = vrot.slane %v523_v61, 7  ;;  %v532_v18 = vshrl.u32 %v331_v63, 16  ;;  %v337_v4 = vld [vmem:[%s7387_s7 + $0x70] sm:$0xf]  ;;  %p7166_p0 = pneg %p7165_p13 }
  0x4d   : > { %v512_v14 = vsel %vm7395_vm5, %v504_v55, %v511_v3  ;;  %v535_v19 = vshll.u32 %v331_v63, 16  ;;  %v6337_v25 = vld [vmem:[#allocation2 + $0x60] sm:$0xff]   ;;  %v741_v27 = vsel %vm7404_vm6, %v520_v11, %v740_v7  ;;  %v540_v28 = vshrl.u32 %v332_v8, 16  ;;  %v754_v55 = vld [vmem:[#allocation2 + $0x9c] sm:$0xf]  ;;  %s7167_s22 = sshll.u32 %s7243_s21, 4  ;;  %s7168_s22 = int_to_ptr.vmem [resolvable:$false] %s7167_s22 }
  0x4e   : > { %v6474_v24 = vpack.i.bf16 %v829_v10, %v828_v9  ;;  %736 = vst.msk [vmem:[#allocation2 + $0x7c] sm:$0xf] %vm253_vm0, %v512_v14  ;;  %v543_v29 = vshll.u32 %v332_v8, 16  ;;  %v6160_v30 = vunpack.c.l.bf16 %v6337_v25  ;;  %v6161_v31 = vunpack.c.h.bf16 %v6337_v25  ;;  %742 = vst [vmem:[#allocation2 + $0x84] sm:$0xf] %v741_v27  ;;  %s7169_s24 = scalar_lea.vmem %s7168_s22, 1024  ;;  %p7170_p1 = scmp.lt.s32.totalorder %s10648_s10, %s7168_s22 }
  0x4f   : > { %v528_v32 = vor.u32 %v526_v5, %v7517_v16  ;;  %v534_v33 = vrot.slane %v532_v18, 7  ;;  %v7525_v38 = vrot.slane %v540_v28, 7  ;;  %v549_v39 = vshrl.u32 %v333_v13, 16  ;;  %v338_v11 = vld [vmem:[%s7387_s7 + $0x74] sm:$0xf]  ;;  %p7171_p2 = scmp.lt.s32.totalorder %s7169_s24, %s7163_s14 }
  0x50   : > { %6475 = vperm.xlu1 %6448, %v6474_v24   ;;  %v552_v40 = vshll.u32 %v333_v13, 16  ;;  %v557_v41 = vshrl.u32 %v334_v21, 16  ;;  %v7528_v44 = vpack.i.bf16 %v6161_v31, %v6160_v30  ;;  %v560_v52 = vshll.u32 %v334_v21, 16 }
  0x51   : > { %v529_v45 = vsel %vm7395_vm5, %v521_v12, %v528_v32  ;;  %v537_v46 = vor.u32 %v535_v19, %v534_v33  ;;  %v538_v47 = vrot.slane %v534_v33, 4  ;;  %v545_v48 = vor.u32 %v543_v29, %v7525_v38  ;;  %v761_v19 = vld [vmem:[#allocation2 + $0xa8] sm:$0xf]  ;;  %p7172_p3 = por %p7171_p2, %p7170_p1 }
  0x52   : > { %743 = vst.msk [vmem:[#allocation2 + $0x88] sm:$0xf] %vm253_vm0, %v529_v45  ;;  %v551_v50 = vrot.slane %v549_v39, 7  ;;  %v7534_v51 = vrot.slane %v557_v41, 7  ;;  %6480 = vperm.xlu0 %6437, %v7528_v44   ;;  %v800_v53 = vld [vmem:[#allocation2 + $0x6c] sm:$0xff]   ;;  %v566_v59 = vshrl.u32 %v335_v36, 16 }
  0x53   : > { %v748_v54 = vsel %vm7404_vm6, %v537_v46, %v747_v34  ;;  %v569_v60 = vshll.u32 %v335_v36, 16  ;;  %v574_v61 = vshrl.u32 %v336_v42, 16  ;;  %v832_v63 = vunpack.c.l.bf16 %v800_v53  ;;  %v674_v46 = vld [vmem:[#allocation2 + $0x14] sm:$0x1]  ;;  %p7173_p5 = pnand %p7172_p3, %p7166_p0 }
  0x54   : > { %v833_v1 = vunpack.c.h.bf16 %v800_v53  ;;  %v546_v2 = vsel %vm7395_vm5, %v538_v47, %v545_v48  ;;  %749 = vst [vmem:[#allocation2 + $0x90] sm:$0xf] %v748_v54  ;;  %v554_v3 = vor.u32 %v552_v40, %v551_v50  ;;  %v555_v7 = vrot.slane %v551_v50, 4  ;;  %v768_v48 = vld [vmem:[#allocation2 + $0xb4] sm:$0xf] }
  0x55   : > { %v6338_v5 = vld [vmem:[#allocation2 + $0x78] sm:$0xff]   ;;  %750 = vst.msk [vmem:[#allocation2 + $0x94] sm:$0xf] %vm253_vm0, %v546_v2  ;;  %v562_v8 = vor.u32 %v560_v52, %v7534_v51  ;;  %v568_v9 = vrot.slane %v566_v59, 7  ;;  %v7544_v10 = vrot.slane %v574_v61, 7  ;;  %v577_v27 = vshll.u32 %v336_v42, 16 }
  0x56   : > { %v6484_v12 = vpack.i.bf16 %v833_v1, %v832_v63  ;;  %v6164_v13 = vunpack.c.l.bf16 %v6338_v5  ;;  %v6165_v14 = vunpack.c.h.bf16 %v6338_v5  ;;  %v755_v18 = vsel %vm7404_vm6, %v554_v3, %v754_v55  ;;  %v681_v1 = vld [vmem:[#allocation2 + $0x20] sm:$0x1]  ;;  %v695_v5 = vld [vmem:[#allocation2 + $0x38] sm:$0x1] }
  0x57   : > { %v563_v21 = vsel %vm7395_vm5, %v555_v7, %v562_v8  ;;  %756 = vst [vmem:[#allocation2 + $0x9c] sm:$0xf] %v755_v18  ;;  %v571_v24 = vor.u32 %v569_v60, %v568_v9  ;;  %v572_v25 = vrot.slane %v568_v9, 4  ;;  %v583_v29 = vshrl.u32 %v337_v4, 16  ;;  %v702_v18 = vld [vmem:[#allocation2 + $0x44] sm:$0x1] }
  0x58   : > { %6485 = vperm.xlu1 %6448, %v6484_v12   ;;  %v7551_v28 = vpack.i.bf16 %v6165_v14, %v6164_v13  ;;  %757 = vst.msk [vmem:[#allocation2 + $0xa0] sm:$0xf] %vm253_vm0, %v563_v21  ;;  %v586_v30 = vshll.u32 %v337_v4, 16  ;;  %v591_v31 = vshrl.u32 %v338_v11, 16  ;;  %v579_v33 = vor.u32 %v577_v27, %v7544_v10  ;;  %v688_v4 = vld [vmem:[#allocation2 + $0x2c] sm:$0x1] }
  0x59   : > { %v804_v32 = vld [vmem:[#allocation2 + $0x84] sm:$0xff]   ;;  %v762_v34 = vsel %vm7404_vm6, %v571_v24, %v761_v19  ;;  %v594_v36 = vshll.u32 %v338_v11, 16  ;;  %v585_v41 = vrot.slane %v583_v29, 7  ;;  %v360_v50 = vrot.slane %v7408_v22, 4  ;;  %v716_v24 = vld [vmem:[#allocation2 + $0x5c] sm:$0x1] }
  0x5a   : > { %6490 = vperm.xlu0 %6437, %v7551_v28   ;;  %v836_v39 = vunpack.c.l.bf16 %v804_v32  ;;  %v837_v40 = vunpack.c.h.bf16 %v804_v32  ;;  %763 = vst [vmem:[#allocation2 + $0xa8] sm:$0xf] %v762_v34  ;;  %v7558_v42 = vrot.slane %v591_v31, 7  ;;  %v580_v47 = vsel %vm7395_vm5, %v572_v25, %v579_v33  ;;  %v723_v29 = vld [vmem:[#allocation2 + $0x68] sm:$0x1]  ;;  %v1079_v32 = vld [vmem:[#allocation2 + $0xc] sm:$0xff]  }
  0x5b   : > { %764 = vst.msk [vmem:[#allocation2 + $0xac] sm:$0xf] %vm253_vm0, %v580_v47  ;;  %v588_v54 = vor.u32 %v586_v30, %v585_v41  ;;  %v589_v55 = vrot.slane %v585_v41, 4  ;;  %v675_v63 = vsel %vm7562_vm7, %v360_v50, %v674_v46  ;;  %v377_v3 = vrot.slane %v7399_v17, 4  ;;  %v1078_v31 = vld [vmem:[#allocation2 + $0x8] sm:$0x1] }
  0x5c   : > { %v6494_v52 = vpack.i.bf16 %v837_v40, %v836_v39  ;;  %v6339_v53 = vld [vmem:[#allocation2 + $0x90] sm:$0xff]   ;;  %v596_v59 = vor.u32 %v594_v36, %v7558_v42  ;;  %676 = vst [vmem:[#allocation2 + $0x14] sm:$0x1] %v675_v63  ;;  %v394_v9 = vrot.slane %v7430_v49, 4  ;;  %v411_v11 = vrot.slane %v7436_v62, 4 }
  0x5d   : > { %v6168_v60 = vunpack.c.l.bf16 %v6339_v53  ;;  %v6169_v61 = vunpack.c.h.bf16 %v6339_v53  ;;  %v769_v22 = vsel %vm7404_vm6, %v588_v54, %v768_v48  ;;  %v682_v14 = vsel %vm7562_vm7, %v377_v3, %v681_v1  ;;  %v709_v49 = vld [vmem:[#allocation2 + $0x50] sm:$0x1]  ;;  %v737_v40 = vld [vmem:[#allocation2 + $0x80] sm:$0x1]  ;;  %v744_v48 = vld [vmem:[#allocation2 + $0x8c] sm:$0x1] }
  0x5e   : > { %6495 = vperm.xlu1 %6448, %v6494_v52   ;;  %v597_v2 = vsel %vm7395_vm5, %v589_v55, %v596_v59  ;;  %770 = vst [vmem:[#allocation2 + $0xb4] sm:$0xf] %v769_v22  ;;  %683 = vst [vmem:[#allocation2 + $0x20] sm:$0x1] %v682_v14  ;;  %v689_v17 = vsel %vm7562_vm7, %v394_v9, %v688_v4  ;;  %v696_v19 = vsel %vm7562_vm7, %v411_v11, %v695_v5  ;;  %v758_v22 = vld [vmem:[#allocation2 + $0xa4] sm:$0x1] }
  0x5f   : > { %v7578_v7 = vpack.i.bf16 %v6169_v61, %v6168_v60  ;;  %v808_v8 = vld [vmem:[#allocation2 + $0x9c] sm:$0xff]   ;;  %771 = vst.msk [vmem:[#allocation2 + $0xb8] sm:$0xf] %vm253_vm0, %v597_v2  ;;  %v428_v21 = vrot.slane %v7441_v6, 4  ;;  %690 = vst [vmem:[#allocation2 + $0x2c] sm:$0x1] %v689_v17  ;;  %v1126_v53 = vunpack.c.l.bf16 %v1078_v31  ;;  %v1127_v54 = vunpack.c.l.bf16 %v1079_v32 }
  0x60   : > { %v840_v12 = vunpack.c.l.bf16 %v808_v8  ;;  %v841_v13 = vunpack.c.h.bf16 %v808_v8  ;;  %697 = vst [vmem:[#allocation2 + $0x38] sm:$0x1] %v696_v19  ;;  %v445_v25 = vrot.slane %v7461_v37, 4  ;;  %v462_v27 = vrot.slane %v7471_v58, 4  ;;  %v730_v58 = vld [vmem:[#allocation2 + $0x74] sm:$0x1] }
  0x61   : > { %6500 = vperm.xlu0 %6437, %v7578_v7   ;;  %v703_v33 = vsel %vm7562_vm7, %v428_v21, %v702_v18  ;;  %v479_v34 = vrot.slane %v7474_v0, 4  ;;  %v496_v0 = vrot.slane %v7496_v43, 4  ;;  %v513_v47 = vrot.slane %v7501_v56, 4  ;;  %v751_v43 = vld [vmem:[#allocation2 + $0x98] sm:$0x1]  ;;  %v1085_v5 = vld [vmem:[#allocation2 + $0x24] sm:$0xff]  }
  0x62   : > { %v6504_v62 = vpack.i.bf16 %v841_v13, %v840_v12  ;;  %v6340_v30 = vld [vmem:[#allocation2 + $0xa8] sm:$0xff]   ;;  %704 = vst [vmem:[#allocation2 + $0x44] sm:$0x1] %v703_v33  ;;  %v710_v39 = vsel %vm7562_vm7, %v445_v25, %v709_v49  ;;  %v717_v37 = vsel %vm7562_vm7, %v462_v27, %v716_v24  ;;  %v530_v55 = vrot.slane %v7517_v16, 4  ;;  %v765_v11 = vld [vmem:[#allocation2 + $0xb0] sm:$0x1] }
  0x63   : > { %v6172_v6 = vunpack.c.l.bf16 %v6340_v30  ;;  %v6173_v36 = vunpack.c.h.bf16 %v6340_v30  ;;  %v1081_v41 = vld [vmem:[#allocation2 + $0x14] sm:$0x1]  ;;  %711 = vst [vmem:[#allocation2 + $0x50] sm:$0x1] %v710_v39  ;;  %718 = vst [vmem:[#allocation2 + $0x5c] sm:$0x1] %v717_v37  ;;  %v724_v46 = vsel %vm7562_vm7, %v479_v34, %v723_v29  ;;  %v731_v61 = vsel %vm7562_vm7, %v496_v0, %v730_v58 }
  0x64   : > { %6505 = vperm.xlu1 %6448, %v6504_v62   ;;  %725 = vst [vmem:[#allocation2 + $0x68] sm:$0x1] %v724_v46  ;;  %v738_v63 = vsel %vm7562_vm7, %v513_v47, %v737_v40  ;;  %v1128_v56 = vunpack.c.h.bf16 %v1079_v32  ;;  %v1129_v1 = vunpack.c.l.bf16 %v1081_v41  ;;  %732 = vst [vmem:[#allocation2 + $0x74] sm:$0x1] %v731_v61  ;;  %v745_v2 = vsel %vm7562_vm7, %v530_v55, %v744_v48  ;;  %v1091_v27 = vld [vmem:[#allocation2 + $0x3c] sm:$0xff]   ;;  %v1103_v47 = vld [vmem:[#allocation2 + $0x6c] sm:$0xff]  }
  0x65   : > { %v7604_v50 = vpack.i.bf16 %v6173_v36, %v6172_v6  ;;  %739 = vst [vmem:[#allocation2 + $0x80] sm:$0x1] %v738_v63  ;;  %v547_v16 = vrot.slane %v7525_v38, 4  ;;  %v1084_v4 = vld [vmem:[#allocation2 + $0x20] sm:$0x1]  ;;  %v564_v8 = vrot.slane %v7534_v51, 4  ;;  %v6524_v12 = vpack.i.bf16 %v1127_v54, %v1126_v53 }
  0x66   : > { %v812_v52 = vld [vmem:[#allocation2 + $0xb4] sm:$0xff]   ;;  %746 = vst [vmem:[#allocation2 + $0x8c] sm:$0x1] %v745_v2  ;;  %v581_v14 = vrot.slane %v7544_v10, 4  ;;  %v772_v38 = vld [vmem:[#allocation2 + $0xbc] sm:$0x1]  ;;  %v6529_v18 = vpack.i.bf16 %v1129_v1, %v1128_v56  ;;  %v1132_v17 = vunpack.c.l.bf16 %v1084_v4  ;;  %v1133_v19 = vunpack.c.l.bf16 %v1085_v5 }
  0x67   : > { %v844_v59 = vunpack.c.l.bf16 %v812_v52  ;;  %v845_v60 = vunpack.c.h.bf16 %v812_v52  ;;  %6510 = vperm.xlu0 %6437, %v7604_v50   ;;  %v752_v9 = vsel %vm7562_vm7, %v547_v16, %v751_v43  ;;  %v759_v13 = vsel %vm7562_vm7, %v564_v8, %v758_v22  ;;  %v1087_v21 = vld [vmem:[#allocation2 + $0x2c] sm:$0x1]  ;;  %v1090_v25 = vld [vmem:[#allocation2 + $0x38] sm:$0x1]  ;;  %v340_v53 = vld [vmem:[%s7387_s7 + $0x7c] sm:$0xf] }
  0x68   : > { %753 = vst [vmem:[#allocation2 + $0x98] sm:$0x1] %v752_v9  ;;  %760 = vst [vmem:[#allocation2 + $0xa4] sm:$0x1] %v759_v13  ;;  %v598_v51 = vrot.slane %v7558_v42, 4  ;;  %v766_v49 = vsel %vm7562_vm7, %v581_v14, %v765_v11  ;;  %v1134_v62 = vunpack.c.h.bf16 %v1085_v5  ;;  %v1135_v10 = vunpack.c.l.bf16 %v1087_v21  ;;  %v1097_v6 = vld [vmem:[#allocation2 + $0x54] sm:$0xff]  }
  0x69   : > { %v6514_v3 = vpack.i.bf16 %v845_v60, %v844_v59  ;;  %767 = vst [vmem:[#allocation2 + $0xb0] sm:$0x1] %v766_v49  ;;  %v1093_v29 = vld [vmem:[#allocation2 + $0x44] sm:$0x1]  ;;  %v1138_v42 = vunpack.c.l.bf16 %v1090_v25  ;;  %v1139_v31 = vunpack.c.l.bf16 %v1091_v27  ;;  %v1140_v32 = vunpack.c.h.bf16 %v1091_v27  ;;  %v339_v52 = vld [vmem:[%s7387_s7 + $0x78] sm:$0xf] }
  0x6a   : > { %v773_v24 = vsel %vm7562_vm7, %v598_v51, %v772_v38  ;;  %v6544_v30 = vpack.i.bf16 %v1135_v10, %v1134_v62  ;;  %v1141_v33 = vunpack.c.l.bf16 %v1093_v29  ;;  %v1096_v34 = vld [vmem:[#allocation2 + $0x50] sm:$0x1]  ;;  %v1145_v58 = vunpack.c.l.bf16 %v1097_v6  ;;  %v1099_v40 = vld [vmem:[#allocation2 + $0x5c] sm:$0x1]  ;;  %v1109_v61 = vld [vmem:[#allocation2 + $0x84] sm:$0xff]  }
  0x6b   : > { %6515 = vperm.xlu1 %6448, %v6514_v3   ;;  %6520 = vperm.xlu0 %6437, %v7411_v26   ;;  %774 = vst [vmem:[#allocation2 + $0xbc] sm:$0x1] %v773_v24  ;;  %v6539_v26 = vpack.i.bf16 %v1133_v19, %v1132_v17  ;;  %v6554_v36 = vpack.i.bf16 %v1139_v31, %v1138_v42  ;;  %v1144_v37 = vunpack.c.l.bf16 %v1096_v34  ;;  %v1147_v41 = vunpack.c.l.bf16 %v1099_v40  ;;  %v1102_v0 = vld [vmem:[#allocation2 + $0x68] sm:$0x1]  ;;  %v1105_v48 = vld [vmem:[#allocation2 + $0x74] sm:$0x1] }
  0x6c   : > { %v6559_v39 = vpack.i.bf16 %v1141_v33, %v1140_v32  ;;  %v1150_v55 = vunpack.c.l.bf16 %v1102_v0  ;;  %v1151_v59 = vunpack.c.l.bf16 %v1103_v47  ;;  %v1153_v60 = vunpack.c.l.bf16 %v1105_v48  ;;  %v1108_v43 = vld [vmem:[#allocation2 + $0x80] sm:$0x1]  ;;  %v1121_v29 = vld [vmem:[#allocation2 + $0xb4] sm:$0xff]   ;;  %v1660_v33 = vld [vmem:[#allocation2] sm:$0xe] }
  0x6d   : > { %v6569_v46 = vpack.i.bf16 %v1145_v58, %v1144_v37  ;;  %v600_v63 = vshrl.u32 %v339_v52, 16  ;;  %v603_v56 = vshll.u32 %v339_v52, 16  ;;  %v608_v1 = vshrl.u32 %v340_v53, 16  ;;  %v775_v5 = vld [vmem:[#allocation2 + $0xc0] sm:$0xf] }
  0x6e   : > { %v611_v2 = vshll.u32 %v340_v53, 16  ;;  %v6584_v22 = vpack.i.bf16 %v1151_v59, %v1150_v55  ;;  %v1157_v3 = vunpack.c.l.bf16 %v1109_v61  ;;  %v1156_v9 = vunpack.c.l.bf16 %v1108_v43  ;;  %v1111_v11 = vld [vmem:[#allocation2 + $0x8c] sm:$0x1]  ;;  %v1115_v49 = vld [vmem:[#allocation2 + $0x9c] sm:$0xff]   ;;  %v1661_v34 = vld [vmem:[#allocation2 + $0xc] sm:$0xe] }
  0x6f   : > { %6525 = vperm.xlu1 %6448, %v6524_v12   ;;  %6530 = vperm.xlu0 %6437, %v6529_v18   ;;  %v602_v16 = vrot.slane %v600_v63, 7  ;;  %v610_v4 = vrot.slane %v608_v1, 7  ;;  %v1158_v18 = vunpack.c.h.bf16 %v1109_v61  ;;  %v1159_v17 = vunpack.c.l.bf16 %v1111_v11  ;;  %v1114_v51 = vld [vmem:[#allocation2 + $0x98] sm:$0x1]  ;;  %v1117_v24 = vld [vmem:[#allocation2 + $0xa4] sm:$0x1] }
  0x70   : > { %v6599_v21 = vpack.i.bf16 %v1157_v3, %v1156_v9  ;;  %v1162_v10 = vunpack.c.l.bf16 %v1114_v51  ;;  %v1163_v20 = vunpack.c.l.bf16 %v1115_v49  ;;  %v1165_v25 = vunpack.c.l.bf16 %v1117_v24  ;;  %v1120_v27 = vld [vmem:[#allocation2 + $0xb0] sm:$0x1]  ;;  %v1662_v40 = vld [vmem:[#allocation2 + $0x18] sm:$0xe]  ;;  %v1665_v0 = vld [vmem:[#allocation2 + $0x3c] sm:$0xe] }
  0x71   : > { %v605_v12 = vor.u32 %v603_v56, %v602_v16  ;;  %v606_v13 = vrot.slane %v602_v16, 4  ;;  %v613_v14 = vor.u32 %v611_v2, %v610_v4  ;;  %v6604_v62 = vpack.i.bf16 %v1159_v17, %v1158_v18  ;;  %v1667_v61 = vld [vmem:[#allocation2 + $0x54] sm:$0xe]  ;;  %v1668_v63 = vld [vmem:[#allocation2 + $0x60] sm:$0xe] }
  0x72   : > { %v6614_v15 = vpack.i.bf16 %v1163_v20, %v1162_v10  ;;  %v1168_v42 = vunpack.c.l.bf16 %v1120_v27  ;;  %v1169_v31 = vunpack.c.l.bf16 %v1121_v29  ;;  %v1123_v32 = vld [vmem:[#allocation2 + $0xbc] sm:$0x1]  ;;  %v1676_v37 = vunpack.c.l.bf16 %v1660_v33  ;;  %v1669_v43 = vld [vmem:[#allocation2 + $0x6c] sm:$0xe]  ;;  %v1670_v16 = vld [vmem:[#allocation2 + $0x78] sm:$0xe] }
  0x73   : > { %6535 = vperm.xlu1 %6448, %v7458_v35   ;;  %6540 = vperm.xlu0 %6437, %v6539_v26   ;;  %v1146_v35 = vunpack.c.h.bf16 %v1097_v6  ;;  %v776_v38 = vsel %vm7404_vm6, %v605_v12, %v775_v5  ;;  %v614_v19 = vsel %vm7395_vm5, %v606_v13, %v613_v14  ;;  %v1164_v26 = vunpack.c.h.bf16 %v1115_v49  ;;  %v1672_v5 = vld [vmem:[#allocation2 + $0x90] sm:$0xe]  ;;  %v1674_v13 = vld [vmem:[#allocation2 + $0xa8] sm:$0xe]  ;;  %v1675_v14 = vld [vmem:[#allocation2 + $0xb4] sm:$0xe] }
  0x74   : > { %777 = vst [vmem:[#allocation2 + $0xc0] sm:$0xf] %v776_v38  ;;  %778 = vst.msk [vmem:[#allocation2 + $0xc4] sm:$0xf] %vm253_vm0, %v614_v19  ;;  %v1170_v6 = vunpack.c.h.bf16 %v1121_v29  ;;  %v1677_v58 = vunpack.c.l.bf16 %v1661_v34  ;;  %v1678_v52 = vunpack.c.l.bf16 %v1662_v40  ;;  %v1683_v2 = vunpack.c.l.bf16 %v1667_v61  ;;  %v2020_v19 = vld [vmem:[#allocation2 + $0xc] sm:$0xff]  }
  0x75   : > { %v6574_v54 = vpack.i.bf16 %v1147_v41, %v1146_v35  ;;  %v1663_v35 = vld [vmem:[#allocation2 + $0x24] sm:$0xe]  ;;  %v779_v41 = vld [vmem:[#allocation2 + $0xc8] sm:$0x1]  ;;  %v1685_v45 = vunpack.c.l.bf16 %v1669_v43  ;;  %v1686_v9 = vunpack.c.l.bf16 %v1670_v16  ;;  %v1688_v18 = vunpack.c.l.bf16 %v1672_v5  ;;  %v7647_v29 = vld [vmem:[#allocation2 + $0x30] sm:$0xff]  }
  0x76   : > { %v1679_v53 = vunpack.c.l.bf16 %v1663_v35  ;;  %v6639_v55 = vpack.i.bf16 %v1677_v58, %v1676_v37  ;;  %v1690_v49 = vunpack.c.l.bf16 %v1674_v13  ;;  %v1691_v24 = vunpack.c.l.bf16 %v1675_v14  ;;  %v2036_v33 = vld [vmem:[#allocation2 + $0x6c] sm:$0xff]   ;;  %v2040_v37 = vld [vmem:[#allocation2 + $0x84] sm:$0xff]   ;;  %v2044_v58 = vld [vmem:[#allocation2 + $0x9c] sm:$0xff]  }
  0x77   : > { %6545 = vperm.xlu1 %6448, %v6544_v30   ;;  %6550 = vperm.xlu0 %6437, %v7483_v23   ;;  %v1152_v23 = vunpack.c.h.bf16 %v1103_v47  ;;  %v6619_v30 = vpack.i.bf16 %v1165_v25, %v1164_v26  ;;  %v615_v47 = vrot.slane %v610_v4, 4  ;;  %v1684_v4 = vunpack.c.l.bf16 %v1668_v63  ;;  %v2320_v43 = vld [vmem:[#allocation2 + $0x20] sm:$0x1]  ;;  %v2323_v14 = vld [vmem:[#allocation2 + $0x2c] sm:$0x1] }
  0x78   : > { %v6644_v56 = vpack.i.bf16 %v1679_v53, %v1678_v52  ;;  %v2052_v10 = vunpack.c.l.bf16 %v2020_v19  ;;  %v2053_v20 = vunpack.c.h.bf16 %v2020_v19  ;;  %v6674_v34 = vpack.i.bf16 %v1691_v24, %v1690_v49  ;;  %v2329_v24 = vld [vmem:[#allocation2 + $0x44] sm:$0x1] }
  0x79   : > { %v6589_v8 = vpack.i.bf16 %v1153_v60, %v1152_v23  ;;  %v1681_v23 = vunpack.c.l.bf16 %v1665_v0  ;;  %v1666_v60 = vld [vmem:[#allocation2 + $0x48] sm:$0xe]  ;;  %v6659_v38 = vpack.i.bf16 %v1685_v45, %v1684_v4  ;;  %v6213_v40 = vunpack.c.h.bf16 %v7647_v29 }
  0x7a   : > { %v1682_v1 = vunpack.c.l.bf16 %v1666_v60  ;;  %v2072_v60 = vunpack.c.l.bf16 %v2040_v37  ;;  %v2073_v61 = vunpack.c.h.bf16 %v2040_v37  ;;  %v2076_v63 = vunpack.c.l.bf16 %v2044_v58  ;;  %v2338_v37 = vld [vmem:[#allocation2 + $0x68] sm:$0x1] }
  0x7b   : > { %6555 = vperm.xlu1 %6448, %v6554_v36   ;;  %6560 = vperm.xlu0 %6437, %v6559_v39   ;;  %v1171_v36 = vunpack.c.l.bf16 %v1123_v32  ;;  %v6629_v39 = vpack.i.bf16 %v1169_v31, %v1168_v42  ;;  %v2028_v31 = vld [vmem:[#allocation2 + $0x3c] sm:$0xff]   ;;  %v2032_v32 = vld [vmem:[#allocation2 + $0x54] sm:$0xff]   ;;  %vm5775_vm12 = vcmask 1041409   ;;  %vm5777_vm13 = vcmask 1042434  }
  0x7c   : > { %v6654_v12 = vpack.i.bf16 %v1683_v2, %v1682_v1  ;;  %v2060_v35 = vunpack.c.l.bf16 %v2028_v31  ;;  %v2064_v52 = vunpack.c.l.bf16 %v2032_v32  ;;  %v2065_v53 = vunpack.c.h.bf16 %v2032_v32 }
  0x7d   : > { %v6634_v48 = vpack.i.bf16 %v1171_v36, %v1170_v6  ;;  %v6679_v6 = vpack.i.bf16 %v2053_v20, %v2052_v10  ;;  %v2371_v32 = vunpack.c.l.bf16 %v2323_v14  ;;  %v2347_v14 = vld [vmem:[#allocation2 + $0x8c] sm:$0x1]  ;;  %vm5779_vm14 = vcmask 1043459  }
  0x7e   : > { %vm5781_vm15 = vcmask 1044484   ;;  %vm5783_vm0 = vcmask 1045509   ;;  %vm5785_vm1 = vcmask 1046534   ;;  %vm5787_vm2 = vcmask 1047559  }
  0x7f   : > { %6565 = vperm.xlu1 %6448, %v7503_v57   ;;  %6570 = vperm.xlu0 %6437, %v6569_v46   ;;  %v1664_v46 = vld [vmem:[#allocation2 + $0x30] sm:$0xe]  ;;  %vm5854_vm3 = vcmask 519168  }
  0x80   : > { %v1680_v59 = vunpack.c.l.bf16 %v1664_v46  ;;  %v846_v46 = vld [vmem:[%s10700_s1] sm:$0x1] }
  0x81   : > { %v847_v1 = vunpack.c.l.bf16 %v846_v46  ;;  %v2339_v46 = vld [vmem:[#allocation2 + $0x6c] sm:$0xff]  }
  0x82   : > { %v6649_v3 = vpack.i.bf16 %v1681_v23, %v1680_v59  ;;  %v2317_v59 = vld [vmem:[#allocation2 + $0x14] sm:$0x1]  ;;  %v2069_v23 = vunpack.c.h.bf16 %v2036_v33 }
  0x83   : > { %6575 = vperm.xlu1 %6448, %v6574_v54   ;;  %6580 = vperm.xlu0 %6437, %v7528_v44   ;;  %v780_v54 = vsel %vm7562_vm7, %v615_v47, %v779_v41  ;;  %v2061_v41 = vunpack.c.h.bf16 %v2028_v31  ;;  %v2048_v47 = vld [vmem:[#allocation2 + $0xb4] sm:$0xff]   ;;  %v2365_v5 = vunpack.c.l.bf16 %v2317_v59 }
  0x84   : > { %781 = vst [vmem:[#allocation2 + $0xc8] sm:$0x1] %v780_v54  ;;  %v2068_v54 = vunpack.c.l.bf16 %v2036_v33  ;;  %v2080_v2 = vunpack.c.l.bf16 %v2048_v47  ;;  %v2081_v16 = vunpack.c.h.bf16 %v2048_v47 }
  0x86   : > { %v7667_v19 = vpack.i.bf16 %v2069_v23, %v2068_v54  ;;  %v7678_v20 = vpack.i.bf16 %v2081_v16, %v2080_v2  ;;  %v2341_v54 = vld [vmem:[#allocation2 + $0x74] sm:$0x1] }
  0x87   : > { %6585 = vperm.xlu1 %6448, %v6584_v22   ;;  %6590 = vperm.xlu0 %6437, %v6589_v8   ;;  %v1671_v22 = vld [vmem:[#allocation2 + $0x84] sm:$0xe]  ;;  %v1673_v8 = vld [vmem:[#allocation2 + $0x9c] sm:$0xe] }
  0x88   : > { %v1687_v11 = vunpack.c.l.bf16 %v1671_v22  ;;  %v1689_v17 = vunpack.c.l.bf16 %v1673_v8  ;;  %v2321_v22 = vld [vmem:[#allocation2 + $0x24] sm:$0xff]   ;;  %v2368_v8 = vunpack.c.l.bf16 %v2320_v43  ;;  %v2387_v43 = vunpack.c.l.bf16 %v2339_v46 }
  0x89   : > { %v2370_v13 = vunpack.c.h.bf16 %v2321_v22 }
  0x8a   : > { %v6664_v51 = vpack.i.bf16 %v1687_v11, %v1686_v9  ;;  %v6669_v27 = vpack.i.bf16 %v1689_v17, %v1688_v18  ;;  %v6699_v11 = vpack.i.bf16 %v2061_v41, %v2060_v35  ;;  %v2327_v18 = vld [vmem:[#allocation2 + $0x3c] sm:$0xff]   ;;  %v6709_v17 = vpack.i.bf16 %v2065_v53, %v2064_v52 }
  0x8b   : > { %6595 = vperm.xlu1 %6448, %v7551_v28   ;;  %6600 = vperm.xlu0 %6437, %v6599_v21   ;;  %v7643_v21 = vld [vmem:[#allocation2 + $0x18] sm:$0xff]   ;;  %v2376_v35 = vunpack.c.h.bf16 %v2327_v18 }
  0x8c   : > { %v6208_v26 = vunpack.c.l.bf16 %v7643_v21  ;;  %v6209_v25 = vunpack.c.h.bf16 %v7643_v21  ;;  %v5997_v21 = vld [vmem:[%s10700_s1 + $0x1] sm:$0x1] }
  0x8e   : > { %v6684_v36 = vpack.i.bf16 %v6209_v25, %v6208_v26  ;;  %v7688_v31 = vpack.i.bf16 %v2368_v8, %v6209_v25  ;;  %v5998_v25 = vld [vmem:[%s10700_s1 + $0x2] sm:$0x1] }
  0x8f   : > { %6605 = vperm.xlu1 %6448, %v6604_v62   ;;  %6610 = vperm.xlu0 %6437, %v7578_v7   ;;  %v2024_v62 = vld [vmem:[#allocation2 + $0x24] sm:$0xff]   ;;  %v1694_v2 = vunpack.c.l.bf16 %v5998_v25  ;;  %v2357_v25 = vld [vmem:[#allocation2 + $0xb4] sm:$0xff]  }
  0x90   : > { %v2057_v42 = vunpack.c.h.bf16 %v2024_v62  ;;  %v7718_v8 = vld [vmem:[#allocation2 + $0xc0] sm:$0xff]  }
  0x93   : > { %6615 = vperm.xlu1 %6448, %v6614_v15   ;;  %6620 = vperm.xlu0 %6437, %v6619_v30   ;;  %v1008_v15 = vlaneseq  ;;  %v2056_v30 = vunpack.c.l.bf16 %v2024_v62  ;;  %v7673_v62 = vld [vmem:[#allocation2 + $0x48] sm:$0xff]  }
  0x94   : > { %v10709_v41 = vunpack.c.l.bf16 %v7673_v62  ;;  %v10708_v47 = vunpack.c.h.bf16 %v7673_v62 }
  0x95   : > { %v7658_v0 = vshrl.u32 %v1008_v15, 7  ;;  %v7684_v15 = vpack.i.bf16 %v6208_v26, %v2365_v5  ;;  %v2377_v26 = vunpack.c.l.bf16 %v2329_v24  ;;  %v7715_v5 = vld [vmem:[#allocation2 + $0x84] sm:$0xff]  }
  0x97   : > { %6625 = vperm.xlu1 %6448, %v7604_v50   ;;  %6630 = vperm.xlu0 %6437, %v6629_v39   ;;  %v6212_v39 = vunpack.c.l.bf16 %v7647_v29  ;;  %10831 = vst [vmem:[#allocation6_spill] sm:$0xff] %v7658_v0 }
  0x99   : > { %v6694_v9 = vpack.i.bf16 %v6213_v40, %v6212_v39  ;;  %v7708_v16 = vpack.i.bf16 %v6212_v39, %v2371_v32  ;;  %v2393_v32 = vunpack.c.l.bf16 %v7715_v5 }
  0x9b   : > { %6635 = vperm.xlu1 %6448, %v6634_v48   ;;  %6640 = vperm.xlu0 %6437, %v6639_v55   ;;  %v6689_v48 = vpack.i.bf16 %v2057_v42, %v2056_v30  ;;  %v2315_v55 = vld [vmem:[#allocation2 + $0xc] sm:$0xff]   ;;  %v2333_v42 = vld [vmem:[#allocation2 + $0x54] sm:$0xff]  }
  0x9c   : > { %v2363_v4 = vunpack.c.l.bf16 %v2315_v55  ;;  %v2364_v45 = vunpack.c.h.bf16 %v2315_v55  ;;  %v2332_v30 = vld [vmem:[#allocation2 + $0x50] sm:$0x1]  ;;  %v2381_v52 = vunpack.c.l.bf16 %v2333_v42  ;;  %v2382_v53 = vunpack.c.h.bf16 %v2333_v42  ;;  %v7702_v55 = vld [vmem:[#allocation2 + $0x78] sm:$0xff]  }
  0x9d   : > { %v10704_v39 = vunpack.c.h.bf16 %v7702_v55 }
  0x9f   : > { %6645 = vperm.xlu1 %6448, %v6644_v56   ;;  %6650 = vperm.xlu0 %6437, %v6649_v3   ;;  %v2077_v56 = vunpack.c.h.bf16 %v2044_v58  ;;  %v7661_v3 = vsub.s32 0, %v7658_v0 }
  0xa0   : > { %v7743_v24 = vpop.permute.xlu0 %6439 }
  0xa1   : > { %10832 = vst [vmem:[#allocation7_spill] sm:$0xff] %v7661_v3  ;;  %v7671_v49 = vpack.i.bf16 %v2077_v56, %v2076_v63  ;;  %v7676_v10 = vrot.slane %v847_v1, %v7661_v3  ;;  %v2344_v63 = vld [vmem:[#allocation2 + $0x80] sm:$0x1]  ;;  %v2388_v56 = vunpack.c.h.bf16 %v2339_v46  ;;  %v1174_v1 = vunpack.c.l.bf16 %v5997_v21  ;;  %v2356_v21 = vld [vmem:[#allocation2 + $0xb0] sm:$0x1] }
  0xa2   : > { %v2392_v29 = vunpack.c.l.bf16 %v2344_v63  ;;  %v7751_v42 = vrot.slane %v1694_v2, %v7661_v3  ;;  %v2394_v46 = vunpack.c.h.bf16 %v7715_v5  ;;  %v2899_v63 = vld [vmem:[#allocation2 + $0x18] sm:$0xe]  ;;  %v2901_v5 = vld [vmem:[#allocation2 + $0x30] sm:$0xe] }
  0xa3   : > { %6655 = vperm.xlu1 %6448, %v6654_v12   ;;  %6660 = vperm.xlu0 %6437, %v6659_v38   ;;  %v2369_v12 = vunpack.c.l.bf16 %v2321_v22  ;;  %v2326_v38 = vld [vmem:[#allocation2 + $0x38] sm:$0x1] }
  0xa4   : > { %v2374_v33 = vunpack.c.l.bf16 %v2326_v38  ;;  %v7741_v38 = vld [vmem:[#allocation2 + $0x90] sm:$0xff]   ;;  %10834 = vst [vmem:[#allocation9_spill] sm:$0xff] %v7751_v42 }
  0xa5   : > { %v7692_v58 = vpack.i.bf16 %v2370_v13, %v2369_v12  ;;  %v7731_v12 = vpack.i.bf16 %v2382_v53, %v2381_v52  ;;  %v7766_v52 = vpack.i.bf16 %v2392_v29, %v10704_v39  ;;  %v2902_v29 = vld [vmem:[#allocation2 + $0x3c] sm:$0xe]  ;;  %v2903_v39 = vld [vmem:[#allocation2 + $0x48] sm:$0xe] }
  0xa6   : > { %v7712_v22 = vpack.i.bf16 %v2374_v33, %v6213_v40  ;;  %v2350_v33 = vld [vmem:[#allocation2 + $0x98] sm:$0x1]  ;;  %v2918_v0 = vunpack.c.l.bf16 %v2902_v29  ;;  %v2919_v42 = vunpack.c.l.bf16 %v2903_v39 }
  0xa7   : > { %6665 = vperm.xlu1 %6448, %v6664_v51   ;;  %6670 = vperm.xlu0 %6437, %v6669_v27   ;;  %v7669_v51 = vpack.i.bf16 %v2073_v61, %v2072_v60  ;;  %v7680_v27 = vpack.i.bf16 %v2364_v45, %v2363_v4  ;;  %v2386_v61 = vunpack.c.l.bf16 %v2338_v37  ;;  %v10705_v4 = vunpack.c.l.bf16 %v7702_v55  ;;  %10835 = vst [vmem:[#allocation10_spill] sm:$0xff] %v7766_v52 }
  0xa8   : > { %v2389_v45 = vunpack.c.l.bf16 %v2341_v54  ;;  %v6236_v37 = vunpack.c.l.bf16 %v7718_v8  ;;  %v2395_v54 = vunpack.c.l.bf16 %v2347_v14  ;;  %v7783_v14 = vpack.i.bf16 %v2394_v46, %v2393_v32  ;;  %v2909_v32 = vld [vmem:[#allocation2 + $0x90] sm:$0xe] }
  0xaa   : > { %10837 = vst [vmem:[#allocation11_spill] sm:$0xff] %v7783_v14 }
  0xab   : > { %6675 = vperm.xlu1 %6448, %v6674_v34   ;;  %6680 = vperm.xlu0 %6437, %v6679_v6   ;;  %v2375_v34 = vunpack.c.l.bf16 %v2327_v18  ;;  %v2335_v6 = vld [vmem:[#allocation2 + $0x5c] sm:$0x1] }
  0xac   : > { %v2383_v23 = vunpack.c.l.bf16 %v2335_v6  ;;  %v2351_v18 = vld [vmem:[#allocation2 + $0x9c] sm:$0xff]   ;;  %v7754_v6 = vld [vmem:[#allocation2 + $0xa8] sm:$0xff]  }
  0xad   : > { %v2399_v2 = vunpack.c.l.bf16 %v2351_v18 }
  0xaf   : > { %6685 = vperm.xlu1 %6448, %v6684_v36   ;;  %6690 = vperm.xlu0 %6437, %v6689_v48   ;;  %v7690_v36 = vld [vmem:[#allocation2 + $0x60] sm:$0xff]   ;;  %v2380_v48 = vunpack.c.l.bf16 %v2332_v30  ;;  %v7748_v30 = vrot.slane %v1174_v1, %v7661_v3  ;;  %v2398_v1 = vunpack.c.l.bf16 %v2350_v33 }
  0xb0   : > { %v10707_v59 = vunpack.c.l.bf16 %v7690_v36  ;;  %v10706_v60 = vunpack.c.h.bf16 %v7690_v36 }
  0xb1   : > { %v7729_v40 = vpack.i.bf16 %v2380_v48, %v10708_v47  ;;  %10833 = vst [vmem:[#allocation8_spill] sm:$0xff] %v7748_v30  ;;  %v2359_v48 = vld [vmem:[#allocation2 + $0xbc] sm:$0x1]  ;;  %v2904_v47 = vld [vmem:[#allocation2 + $0x54] sm:$0xe] }
  0xb2   : > { %v7739_v13 = vpack.i.bf16 %v2386_v61, %v10706_v60  ;;  %v2898_v61 = vld [vmem:[#allocation2 + $0xc] sm:$0xe]  ;;  %v2404_v60 = vunpack.c.l.bf16 %v2356_v21  ;;  %v2407_v53 = vunpack.c.l.bf16 %v2359_v48  ;;  %v2908_v30 = vld [vmem:[#allocation2 + $0x84] sm:$0xe] }
  0xb3   : > { %6695 = vperm.xlu1 %6448, %v6694_v9   ;;  %6700 = vperm.xlu0 %6437, %v6699_v11   ;;  %v7720_v9 = vpack.i.bf16 %v2376_v35, %v2375_v34  ;;  %v7724_v11 = vpack.i.bf16 %v10709_v41, %v2377_v26  ;;  %v2353_v34 = vld [vmem:[#allocation2 + $0xa4] sm:$0x1]  ;;  %v7760_v26 = vpack.i.bf16 %v10705_v4, %v2389_v45  ;;  %v2400_v45 = vunpack.c.h.bf16 %v2351_v18  ;;  %v2905_v41 = vld [vmem:[#allocation2 + $0x60] sm:$0xe] }
  0xb4   : > { %v2401_v4 = vunpack.c.l.bf16 %v2353_v34  ;;  %v2915_v35 = vunpack.c.l.bf16 %v2899_v63  ;;  %v10836_v34 = vunpack.c.h.bf16 %v7718_v8  ;;  %v2921_v48 = vunpack.c.l.bf16 %v2905_v41  ;;  %v2907_v63 = vld [vmem:[#allocation2 + $0x78] sm:$0xe]  ;;  %v2911_v41 = vld [vmem:[#allocation2 + $0xa8] sm:$0xe] }
  0xb6   : > { %v7781_v21 = vpack.i.bf16 %v10836_v34, %v6236_v37  ;;  %v10844_v34 = vunpack.c.h.bf16 %v7754_v6 }
  0xb7   : > { %6705 = vperm.xlu1 %6448, %v7503_v57   ;;  %6710 = vperm.xlu0 %6437, %v6709_v17   ;;  %v7735_v57 = vpack.i.bf16 %v10707_v59, %v2383_v23  ;;  %v7745_v17 = vpack.i.bf16 %v2388_v56, %v2387_v43  ;;  %v2900_v43 = vld [vmem:[#allocation2 + $0x24] sm:$0xe]  ;;  %v2405_v59 = vunpack.c.l.bf16 %v2357_v25  ;;  %v2406_v23 = vunpack.c.h.bf16 %v2357_v25 }
  0xb8   : > { %v2916_v18 = vunpack.c.l.bf16 %v2900_v43  ;;  %v2920_v25 = vunpack.c.l.bf16 %v2904_v47  ;;  %v10839_v43 = vunpack.c.h.bf16 %v7741_v38  ;;  %v2910_v47 = vld [vmem:[#allocation2 + $0x9c] sm:$0xe]  ;;  %v7803_v14 = vpack.i.bf16 %v2404_v60, %v10844_v34  ;;  %v6364_v60 = vld [vmem:[#allocation2 + $0x30] sm:$0xff]  }
  0xba   : > { %v7771_v56 = vpop.permute.xlu1 %6450  ;;  %v7776_v33 = vpop.permute.xlu0 %6444  ;;  %v7791_v39 = vpack.i.bf16 %v2398_v1, %v10839_v43  ;;  %v6271_v43 = vld [vmem:[#allocation2 + $0x18] sm:$0xff]  }
  0xbb   : > { %6715 = vperm.xlu1 %6448, %v7528_v44   ;;  %6720 = vperm.xlu0 %6437, %v7667_v19   ;;  %v2914_v19 = vunpack.c.l.bf16 %v2898_v61  ;;  %v2917_v44 = vunpack.c.l.bf16 %v2901_v5  ;;  %v2906_v61 = vld [vmem:[#allocation2 + $0x6c] sm:$0xe]  ;;  %v10842_v5 = vunpack.c.l.bf16 %v7754_v6 }
  0xbc   : > { %10840 = vst [vmem:[#allocation12_spill] sm:$0xff] %v7791_v39  ;;  %v3260_v39 = vld [vmem:[#allocation2 + $0x24] sm:$0xff]  }
  0xbd   : > { %v7797_v29 = vpack.i.bf16 %v10842_v5, %v2401_v4  ;;  %v7809_v1 = vpack.i.bf16 %v2915_v35, %v2914_v19  ;;  %v7812_v4 = vpack.i.bf16 %v2917_v44, %v2916_v18  ;;  %v7814_v5 = vpack.i.bf16 %v2919_v42, %v2918_v0  ;;  %v3264_v19 = vld [vmem:[#allocation2 + $0x3c] sm:$0xff]   ;;  %v3268_v42 = vld [vmem:[#allocation2 + $0x54] sm:$0xff]  }
  0xbe   : > { %v7799_v46 = vpop.permute.xlu1 %6455  ;;  %v2924_v35 = vunpack.c.l.bf16 %v2908_v30  ;;  %v6272_v0 = vunpack.c.l.bf16 %v6271_v43  ;;  %v6277_v30 = vunpack.c.h.bf16 %v6364_v60 }
  0xbf   : > { %6725 = vperm.xlu1 %6448, %v7551_v28   ;;  %6730 = vperm.xlu0 %6437, %v7669_v51   ;;  %v10838_v28 = vunpack.c.l.bf16 %v7741_v38  ;;  %v7793_v51 = vpack.i.bf16 %v2400_v45, %v2399_v2  ;;  %10843 = vst [vmem:[#allocation14_spill] sm:$0xff] %v7797_v29  ;;  %10847 = vst [vmem:[#allocation17_spill] sm:$0xff] %v7809_v1  ;;  %v2912_v2 = vld [vmem:[#allocation2 + $0xb4] sm:$0xe]  ;;  %v2913_v45 = vld [vmem:[#allocation2 + $0xc0] sm:$0xe]  ;;  %v2922_v29 = vunpack.c.l.bf16 %v2906_v61  ;;  %v6276_v1 = vunpack.c.l.bf16 %v6364_v60 }
  0xc0   : > { %10848 = vst [vmem:[#allocation18_spill] sm:$0xff] %v7812_v4  ;;  %10849 = vst [vmem:[#allocation19_spill] sm:$0xff] %v7814_v5  ;;  %v7819_v34 = vpop.permute.xlu0 %6460  ;;  %v2928_v44 = vunpack.c.l.bf16 %v2912_v2  ;;  %v2929_v18 = vunpack.c.l.bf16 %v2913_v45  ;;  %v3272_v61 = vld [vmem:[#allocation2 + $0x6c] sm:$0xff]   ;;  %v3292_v5 = vunpack.c.l.bf16 %v3260_v39  ;;  %v3293_v4 = vunpack.c.h.bf16 %v3260_v39 }
  0xc1   : > { %v7787_v52 = vpack.i.bf16 %v10838_v28, %v2395_v54  ;;  %10841 = vst [vmem:[#allocation13_spill] sm:$0xff] %v7793_v51  ;;  %v7805_v54 = vpack.i.bf16 %v2406_v23, %v2405_v59  ;;  %v7807_v28 = vpack.i.bf16 %v6236_v37, %v2407_v53  ;;  %v2923_v51 = vunpack.c.l.bf16 %v2907_v63  ;;  %v2362_v59 = vld [vmem:[#allocation2 + $0xc8] sm:$0x1] }
  0xc2   : > { %v7817_v37 = vpack.i.bf16 %v2921_v48, %v2920_v25  ;;  %v2925_v53 = vunpack.c.l.bf16 %v2909_v32  ;;  %v2926_v23 = vunpack.c.l.bf16 %v2910_v47  ;;  %v6273_v63 = vunpack.c.h.bf16 %v6271_v43  ;;  %v7823_v47 = vpop.permute.xlu1 %6465 }
  0xc3   : > { %10845 = vst [vmem:[#allocation15_spill] sm:$0xff] %v7805_v54  ;;  %10846 = vst [vmem:[#allocation16_spill] sm:$0xff] %v7807_v28  ;;  %6735 = vperm.xlu1 %6448, %v7578_v7   ;;  %6740 = vperm.xlu0 %6437, %v7671_v49   ;;  %v2927_v7 = vunpack.c.l.bf16 %v2911_v41  ;;  %v3276_v49 = vld [vmem:[#allocation2 + $0x84] sm:$0xff]   ;;  %v2410_v25 = vunpack.c.l.bf16 %v2362_v59  ;;  %v3296_v48 = vunpack.c.l.bf16 %v3264_v19  ;;  %v3297_v32 = vunpack.c.h.bf16 %v3264_v19 }
  0xc4   : > { %10850 = vst [vmem:[#allocation20_spill] sm:$0xff] %v7817_v37  ;;  %v3300_v41 = vunpack.c.l.bf16 %v3268_v42  ;;  %v3301_v2 = vunpack.c.h.bf16 %v3268_v42  ;;  %v3304_v45 = vunpack.c.l.bf16 %v3272_v61  ;;  %v3305_v37 = vunpack.c.h.bf16 %v3272_v61  ;;  %v3284_v61 = vld [vmem:[#allocation2 + $0xb4] sm:$0xff]  }
  0xc5   : > { %v7825_v28 = vpack.i.bf16 %v2923_v51, %v2922_v29  ;;  %v7827_v43 = vpack.i.bf16 %v2925_v53, %v2924_v35  ;;  %v3308_v39 = vunpack.c.l.bf16 %v3276_v49  ;;  %v3309_v54 = vunpack.c.h.bf16 %v3276_v49 }
  0xc6   : > { %v7830_v59 = vpack.i.bf16 %v2927_v7, %v2926_v23  ;;  %v7832_v60 = vpack.i.bf16 %v2929_v18, %v2928_v44  ;;  %v7834_v19 = vpack.i.bf16 %v6273_v63, %v6272_v0  ;;  %v7839_v42 = vpack.i.bf16 %v3293_v4, %v3292_v5  ;;  %v3280_v7 = vld [vmem:[#allocation2 + $0x9c] sm:$0xff]  }
  0xc7   : > { %6745 = vperm.xlu1 %6448, %v7604_v50   ;;  %6750 = vperm.xlu0 %6437, %v7678_v20   ;;  %v6442_v50 = vunpack.i.h.bf16 %v7743_v24  ;;  %v7837_v20 = vpop.permute.xlu0 %6470  ;;  %v7841_v51 = vpack.i.bf16 %v6277_v30, %v6276_v1  ;;  %v7843_v29 = vpack.i.bf16 %v3297_v32, %v3296_v48  ;;  %v10851_v35 = vunpack.c.l.bf16 %v7673_v62  ;;  %v5999_v44 = vld [vmem:[%s10700_s1 + $0x3] sm:$0x1] }
  0xc8   : > { %v10852_v53 = vunpack.c.h.bf16 %v7673_v62  ;;  %v7859_v1 = vpack.i.bf16 %v3301_v2, %v3300_v41  ;;  %v10854_v5 = vunpack.c.l.bf16 %v7690_v36  ;;  %v10855_v18 = vunpack.c.h.bf16 %v7690_v36  ;;  %v6370_v63 = vld [vmem:[#allocation2 + $0xc0] sm:$0xff]  }
  0xc9   : > { %v7867_v0 = vpack.i.bf16 %v3305_v37, %v3304_v45  ;;  %v6441_v49 = vunpack.i.l.bf16 %v7743_v24  ;;  %v7876_v30 = vpack.i.bf16 %v3309_v54, %v3308_v39  ;;  %v10858_v48 = vunpack.c.l.bf16 %v7741_v38 }
  0xca   : > { %v7849_v23 = vpack.i.bf16 %v10852_v53, %v10851_v35  ;;  %v7865_v62 = vpack.i.bf16 %v10855_v18, %v10854_v5  ;;  %v10859_v36 = vunpack.c.h.bf16 %v7741_v38  ;;  %v7885_v37 = vmul.f32 %v6442_v50, %v7676_v10  ;;  %v3288_v35 = vld [vmem:[#allocation2 + $0xcc] sm:$0xff]  }
  0xcb   : > { %6755 = vperm.xlu1 %6448, %v7781_v21   ;;  %6760 = vperm.xlu0 %6437, %v7680_v27   ;;  %v10853_v21 = vunpack.c.h.bf16 %v7718_v8  ;;  %v10856_v27 = vunpack.c.l.bf16 %v7702_v55  ;;  %v10857_v8 = vunpack.c.h.bf16 %v7702_v55  ;;  %v7887_v41 = vpop.permute.xlu1 %6475  ;;  %v3312_v24 = vunpack.c.l.bf16 %v3280_v7 }
  0xcc   : > { %v7882_v32 = vpack.i.bf16 %v10859_v36, %v10858_v48  ;;  %v3313_v2 = vunpack.c.h.bf16 %v3280_v7  ;;  %v2086_v45 = vunpack.c.l.bf16 %v5999_v44  ;;  %v3316_v55 = vunpack.c.l.bf16 %v3284_v61 }
  0xcd   : > { %v7857_v4 = vpack.i.bf16 %v2410_v25, %v10853_v21  ;;  %v7874_v25 = vpack.i.bf16 %v10857_v8, %v10856_v27  ;;  %v3317_v54 = vunpack.c.h.bf16 %v3284_v61  ;;  %v6300_v39 = vunpack.c.l.bf16 %v6370_v63  ;;  %v7897_v18 = vpop.permute.xlu0 %6480 }
  0xce   : > { %v6301_v53 = vunpack.c.h.bf16 %v6370_v63  ;;  %v6453_v21 = vunpack.i.h.bf16 %v7771_v56  ;;  %v6452_v38 = vunpack.i.l.bf16 %v7771_v56  ;;  %v6447_v5 = vunpack.i.h.bf16 %v7776_v33 }
  0xcf   : > { %6765 = vperm.xlu1 %6448, %v7684_v15   ;;  %v6446_v50 = vunpack.i.l.bf16 %v7776_v33  ;;  %6770 = vperm.xlu0 %6437, %v7688_v31   ;;  %v6458_v7 = vunpack.i.h.bf16 %v7799_v46  ;;  %v6457_v44 = vunpack.i.l.bf16 %v7799_v46  ;;  %v3320_v15 = vunpack.c.l.bf16 %v3288_v35 }
  0xd0   : > { %v3321_v61 = vunpack.c.h.bf16 %v3288_v35  ;;  %v7900_v63 = vmul.f32 %v6441_v49, %v7676_v10  ;;  %v6463_v27 = vunpack.i.h.bf16 %v7819_v34  ;;  %v7903_v56 = vpack.i.bf16 %v3313_v2, %v3312_v24  ;;  %v3555_v35 = vld [vmem:[#allocation2 + $0x20] sm:$0x1]  ;;  %v3556_v24 = vld [vmem:[#allocation2 + $0x24] sm:$0xff]  }
  0xd1   : > { %v10860_v8 = vunpack.c.l.bf16 %v7754_v6  ;;  %v10861_v33 = vunpack.c.h.bf16 %v7754_v6  ;;  %v6462_v48 = vunpack.i.l.bf16 %v7819_v34  ;;  %v6468_v46 = vunpack.i.h.bf16 %v7823_v47 }
  0xd2   : > { %v7915_v36 = vrot.slane %v2086_v45, %v7661_v3  ;;  %v7917_v49 = vpack.i.bf16 %v3317_v54, %v3316_v55  ;;  %v7920_v2 = vmul.f32 %v6453_v21, %v7676_v10  ;;  %v7923_v6 = vmul.f32 %v6452_v38, %v7676_v10  ;;  %v3558_v45 = vld [vmem:[#allocation2 + $0x2c] sm:$0x1] }
  0xd3   : > { %v7909_v31 = vpack.i.bf16 %v10861_v33, %v10860_v8  ;;  %6775 = vperm.xlu1 %6448, %v7692_v58   ;;  %v7926_v8 = vmul.f32 %v6447_v5, %v7676_v10  ;;  %6780 = vperm.xlu0 %6437, %v7708_v16   ;;  %v6486_v34 = vpop.permute.xlu1 %6485  ;;  %v7929_v58 = vpack.i.bf16 %v6301_v53, %v6300_v39  ;;  %v3561_v33 = vld [vmem:[#allocation2 + $0x38] sm:$0x1]  ;;  %v3562_v5 = vld [vmem:[#allocation2 + $0x3c] sm:$0xff]   ;;  %v6467_v16 = vunpack.i.l.bf16 %v7823_v47 }
  0xd4   : > { %10862 = vst [vmem:[#allocation21_spill] sm:$0xff] %v7915_v36  ;;  %10863 = vst [vmem:[#allocation22_spill] sm:$0xff] %v7920_v2  ;;  %v7932_v55 = vmul.f32 %v6446_v50, %v7676_v10  ;;  %v7935_v54 = vmul.f32 %v6458_v7, %v7676_v10  ;;  %v7938_v21 = vmul.f32 %v6457_v44, %v7676_v10  ;;  %v3603_v39 = vunpack.c.l.bf16 %v3555_v35 }
  0xd5   : > { %10864 = vst [vmem:[#allocation23_spill] sm:$0xff] %v7923_v6  ;;  %10865 = vst [vmem:[#allocation24_spill] sm:$0xff] %v7926_v8  ;;  %v7940_v38 = vpack.i.bf16 %v3321_v61, %v3320_v15  ;;  %v7943_v2 = vmul.f32 %v6463_v27, %v7676_v10  ;;  %v3604_v53 = vunpack.c.l.bf16 %v3556_v24  ;;  %v7947_v50 = vmul.f32 %v6462_v48, %v7676_v10  ;;  %v6491_v44 = vpop.permute.xlu0 %6490 }
  0xd6   : > { %10866 = vst [vmem:[#allocation25_spill] sm:$0xff] %v7929_v58  ;;  %10867 = vst [vmem:[#allocation26_spill] sm:$0xff] %v7932_v55  ;;  %v7950_v7 = vmul.f32 %v6468_v46, %v7676_v10  ;;  %v3605_v15 = vunpack.c.h.bf16 %v3556_v24  ;;  %v3606_v61 = vunpack.c.l.bf16 %v3558_v45  ;;  %v6473_v27 = vunpack.i.h.bf16 %v7837_v20 }
  0xd7   : > { %10868 = vst [vmem:[#allocation27_spill] sm:$0xff] %v7935_v54  ;;  %10869 = vst [vmem:[#allocation28_spill] sm:$0xff] %v7938_v21  ;;  %6785 = vperm.xlu1 %6448, %v7712_v22   ;;  %v3564_v21 = vld [vmem:[#allocation2 + $0x44] sm:$0x1]  ;;  %v6372_v54 = vld [vmem:[#allocation2 + $0x48] sm:$0xff]   ;;  %6790 = vperm.xlu0 %6437, %v7720_v9   ;;  %v3609_v47 = vunpack.c.l.bf16 %v3561_v33  ;;  %v3610_v35 = vunpack.c.l.bf16 %v3562_v5  ;;  %v6478_v48 = vunpack.i.h.bf16 %v7887_v41  ;;  %v6477_v46 = vunpack.i.l.bf16 %v7887_v41 }
  0xd8   : > { %10870 = vst [vmem:[#allocation29_spill] sm:$0xff] %v7943_v2  ;;  %10871 = vst [vmem:[#allocation30_spill] sm:$0xff] %v7947_v50  ;;  %v6472_v2 = vunpack.i.l.bf16 %v7837_v20  ;;  %v3611_v22 = vunpack.c.h.bf16 %v3562_v5  ;;  %v6482_v24 = vunpack.i.l.bf16 %v7897_v18  ;;  %v3612_v50 = vunpack.c.l.bf16 %v3564_v21  ;;  %v3567_v21 = vld [vmem:[#allocation2 + $0x50] sm:$0x1] }
  0xd9   : > { %10872 = vst [vmem:[#allocation31_spill] sm:$0xff] %v7950_v7  ;;  %v6483_v7 = vunpack.i.h.bf16 %v7897_v18  ;;  %v7960_v45 = vpop.permute.xlu1 %6495  ;;  %v6312_v6 = vunpack.c.l.bf16 %v6372_v54  ;;  %v6313_v55 = vunpack.c.h.bf16 %v6372_v54  ;;  %v7963_v20 = vmul.f32 %v6467_v16, %v7676_v10  ;;  %v3568_v54 = vld [vmem:[#allocation2 + $0x54] sm:$0xff]  }
  0xda   : > { %v6488_v9 = vunpack.i.h.bf16 %v6486_v34  ;;  %v6487_v33 = vunpack.i.l.bf16 %v6486_v34  ;;  %v7966_v8 = vpack.i.bf16 %v3604_v53, %v3603_v39  ;;  %v7969_v41 = vmul.f32 %v6473_v27, %v7676_v10  ;;  %v3570_v27 = vld [vmem:[#allocation2 + $0x5c] sm:$0x1] }
  0xdb   : > { %10873 = vst [vmem:[#allocation32_spill] sm:$0xff] %v7963_v20  ;;  %6795 = vperm.xlu1 %6448, %v7724_v11   ;;  %v6493_v5 = vunpack.i.h.bf16 %v6491_v44  ;;  %v6492_v36 = vunpack.i.l.bf16 %v6491_v44  ;;  %6800 = vperm.xlu0 %6437, %v7729_v40   ;;  %v7972_v18 = vpack.i.bf16 %v3606_v61, %v3605_v15  ;;  %v7975_v16 = vmul.f32 %v6472_v2, %v7676_v10  ;;  %v6373_v61 = vld [vmem:[#allocation2 + $0x60] sm:$0xff]  }
  0xdc   : > { %10874 = vst [vmem:[#allocation33_spill] sm:$0xff] %v7969_v41  ;;  %v7978_v34 = vmul.f32 %v6478_v48, %v7676_v10  ;;  %v7981_v11 = vmul.f32 %v6477_v46, %v7676_v10  ;;  %v6501_v39 = vpop.permute.xlu0 %6500  ;;  %v7983_v53 = vpack.i.bf16 %v3610_v35, %v3609_v47  ;;  %v7986_v44 = vmul.f32 %v6483_v7, %v7676_v10  ;;  %v3573_v7 = vld [vmem:[#allocation2 + $0x68] sm:$0x1] }
  0xdd   : > { %10875 = vst [vmem:[#allocation34_spill] sm:$0xff] %v7975_v16  ;;  %v7989_v40 = vmul.f32 %v6482_v24, %v7676_v10  ;;  %v7991_v15 = vpack.i.bf16 %v3612_v50, %v3611_v22  ;;  %v7993_v2 = vpack.i.bf16 %v6313_v55, %v6312_v6  ;;  %v7996_v48 = vmul.f32 %v6488_v9, %v7676_v10 }
  0xde   : > { %10876 = vst [vmem:[#allocation35_spill] sm:$0xff] %v7978_v34  ;;  %10877 = vst [vmem:[#allocation36_spill] sm:$0xff] %v7981_v11  ;;  %v7999_v46 = vmul.f32 %v6487_v33, %v7676_v10  ;;  %v3615_v47 = vunpack.c.l.bf16 %v3567_v21  ;;  %v3616_v35 = vunpack.c.l.bf16 %v3568_v54  ;;  %v8003_v24 = vmul.f32 %v6493_v5, %v7676_v10 }
  0xdf   : > { %10878 = vst [vmem:[#allocation37_spill] sm:$0xff] %v7986_v44  ;;  %10879 = vst [vmem:[#allocation38_spill] sm:$0xff] %v7989_v40  ;;  %6805 = vperm.xlu1 %6448, %v7731_v12   ;;  %v3574_v44 = vld [vmem:[#allocation2 + $0x6c] sm:$0xff]   ;;  %v8006_v50 = vmul.f32 %v6492_v36, %v7676_v10  ;;  %6810 = vperm.xlu0 %6437, %v7735_v57   ;;  %v6506_v6 = vpop.permute.xlu1 %6505  ;;  %v3617_v55 = vunpack.c.h.bf16 %v3568_v54  ;;  %v3618_v22 = vunpack.c.l.bf16 %v3570_v27  ;;  %v6498_v9 = vunpack.i.h.bf16 %v7960_v45 }
  0xe0   : > { %10880 = vst [vmem:[#allocation39_spill] sm:$0xff] %v7993_v2  ;;  %10881 = vst [vmem:[#allocation40_spill] sm:$0xff] %v7996_v48  ;;  %v6497_v33 = vunpack.i.l.bf16 %v7960_v45  ;;  %v6316_v12 = vunpack.c.l.bf16 %v6373_v61  ;;  %v6317_v21 = vunpack.c.h.bf16 %v6373_v61  ;;  %v6374_v48 = vld [vmem:[#allocation2 + $0x78] sm:$0xff]   ;;  %v6503_v40 = vunpack.i.h.bf16 %v6501_v39 }
  0xe1   : > { %10882 = vst [vmem:[#allocation41_spill] sm:$0xff] %v7999_v46  ;;  %10883 = vst [vmem:[#allocation42_spill] sm:$0xff] %v8003_v24  ;;  %v3576_v46 = vld [vmem:[#allocation2 + $0x74] sm:$0x1]  ;;  %v6502_v34 = vunpack.i.l.bf16 %v6501_v39  ;;  %v3621_v5 = vunpack.c.l.bf16 %v3573_v7  ;;  %v3622_v24 = vunpack.c.l.bf16 %v3574_v44  ;;  %v6508_v11 = vunpack.i.h.bf16 %v6506_v6  ;;  %v6000_v39 = vld [vmem:[%s10700_s1 + $0x4] sm:$0x1] }
  0xe2   : > { %10884 = vst [vmem:[#allocation43_spill] sm:$0xff] %v8006_v50  ;;  %v6507_v36 = vunpack.i.l.bf16 %v6506_v6  ;;  %v6511_v50 = vpop.permute.xlu0 %6510  ;;  %v3623_v57 = vunpack.c.h.bf16 %v3574_v44  ;;  %v3624_v54 = vunpack.c.l.bf16 %v3576_v46  ;;  %v8013_v27 = vpack.i.bf16 %v3616_v35, %v3615_v47 }
  0xe3   : > { %6815 = vperm.xlu1 %6448, %v7739_v13   ;;  %6820 = vperm.xlu0 %6437, %v7745_v17   ;;  %v8015_v45 = vpack.i.bf16 %v3618_v22, %v3617_v55  ;;  %v6320_v61 = vunpack.c.l.bf16 %v6374_v48  ;;  %v6321_v16 = vunpack.c.h.bf16 %v6374_v48  ;;  %v8021_v7 = vmul.f32 %v6498_v9, %v7676_v10  ;;  %v6001_v17 = vld [vmem:[%s10700_s1 + $0x5] sm:$0x1] }
  0xe4   : > { %10885 = vst [vmem:[#allocation44_spill] sm:$0xff] %v8013_v27  ;;  %v8024_v6 = vmul.f32 %v6497_v33, %v7676_v10  ;;  %v6513_v13 = vunpack.i.h.bf16 %v6511_v50  ;;  %v6512_v44 = vunpack.i.l.bf16 %v6511_v50  ;;  %v8030_v46 = vmul.f32 %v6503_v40, %v7676_v10 }
  0xe5   : > { %10886 = vst [vmem:[#allocation45_spill] sm:$0xff] %v8015_v45  ;;  %10887 = vst [vmem:[#allocation46_spill] sm:$0xff] %v8021_v7  ;;  %v8033_v48 = vmul.f32 %v6502_v34, %v7676_v10  ;;  %v8035_v35 = vpack.i.bf16 %v6317_v21, %v6316_v12  ;;  %v8037_v55 = vpack.i.bf16 %v3622_v24, %v3621_v5  ;;  %v2413_v40 = vunpack.c.l.bf16 %v6000_v39  ;;  %v3579_v21 = vld [vmem:[#allocation2 + $0x80] sm:$0x1]  ;;  %v3580_v5 = vld [vmem:[#allocation2 + $0x84] sm:$0xff]  }
  0xe6   : > { %10888 = vst [vmem:[#allocation47_spill] sm:$0xff] %v8024_v6  ;;  %10889 = vst [vmem:[#allocation48_spill] sm:$0xff] %v8030_v46  ;;  %v6516_v47 = vpop.permute.xlu1 %6515  ;;  %v8040_v22 = vmul.f32 %v6508_v11, %v7676_v10  ;;  %v8043_v50 = vmul.f32 %v6507_v36, %v7676_v10  ;;  %v6521_v9 = vpop.permute.xlu0 %6520  ;;  %v8046_v33 = vpack.i.bf16 %v3624_v54, %v3623_v57  ;;  %v2932_v24 = vunpack.c.l.bf16 %v6001_v17  ;;  %v3582_v57 = vld [vmem:[#allocation2 + $0x8c] sm:$0x1] }
  0xe7   : > { %10890 = vst [vmem:[#allocation49_spill] sm:$0xff] %v8033_v48  ;;  %10891 = vst [vmem:[#allocation50_spill] sm:$0xff] %v8035_v35  ;;  %6825 = vperm.xlu1 %6448, %v7760_v26   ;;  %v6523_v46 = vunpack.i.h.bf16 %v6521_v9  ;;  %v6522_v34 = vunpack.i.l.bf16 %v6521_v9  ;;  %v10896_v48 = vld [vmem:[#allocation10_spill] sm:$0xff]  ;;  %v8049_v12 = vpack.i.bf16 %v6321_v16, %v6320_v61  ;;  %v8052_v11 = vmul.f32 %v6513_v13, %v7676_v10  ;;  %v10900_v54 = vld [vmem:[#allocation8_spill] sm:$0xff] }
  0xe8   : > { %10892 = vst [vmem:[#allocation51_spill] sm:$0xff] %v8037_v55  ;;  %10893 = vst [vmem:[#allocation52_spill] sm:$0xff] %v8040_v22  ;;  %6830 = vperm.xlu0 %6437, %v10896_v48   ;;  %v8055_v36 = vmul.f32 %v6512_v44, %v7676_v10  ;;  %v6518_v22 = vunpack.i.h.bf16 %v6516_v47  ;;  %v6517_v26 = vunpack.i.l.bf16 %v6516_v47  ;;  %v3627_v48 = vunpack.c.l.bf16 %v3579_v21  ;;  %v10901_v61 = vld [vmem:[#allocation9_spill] sm:$0xff]  ;;  %v10915_v55 = vld [vmem:[#allocation16_spill] sm:$0xff] }
  0xe9   : > { %10894 = vst [vmem:[#allocation53_spill] sm:$0xff] %v8043_v50  ;;  %10895 = vst [vmem:[#allocation54_spill] sm:$0xff] %v8046_v33  ;;  %v1420_v39 = vmul.f32 %v6523_v46, %v10900_v54  ;;  %v1419_v9 = vmul.f32 %v6522_v34, %v10900_v54  ;;  %v3628_v16 = vunpack.c.l.bf16 %v3580_v5  ;;  %v8060_v17 = vmul.f32 %v6523_v46, %v10901_v61 }
  0xea   : > { %10897 = vst [vmem:[#allocation10_spill] sm:$0xff] %v8049_v12  ;;  %10898 = vst [vmem:[#allocation55_spill] sm:$0xff] %v8052_v11  ;;  %v6526_v50 = vpop.permute.xlu1 %6525  ;;  %v6531_v13 = vpop.permute.xlu0 %6530  ;;  %v10902_v11 = vld [vmem:[#allocation11_spill] sm:$0xff]  ;;  %v3629_v44 = vunpack.c.h.bf16 %v3580_v5  ;;  %v3630_v12 = vunpack.c.l.bf16 %v3582_v57  ;;  %v8067_v46 = vrot.slane %v2413_v40, %v7661_v3 }
  0xeb   : > { %10899 = vst [vmem:[#allocation56_spill] sm:$0xff] %v8055_v36  ;;  %v6528_v6 = vunpack.i.h.bf16 %v6526_v50  ;;  %v6527_v7 = vunpack.i.l.bf16 %v6526_v50  ;;  %6835 = vperm.xlu1 %6448, %v10902_v11   ;;  %v1517_v36 = vrot.slane %v1420_v39, 1  ;;  %v1516_v41 = vrot.slane %v1419_v9, 1 }
  0xec   : > { %v6533_v47 = vunpack.i.h.bf16 %v6531_v13  ;;  %6840 = vperm.xlu0 %6437, %v7787_v52   ;;  %v6532_v33 = vunpack.i.l.bf16 %v6531_v13  ;;  %10903 = vst [vmem:[#allocation8_spill] sm:$0xff] %v8067_v46  ;;  %v8070_v50 = vmul.f32 %v6518_v22, %v7676_v10  ;;  %v8073_v11 = vmul.f32 %v6517_v26, %v7676_v10  ;;  %v10908_v22 = vld [vmem:[#allocation12_spill] sm:$0xff] }
  0xed   : > { %v1422_v34 = vmul.f32 %v6528_v6, %v10900_v54  ;;  %v1421_v21 = vmul.f32 %v6527_v7, %v10900_v54  ;;  %v8076_v5 = vmul.f32 %v6527_v7, %v10901_v61  ;;  %v8079_v52 = vrot.slane %v2932_v24, %v7661_v3  ;;  %v10910_v24 = vld [vmem:[#allocation13_spill] sm:$0xff] }
  0xee   : > { %10904 = vst [vmem:[#allocation9_spill] sm:$0xff] %v8070_v50  ;;  %10905 = vst [vmem:[#allocation11_spill] sm:$0xff] %v8073_v11  ;;  %v6536_v39 = vpop.permute.xlu1 %6535  ;;  %v1424_v6 = vmul.f32 %v6533_v47, %v10900_v54  ;;  %v8083_v57 = vmul.f32 %v6533_v47, %v10901_v61  ;;  %v1423_v40 = vmul.f32 %v6532_v33, %v10900_v54  ;;  %v6541_v9 = vpop.permute.xlu0 %6540 }
  0xef   : > { %10906 = vst [vmem:[#allocation57_spill] sm:$0xff] %v8079_v52  ;;  %6845 = vperm.xlu1 %6448, %v10908_v22   ;;  %v8087_v13 = vpack.i.bf16 %v3628_v16, %v3627_v48  ;;  %v8091_v7 = vsel %vm1515_vm8, %v1516_v41, %v1517_v36  ;;  %v6538_v26 = vunpack.i.h.bf16 %v6536_v39  ;;  %v8094_v3 = vpack.i.bf16 %v3630_v12, %v3629_v44 }
  0xf0   : > { %10907 = vst [vmem:[#allocation58_spill] sm:$0xff] %v8083_v57  ;;  %6850 = vperm.xlu0 %6437, %v10910_v24   ;;  %v1521_v52 = vrot.slane %v1422_v34, 1  ;;  %v1519_v47 = vrot.slane %v1421_v21, 1  ;;  %v6537_v46 = vunpack.i.l.bf16 %v6536_v39  ;;  %v6543_v50 = vunpack.i.h.bf16 %v6541_v9  ;;  %v10912_v34 = vld [vmem:[#allocation14_spill] sm:$0xff] }
  0xf1   : > { %10909 = vst [vmem:[#allocation12_spill] sm:$0xff] %v8087_v13  ;;  %10911 = vst [vmem:[#allocation13_spill] sm:$0xff] %v8094_v3  ;;  %v8098_v22 = vmul.f32 %v6532_v33, %v10901_v61  ;;  %v1426_v48 = vmul.f32 %v6538_v26, %v10900_v54  ;;  %v6542_v16 = vunpack.i.l.bf16 %v6541_v9  ;;  %v1524_v41 = vrot.slane %v1424_v6, 1 }
  0xf2   : > { %v6546_v10 = vpop.permute.xlu1 %6545  ;;  %v1522_v20 = vrot.slane %v1423_v40, 1  ;;  %v1425_v12 = vmul.f32 %v6537_v46, %v10900_v54  ;;  %v6551_v44 = vpop.permute.xlu0 %6550  ;;  %v8105_v39 = vmul.f32 %v6538_v26, %v10901_v61  ;;  %v1428_v33 = vmul.f32 %v6543_v50, %v10900_v54 }
  0xf3   : > { %6855 = vperm.xlu1 %6448, %v10912_v34   ;;  %v1527_v21 = vrot.slane %v1426_v48, 1  ;;  %v1427_v24 = vmul.f32 %v6542_v16, %v10900_v54  ;;  %v8111_v6 = vmul.f32 %v6542_v16, %v10901_v61  ;;  %v6548_v40 = vunpack.i.h.bf16 %v6546_v10 }
  0xf4   : > { %6860 = vperm.xlu0 %6437, %v7803_v14   ;;  %v1526_v9 = vrot.slane %v1425_v12, 1  ;;  %v6547_v13 = vunpack.i.l.bf16 %v6546_v10  ;;  %v8114_v46 = vsel %vm1515_vm8, %v1517_v36, %v1519_v47  ;;  %v6553_v34 = vunpack.i.h.bf16 %v6551_v44  ;;  %v10914_v10 = vld [vmem:[#allocation15_spill] sm:$0xff] }
  0xf5   : > { %10913 = vst [vmem:[#allocation14_spill] sm:$0xff] %v8111_v6  ;;  %v6552_v26 = vunpack.i.l.bf16 %v6551_v44  ;;  %v8118_v50 = vsel %vm1515_vm8, %v1521_v52, %v1522_v20  ;;  %v8121_v3 = vsel %vm1515_vm8, %v1522_v20, %v1524_v41  ;;  %v1430_v14 = vmul.f32 %v6548_v40, %v10900_v54  ;;  %v10920_v6 = vld [vmem:[#allocation17_spill] sm:$0xff] }
  0xf6   : > { %v6556_v11 = vpop.permute.xlu1 %6555  ;;  %v1429_v16 = vmul.f32 %v6547_v13, %v10900_v54  ;;  %v6561_v12 = vpop.permute.xlu0 %6560  ;;  %v1531_v47 = vrot.slane %v1428_v33, 1  ;;  %v1529_v48 = vrot.slane %v1427_v24, 1  ;;  %v1432_v44 = vmul.f32 %v6553_v34, %v10900_v54 }
  0xf7   : > { %6865 = vperm.xlu1 %6448, %v10914_v10   ;;  %v8130_v52 = vsel %vm1515_vm8, %v1526_v9, %v1527_v21  ;;  %v8134_v41 = vmul.f32 %v6548_v40, %v10901_v61  ;;  %v1431_v35 = vmul.f32 %v6552_v26, %v10900_v54  ;;  %v1534_v45 = vrot.slane %v1430_v14, 1 }
  0xf8   : > { %6870 = vperm.xlu0 %6437, %v10915_v55   ;;  %10916 = vst [vmem:[#allocation15_spill] sm:$0xff] %v8130_v52  ;;  %v8138_v10 = vmul.f32 %v6547_v13, %v10901_v61  ;;  %v8141_v33 = vmul.f32 %v6553_v34, %v10901_v61  ;;  %v6558_v24 = vunpack.i.h.bf16 %v6556_v11  ;;  %v1532_v55 = vrot.slane %v1429_v16, 1 }
  0xf9   : > { %10917 = vst [vmem:[#allocation16_spill] sm:$0xff] %v8134_v41  ;;  %v1537_v27 = vrot.slane %v1432_v44, 1  ;;  %v1536_v9 = vrot.slane %v1431_v35, 1  ;;  %v6557_v52 = vunpack.i.l.bf16 %v6556_v11  ;;  %v6563_v20 = vunpack.i.h.bf16 %v6561_v12 }
  0xfa   : > { %10918 = vst [vmem:[#allocation59_spill] sm:$0xff] %v8138_v10  ;;  %10919 = vst [vmem:[#allocation60_spill] sm:$0xff] %v8141_v33  ;;  %v6566_v36 = vpop.permute.xlu1 %6565  ;;  %v6571_v57 = vpop.permute.xlu0 %6570  ;;  %v1434_v40 = vmul.f32 %v6558_v24, %v10900_v54  ;;  %v6562_v26 = vunpack.i.l.bf16 %v6561_v12  ;;  %v8147_v13 = vsel %vm1515_vm8, %v1527_v21, %v1529_v48  ;;  %v8166_v11 = vsel %vm1515_vm8, %v1532_v55, %v1534_v45 }
  0xfb   : > { %6875 = vperm.xlu1 %6448, %v7857_v4   ;;  %v6568_v14 = vunpack.i.h.bf16 %v6566_v36  ;;  %10921 = vst [vmem:[#allocation17_spill] sm:$0xff] %v8147_v13  ;;  %v1433_v34 = vmul.f32 %v6557_v52, %v10900_v54  ;;  %v8151_v16 = vmul.f32 %v6557_v52, %v10901_v61  ;;  %v6567_v35 = vunpack.i.l.bf16 %v6566_v36  ;;  %v10924_v36 = vld [vmem:[#allocation18_spill] sm:$0xff] }
  0xfc   : > { %6880 = vperm.xlu0 %6437, %v10920_v6   ;;  %v1436_v4 = vmul.f32 %v6563_v20, %v10900_v54  ;;  %v8156_v44 = vmul.f32 %v6563_v20, %v10901_v61  ;;  %v1435_v12 = vmul.f32 %v6562_v26, %v10900_v54  ;;  %v8160_v6 = vsel %vm1515_vm8, %v1531_v47, %v1532_v55  ;;  %v10926_v47 = vld [vmem:[#allocation19_spill] sm:$0xff] }
  0xfd   : > { %10922 = vst [vmem:[#allocation61_spill] sm:$0xff] %v8151_v16  ;;  %v1539_v52 = vrot.slane %v1433_v34, 1  ;;  %v8169_v20 = vsel %vm1515_vm8, %v1536_v9, %v1537_v27  ;;  %v1541_v41 = vrot.slane %v1434_v40, 1  ;;  %v8172_v2 = vmul.f32 %v6568_v14, %v10900_v54 }
  0xfe   : > { %10923 = vst [vmem:[#allocation62_spill] sm:$0xff] %v8156_v44  ;;  %v6576_v24 = vpop.permute.xlu1 %6575  ;;  %v6581_v13 = vpop.permute.xlu0 %6580  ;;  %10925 = vst [vmem:[#allocation18_spill] sm:$0xff] %v8169_v20  ;;  %v1544_v10 = vrot.slane %v1436_v4, 1  ;;  %v8177_v34 = vmul.f32 %v6562_v26, %v10901_v61  ;;  %v1542_v55 = vrot.slane %v1435_v12, 1  ;;  %v8182_v9 = vmul.f32 %v6568_v14, %v10901_v61  ;;  %v10930_v26 = vld [vmem:[#allocation20_spill] sm:$0xff] }
  0xff   : > { %6885 = vperm.xlu1 %6448, %v10924_v36   ;;  %v1437_v36 = vmul.f32 %v6567_v35, %v10900_v54  ;;  %v6573_v40 = vunpack.i.h.bf16 %v6571_v57  ;;  %v8185_v33 = vsel %vm1515_vm8, %v1537_v27, %v1539_v52  ;;  %v6578_v20 = vunpack.i.h.bf16 %v6576_v24 }
 0x100   : > { %6890 = vperm.xlu0 %6437, %v10926_v47   ;;  %10927 = vst [vmem:[#allocation19_spill] sm:$0xff] %v8177_v34  ;;  %10928 = vst [vmem:[#allocation63_spill] sm:$0xff] %v8182_v9  ;;  %v6572_v47 = vunpack.i.l.bf16 %v6571_v57  ;;  %v6577_v21 = vunpack.i.l.bf16 %v6576_v24  ;;  %v1547_v35 = vrot.slane %v8172_v2, 1  ;;  %v6583_v45 = vunpack.i.h.bf16 %v6581_v13 }
 0x101   : > { %10929 = vst [vmem:[#allocation64_spill] sm:$0xff] %v8185_v33  ;;  %v1546_v16 = vrot.slane %v1437_v36, 1  ;;  %v1440_v12 = vmul.f32 %v6573_v40, %v10900_v54  ;;  %v1442_v57 = vmul.f32 %v6578_v20, %v10900_v54  ;;  %v6582_v24 = vunpack.i.l.bf16 %v6581_v13 }
 0x102   : > { %v6586_v48 = vpop.permute.xlu1 %6585  ;;  %v8187_v4 = vpop.permute.xlu0 %6590  ;;  %v1439_v14 = vmul.f32 %v6572_v47, %v10900_v54  ;;  %v8195_v27 = vmul.f32 %v6572_v47, %v10901_v61  ;;  %v8199_v52 = vsel %vm1515_vm8, %v1541_v41, %v1542_v55  ;;  %v8203_v2 = vmul.f32 %v6578_v20, %v10901_v61 }
 0x103   : > { %6895 = vperm.xlu1 %6448, %v10930_v26   ;;  %10932 = vst [vmem:[#allocation65_spill] sm:$0xff] %v8199_v52  ;;  %v1441_v36 = vmul.f32 %v6577_v21, %v10900_v54  ;;  %v1444_v44 = vmul.f32 %v6583_v45, %v10900_v54  ;;  %v6588_v33 = vunpack.i.h.bf16 %v6586_v48  ;;  %v8215_v41 = vsel %vm1515_vm8, %v1546_v16, %v1547_v35 }
 0x104   : > { %6900 = vperm.xlu0 %6437, %v7825_v28   ;;  %10931 = vst [vmem:[#allocation20_spill] sm:$0xff] %v8195_v27  ;;  %10933 = vst [vmem:[#allocation66_spill] sm:$0xff] %v8203_v2  ;;  %v8207_v28 = vsel %vm1515_vm8, %v1542_v55, %v1544_v10  ;;  %v1551_v20 = vrot.slane %v1440_v12, 1  ;;  %v1549_v26 = vrot.slane %v1439_v14, 1  ;;  %v8218_v34 = vmul.f32 %v6577_v21, %v10901_v61 }
 0x105   : > { %10934 = vst [vmem:[#allocation67_spill] sm:$0xff] %v8207_v28  ;;  %v1554_v55 = vrot.slane %v1442_v57, 1  ;;  %v1443_v9 = vmul.f32 %v6582_v24, %v10900_v54  ;;  %v1552_v52 = vrot.slane %v1441_v36, 1  ;;  %v1557_v28 = vrot.slane %v1444_v44, 1 }
 0x106   : > { %v6596_v40 = vpop.permute.xlu1 %6595  ;;  %v8211_v13 = vpop.permute.xlu0 %6600  ;;  %10935 = vst [vmem:[#allocation68_spill] sm:$0xff] %v8218_v34  ;;  %v6587_v16 = vunpack.i.l.bf16 %v6586_v48  ;;  %v1446_v21 = vmul.f32 %v6588_v33, %v10900_v54  ;;  %v6592_v10 = vunpack.i.l.bf16 %v8187_v4 }
 0x107   : > { %6905 = vperm.xlu1 %6448, %v7827_v43   ;;  %v8225_v43 = vmul.f32 %v6583_v45, %v10901_v61  ;;  %v1556_v14 = vrot.slane %v1443_v9, 1  ;;  %v6598_v45 = vunpack.i.h.bf16 %v6596_v40  ;;  %v6597_v48 = vunpack.i.l.bf16 %v6596_v40 }
 0x108   : > { %6910 = vperm.xlu0 %6437, %v7830_v59   ;;  %v6593_v59 = vunpack.i.h.bf16 %v8187_v4  ;;  %v1445_v24 = vmul.f32 %v6587_v16, %v10900_v54  ;;  %v8237_v44 = vmul.f32 %v6587_v16, %v10901_v61  ;;  %v1447_v4 = vmul.f32 %v6592_v10, %v10900_v54 }
 0x109   : > { %10936 = vst [vmem:[#allocation69_spill] sm:$0xff] %v8225_v43  ;;  %v8250_v47 = vsel %vm1515_vm8, %v1551_v20, %v1552_v52  ;;  %v8253_v16 = vsel %vm1515_vm8, %v1552_v52, %v1554_v55  ;;  %v8259_v34 = vsel %vm1515_vm8, %v1556_v14, %v1557_v28  ;;  %v8262_v27 = vmul.f32 %v6598_v45, %v10900_v54 }
 0x10a   : > { %v8227_v12 = vpop.permute.xlu1 %6605  ;;  %v8232_v57 = vpop.permute.xlu0 %6610  ;;  %10937 = vst [vmem:[#allocation70_spill] sm:$0xff] %v8237_v44  ;;  %v1448_v33 = vmul.f32 %v6593_v59, %v10900_v54  ;;  %v8243_v36 = vmul.f32 %v6593_v59, %v10901_v61  ;;  %v1559_v40 = vrot.slane %v1445_v24, 1  ;;  %10939 = vst [vmem:[#allocation72_spill] sm:$0xff] %v8259_v34  ;;  %v1561_v59 = vrot.slane %v1446_v21, 1 }
 0x10b   : > { %6915 = vperm.xlu1 %6448, %v7832_v60   ;;  %v8247_v60 = vsel %vm1515_vm8, %v1547_v35, %v1549_v26  ;;  %v8269_v20 = vmul.f32 %v6592_v10, %v10901_v61  ;;  %v1449_v55 = vmul.f32 %v6597_v48, %v10900_v54  ;;  %v1562_v21 = vrot.slane %v1447_v4, 1 }
 0x10c   : > { %6920 = vperm.xlu0 %6437, %v7834_v19   ;;  %10938 = vst [vmem:[#allocation71_spill] sm:$0xff] %v8243_v36  ;;  %v1564_v52 = vrot.slane %v1448_v33, 1  ;;  %v8275_v24 = vmul.f32 %v6598_v45, %v10901_v61  ;;  %v6603_v9 = vunpack.i.h.bf16 %v8211_v13  ;;  %v6602_v33 = vunpack.i.l.bf16 %v8211_v13 }
 0x10d   : > { %10940 = vst [vmem:[#allocation73_spill] sm:$0xff] %v8269_v20  ;;  %v6608_v10 = vunpack.i.h.bf16 %v8227_v12  ;;  %v6607_v26 = vunpack.i.l.bf16 %v8227_v12  ;;  %v1567_v44 = vrot.slane %v8262_v27, 1  ;;  %v1566_v14 = vrot.slane %v1449_v55, 1 }
 0x10e   : > { %v8255_v2 = vpop.permute.xlu1 %6615  ;;  %v8264_v35 = vpop.permute.xlu0 %6620  ;;  %10941 = vst [vmem:[#allocation74_spill] sm:$0xff] %v8275_v24  ;;  %v1452_v4 = vmul.f32 %v6603_v9, %v10900_v54  ;;  %v6613_v45 = vunpack.i.h.bf16 %v8232_v57  ;;  %v8294_v13 = vmul.f32 %v6602_v33, %v10901_v61  ;;  %v8300_v27 = vsel %vm1515_vm8, %v1561_v59, %v1562_v21 }
 0x10f   : > { %6925 = vperm.xlu1 %6448, %v7839_v42   ;;  %v8279_v42 = vsel %vm1515_vm8, %v1557_v28, %v1559_v40  ;;  %v1451_v28 = vmul.f32 %v6602_v33, %v10900_v54  ;;  %v1454_v12 = vmul.f32 %v6608_v10, %v10900_v54  ;;  %v6612_v40 = vunpack.i.l.bf16 %v8232_v57  ;;  %10942 = vst [vmem:[#allocation75_spill] sm:$0xff] %v8300_v27 }
 0x110   : > { %6930 = vperm.xlu0 %6437, %v7841_v51   ;;  %v8304_v55 = vmul.f32 %v6608_v10, %v10901_v61  ;;  %v8308_v43 = vsel %vm1515_vm8, %v1562_v21, %v1564_v52  ;;  %v1456_v34 = vmul.f32 %v6613_v45, %v10900_v54  ;;  %v6618_v57 = vunpack.i.h.bf16 %v8255_v2 }
 0x111   : > { %10944 = vst [vmem:[#allocation77_spill] sm:$0xff] %v8308_v43  ;;  %v8316_v59 = vsel %vm1515_vm8, %v1566_v14, %v1567_v44  ;;  %v1571_v9 = vrot.slane %v1452_v4, 1  ;;  %v1569_v20 = vrot.slane %v1451_v28, 1  ;;  %v8319_v10 = vmul.f32 %v6607_v26, %v10901_v61 }
 0x112   : > { %v8284_v48 = vpop.permute.xlu1 %6625  ;;  %v8289_v36 = vpop.permute.xlu0 %6630  ;;  %10943 = vst [vmem:[#allocation76_spill] sm:$0xff] %v8304_v55  ;;  %10945 = vst [vmem:[#allocation78_spill] sm:$0xff] %v8316_v59  ;;  %v1574_v21 = vrot.slane %v1454_v12, 1  ;;  %v1455_v24 = vmul.f32 %v6612_v40, %v10900_v54  ;;  %v1577_v59 = vrot.slane %v1456_v34, 1  ;;  %v8329_v4 = vmul.f32 %v6613_v45, %v10901_v61 }
 0x113   : > { %6935 = vperm.xlu1 %6448, %v7843_v29   ;;  %v1453_v29 = vmul.f32 %v6607_v26, %v10900_v54  ;;  %10946 = vst [vmem:[#allocation79_spill] sm:$0xff] %v8319_v10  ;;  %v6617_v26 = vunpack.i.l.bf16 %v8255_v2  ;;  %v1458_v43 = vmul.f32 %v6618_v57, %v10900_v54  ;;  %v6622_v12 = vunpack.i.l.bf16 %v8264_v35 }
 0x114   : > { %6940 = vperm.xlu0 %6437, %v7849_v23   ;;  %10947 = vst [vmem:[#allocation80_spill] sm:$0xff] %v8329_v4  ;;  %v1576_v28 = vrot.slane %v1455_v24, 1  ;;  %v6628_v34 = vunpack.i.h.bf16 %v8284_v48  ;;  %v6627_v45 = vunpack.i.l.bf16 %v8284_v48  ;;  %v6633_v2 = vunpack.i.h.bf16 %v8289_v36 }
 0x115   : > { %v1572_v14 = vrot.slane %v1453_v29, 1  ;;  %v1457_v40 = vmul.f32 %v6617_v26, %v10900_v54  ;;  %v1459_v57 = vmul.f32 %v6622_v12, %v10900_v54  ;;  %v1581_v55 = vrot.slane %v1458_v43, 1 }
 0x116   : > { %v8313_v23 = vpop.permute.xlu1 %6635  ;;  %v8321_v27 = vpop.permute.xlu0 %6640  ;;  %v8367_v10 = vmul.f32 %v6628_v34, %v10900_v54 }
 0x117   : > { %6945 = vperm.xlu1 %6448, %v7859_v1   ;;  %v6623_v1 = vunpack.i.h.bf16 %v8264_v35  ;;  %v8357_v48 = vsel %vm1515_vm8, %v1571_v9, %v1572_v14  ;;  %v8360_v33 = vsel %vm1515_vm8, %v1572_v14, %v1574_v21  ;;  %v1461_v21 = vmul.f32 %v6627_v45, %v10900_v54 }
 0x118   : > { %6950 = vperm.xlu0 %6437, %v7865_v62   ;;  %v8339_v62 = vmul.f32 %v6617_v26, %v10901_v61  ;;  %v8354_v26 = vsel %vm1515_vm8, %v1567_v44, %v1569_v20  ;;  %v8372_v44 = vsel %vm1515_vm8, %v1576_v28, %v1577_v59  ;;  %v6638_v45 = vunpack.i.h.bf16 %v8313_v23 }
 0x119   : > { %v1460_v24 = vmul.f32 %v6623_v1, %v10900_v54  ;;  %v8349_v35 = vmul.f32 %v6623_v1, %v10901_v61  ;;  %v8364_v1 = vmul.f32 %v6622_v12, %v10901_v61  ;;  %10951 = vst [vmem:[#allocation84_spill] sm:$0xff] %v8372_v44  ;;  %v1582_v12 = vrot.slane %v1459_v57, 1 }
 0x11a   : > { %v8335_v52 = vpop.permute.xlu1 %6645  ;;  %10948 = vst [vmem:[#allocation81_spill] sm:$0xff] %v8339_v62  ;;  %v8343_v29 = vpop.permute.xlu0 %6650  ;;  %v6637_v20 = vunpack.i.l.bf16 %v8313_v23  ;;  %v1587_v57 = vrot.slane %v8367_v10, 1  ;;  %v1586_v43 = vrot.slane %v1461_v21, 1  ;;  %v8406_v23 = vmul.f32 %v6638_v45, %v10901_v61 }
 0x11b   : > { %6955 = vperm.xlu1 %6448, %v7867_v0   ;;  %10949 = vst [vmem:[#allocation82_spill] sm:$0xff] %v8349_v35  ;;  %v1579_v0 = vrot.slane %v1457_v40, 1  ;;  %10950 = vst [vmem:[#allocation83_spill] sm:$0xff] %v8364_v1  ;;  %v1584_v9 = vrot.slane %v1460_v24, 1  ;;  %v8381_v40 = vmul.f32 %v6628_v34, %v10901_v61  ;;  %v6632_v24 = vunpack.i.l.bf16 %v8289_v36 }
 0x11c   : > { %6960 = vperm.xlu0 %6437, %v7874_v25   ;;  %v1464_v34 = vmul.f32 %v6633_v2, %v10900_v54  ;;  %v1466_v36 = vmul.f32 %v6638_v45, %v10900_v54  ;;  %10954 = vst [vmem:[#allocation87_spill] sm:$0xff] %v8406_v23  ;;  %v1465_v10 = vmul.f32 %v6637_v20, %v10900_v54  ;;  %v6642_v2 = vunpack.i.l.bf16 %v8321_v27 }
 0x11d   : > { %v8386_v28 = vsel %vm1515_vm8, %v1577_v59, %v1579_v0  ;;  %v8398_v59 = vmul.f32 %v6632_v24, %v10901_v61  ;;  %v6643_v0 = vunpack.i.h.bf16 %v8321_v27  ;;  %v6648_v21 = vunpack.i.h.bf16 %v8335_v52 }
 0x11e   : > { %v8369_v25 = vpop.permute.xlu1 %6655  ;;  %v8376_v14 = vpop.permute.xlu0 %6660  ;;  %10952 = vst [vmem:[#allocation85_spill] sm:$0xff] %v8386_v28  ;;  %v8423_v45 = vsel %vm1515_vm8, %v1586_v43, %v1587_v57  ;;  %v1592_v44 = vrot.slane %v1465_v10, 1  ;;  %v8435_v43 = vmul.f32 %v6642_v2, %v10901_v61 }
 0x11f   : > { %6965 = vperm.xlu1 %6448, %v7876_v30   ;;  %10953 = vst [vmem:[#allocation86_spill] sm:$0xff] %v8398_v59  ;;  %v8416_v30 = vsel %vm1515_vm8, %v1582_v12, %v1584_v9  ;;  %v6647_v9 = vunpack.i.l.bf16 %v8335_v52  ;;  %v6657_v2 = vunpack.i.l.bf16 %v8369_v25 }
 0x120   : > { %6970 = vperm.xlu0 %6437, %v7882_v32   ;;  %v1463_v32 = vmul.f32 %v6632_v24, %v10900_v54  ;;  %v8413_v24 = vsel %vm1515_vm8, %v1581_v55, %v1582_v12  ;;  %v1591_v54 = vrot.slane %v1464_v34, 1  ;;  %v8427_v55 = vmul.f32 %v6643_v0, %v10901_v61 }
 0x121   : > { %v8438_v34 = vmul.f32 %v6648_v21, %v10901_v61  ;;  %v8444_v52 = vmul.f32 %v6647_v9, %v10901_v61  ;;  %v6652_v0 = vunpack.i.l.bf16 %v8343_v29  ;;  %v6663_v21 = vunpack.i.h.bf16 %v8376_v14 }
 0x122   : > { %v8394_v35 = vpop.permute.xlu1 %6665  ;;  %v8402_v62 = vpop.permute.xlu0 %6670  ;;  %v1589_v27 = vrot.slane %v1463_v32, 1  ;;  %v6653_v32 = vunpack.i.h.bf16 %v8343_v29  ;;  %v8460_v9 = vsel %vm1515_vm8, %v1591_v54, %v1592_v44  ;;  %v1881_v29 = vrot.slane %v8427_v55, 2 }
 0x123   : > { %6975 = vperm.xlu1 %6448, %v7903_v56   ;;  %v8420_v56 = vmul.f32 %v6637_v20, %v10901_v61  ;;  %v6662_v20 = vunpack.i.l.bf16 %v8376_v14  ;;  %10957 = vst [vmem:[#allocation90_spill] sm:$0xff] %v8460_v9  ;;  %v1876_v14 = vrot.slane %v8435_v43, 2  ;;  %v1886_v54 = vrot.slane %v8444_v52, 2 }
 0x124   : > { %6980 = vperm.xlu0 %6437, %v7909_v31   ;;  %v1594_v31 = vrot.slane %v1466_v36, 1  ;;  %v8449_v10 = vmul.f32 %v6653_v32, %v10901_v61  ;;  %v8457_v36 = vsel %vm1515_vm8, %v1587_v57, %v1589_v27  ;;  %v6668_v32 = vunpack.i.h.bf16 %v8394_v35 }
 0x125   : > { %10955 = vst [vmem:[#allocation88_spill] sm:$0xff] %v8420_v56  ;;  %10956 = vst [vmem:[#allocation89_spill] sm:$0xff] %v8457_v36  ;;  %v8473_v57 = vmul.f32 %v6652_v0, %v10901_v61  ;;  %v8481_v55 = vmul.f32 %v6657_v2, %v10901_v61  ;;  %v8489_v43 = vmul.f32 %v6662_v20, %v10901_v61 }
 0x126   : > { %v6676_v28 = vpop.permute.xlu1 %6675  ;;  %v8430_v12 = vpop.permute.xlu0 %6680  ;;  %v8495_v52 = vmul.f32 %v6668_v32, %v10901_v61  ;;  %v10961_v32 = vrot.slane %v8060_v17, 2  ;;  %v10966_v17 = vld [vmem:[#allocation26_spill] sm:$0xff] }
 0x127   : > { %6985 = vperm.xlu1 %6448, %v7917_v49   ;;  %v6658_v49 = vunpack.i.h.bf16 %v8369_v25  ;;  %v8468_v25 = vsel %vm1515_vm8, %v1592_v44, %v1594_v31  ;;  %v8486_v31 = vmul.f32 %v6663_v21, %v10901_v61  ;;  %v6678_v2 = vunpack.i.h.bf16 %v6676_v28 }
 0x128   : > { %6990 = vperm.xlu0 %6437, %v7929_v58   ;;  %10958 = vst [vmem:[#allocation91_spill] sm:$0xff] %v8468_v25  ;;  %v6677_v58 = vunpack.i.l.bf16 %v6676_v28  ;;  %v6683_v23 = vunpack.i.h.bf16 %v8430_v12  ;;  %v6682_v20 = vunpack.i.l.bf16 %v8430_v12  ;;  %v10960_v12 = vld [vmem:[#allocation21_spill] sm:$0xff]  ;;  %v10964_v25 = vld [vmem:[#allocation24_spill] sm:$0xff] }
 0x129   : > { %v8478_v27 = vmul.f32 %v6658_v49, %v10901_v61  ;;  %v8516_v56 = vmul.f32 %v6678_v2, %v10901_v61  ;;  %v1629_v2 = vadd.f32 %v8114_v46, %v7885_v37  ;;  %v10962_v37 = vrot.slane %v8076_v5, 2 }
 0x12a   : > { %v8454_v4 = vpop.permute.xlu1 %6685  ;;  %v8464_v1 = vpop.permute.xlu0 %6690  ;;  %v8521_v28 = vmul.f32 %v6677_v58, %v10901_v61 }
 0x12b   : > { %6995 = vperm.xlu1 %6448, %v7940_v38   ;;  %v6667_v38 = vunpack.i.l.bf16 %v8394_v35  ;;  %v6672_v35 = vunpack.i.l.bf16 %v8402_v62  ;;  %10959 = vst [vmem:[#allocation92_spill] sm:$0xff] %v8516_v56  ;;  %v6688_v46 = vunpack.i.h.bf16 %v8454_v4  ;;  %v6687_v58 = vunpack.i.l.bf16 %v8454_v4 }
 0x12c   : > { %7000 = vperm.xlu0 %6437, %v7834_v19   ;;  %v6673_v19 = vunpack.i.h.bf16 %v8402_v62 }
 0x12d   : > { %v8498_v49 = vmul.f32 %v6667_v38, %v10901_v61  ;;  %v8513_v62 = vmul.f32 %v6672_v35, %v10901_v61  ;;  %v1628_v35 = vadd.f32 %v8091_v7, %v7900_v63  ;;  %v1878_v38 = vsel %vm1875_vm9, %v1876_v14, %v10961_v32 }
 0x12e   : > { %v8492_v0 = vpop.permute.xlu1 %6695  ;;  %v8501_v44 = vpop.permute.xlu0 %6700  ;;  %v8506_v21 = vmul.f32 %v6673_v19, %v10901_v61  ;;  %v2252_v19 = vmul.f32 %v6683_v23, %v10960_v12  ;;  %v10963_v7 = vmov %v10961_v32  ;;  %v2251_v61 = vmul.f32 %v6682_v20, %v10960_v12  ;;  %v10974_v23 = vld [vmem:[#allocation22_spill] sm:$0xff] }
 0x12f   : > { %7005 = vperm.xlu1 %6448, %v7966_v8   ;;  %v1631_v14 = vadd.f32 %v8121_v3, %v10964_v25  ;;  %v1988_v5 = vadd.f32 %v1878_v38, %v1628_v35  ;;  %v2254_v4 = vmul.f32 %v6688_v46, %v10960_v12  ;;  %v10967_v20 = vrot.slane %v8105_v39, 2  ;;  %v10968_v35 = vld [vmem:[#allocation39_spill] sm:$0xff] }
 0x130   : > { %7010 = vperm.xlu0 %6437, %v7972_v18   ;;  %v6693_v25 = vunpack.i.h.bf16 %v8464_v1  ;;  %v10972_v46 = vld [vmem:[#allocation23_spill] sm:$0xff] }
 0x131   : > { %v1888_v3 = vsel %vm1875_vm9, %v1886_v54, %v10967_v20  ;;  %v10975_v54 = vld [vmem:[#allocation17_spill] sm:$0xff]  ;;  %v8581_v9 = vadd.f32 %v2251_v61, %v1988_v5  ;;  %v10977_v61 = vld [vmem:[#allocation14_spill] sm:$0xff] }
 0x132   : > { %v8524_v18 = vpop.permute.xlu1 %6705  ;;  %v8532_v8 = vpop.permute.xlu0 %6710  ;;  %v1633_v20 = vadd.f32 %v10975_v54, %v10974_v23  ;;  %v2256_v23 = vmul.f32 %v6693_v25, %v10960_v12  ;;  %v10978_v5 = vrot.slane %v10977_v61, 2  ;;  %v10985_v25 = vrot.slane %v8438_v34, 2  ;;  %v10987_v54 = vld [vmem:[#allocation64_spill] sm:$0xff] }
 0x133   : > { %7015 = vperm.xlu1 %6448, %v7841_v51   ;;  %v1880_v51 = vsel %vm1875_vm9, %v10963_v7, %v10962_v37  ;;  %v1630_v37 = vadd.f32 %v8118_v50, %v10966_v17  ;;  %v2253_v7 = vmul.f32 %v6687_v58, %v10960_v12  ;;  %v10969_v50 = vld [vmem:[#allocation58_spill] sm:$0xff] }
 0x134   : > { %7020 = vperm.xlu0 %6437, %v7983_v53   ;;  %v10965_v53 = vrot.slane %v8098_v22, 2  ;;  %v1989_v63 = vadd.f32 %v1880_v51, %v1629_v2  ;;  %v10970_v2 = vrot.slane %v10969_v50, 2  ;;  %v6698_v22 = vunpack.i.h.bf16 %v8492_v0 }
 0x136   : > { %v1883_v32 = vsel %vm1875_vm9, %v1881_v29, %v10965_v53  ;;  %v8560_v56 = vpop.permute.xlu1 %6715  ;;  %v6692_v29 = vunpack.i.l.bf16 %v8464_v1  ;;  %v8569_v38 = vpop.permute.xlu0 %6720  ;;  %v10971_v58 = vmov %v10965_v53  ;;  %v10973_v53 = vld [vmem:[#allocation15_spill] sm:$0xff]  ;;  %v8583_v1 = vadd.f32 %v2252_v19, %v1989_v63 }
 0x137   : > { %7025 = vperm.xlu1 %6448, %v7991_v15   ;;  %v1885_v15 = vsel %vm1875_vm9, %v10971_v58, %v10970_v2  ;;  %v1990_v51 = vadd.f32 %v1883_v32, %v1630_v37  ;;  %v1632_v17 = vadd.f32 %v10973_v53, %v10972_v46  ;;  %v6697_v32 = vunpack.i.l.bf16 %v8492_v0  ;;  %v10976_v37 = vld [vmem:[#allocation44_spill] sm:$0xff] }
 0x138   : > { %7030 = vperm.xlu0 %6437, %v10968_v35   ;;  %v1991_v59 = vadd.f32 %v1885_v15, %v1631_v14  ;;  %v2255_v35 = vmul.f32 %v6692_v29, %v10960_v12  ;;  %v10979_v19 = vrot.slane %v8105_v39, 2  ;;  %v10980_v14 = vld [vmem:[#allocation27_spill] sm:$0xff]  ;;  %v10982_v0 = vld [vmem:[#allocation28_spill] sm:$0xff]  ;;  %v6702_v53 = vunpack.i.l.bf16 %v8501_v44 }
 0x139   : > { %v8586_v36 = vadd.f32 %v2253_v7, %v1990_v51  ;;  %v1992_v50 = vadd.f32 %v1888_v3, %v1632_v17  ;;  %v1635_v7 = vadd.f32 %v8166_v11, %v10980_v14  ;;  %v10981_v3 = vld [vmem:[#allocation45_spill] sm:$0xff]  ;;  %v2257_v46 = vmul.f32 %v6697_v32, %v10960_v12 }
 0x13a   : > { %v8591_v2 = vadd.f32 %v2254_v4, %v1991_v59  ;;  %v1890_v63 = vsel %vm1875_vm9, %v10979_v19, %v10978_v5  ;;  %v1634_v59 = vadd.f32 %v8160_v6, %v10982_v0  ;;  %v10983_v4 = vld [vmem:[#allocation59_spill] sm:$0xff]  ;;  %v8611_v39 = vpop.permute.xlu1 %6725  ;;  %v6703_v11 = vunpack.i.h.bf16 %v8501_v44  ;;  %v10986_v17 = vld [vmem:[#allocation29_spill] sm:$0xff]  ;;  %v10991_v5 = vld [vmem:[#allocation30_spill] sm:$0xff] }
 0x13b   : > { %7035 = vperm.xlu1 %6448, %v10976_v37   ;;  %v1993_v29 = vadd.f32 %v1890_v63, %v1633_v20  ;;  %v8602_v58 = vadd.f32 %v2255_v35, %v1992_v50  ;;  %v10984_v15 = vrot.slane %v10983_v4, 2  ;;  %v1637_v20 = vadd.f32 %v10987_v54, %v10986_v17  ;;  %v8618_v35 = vpop.permute.xlu0 %6730  ;;  %v10988_v50 = vld [vmem:[#allocation16_spill] sm:$0xff]  ;;  %v10992_v19 = vld [vmem:[#allocation18_spill] sm:$0xff]  ;;  %v10997_v4 = vld [vmem:[#allocation51_spill] sm:$0xff] }
 0x13c   : > { %7040 = vperm.xlu0 %6437, %v10981_v3   ;;  %v2258_v6 = vmul.f32 %v6698_v22, %v10960_v12  ;;  %v10989_v37 = vrot.slane %v10988_v50, 2  ;;  %v1636_v32 = vadd.f32 %v10992_v19, %v10991_v5  ;;  %v10993_v63 = vld [vmem:[#allocation60_spill] sm:$0xff]  ;;  %v10995_v44 = vrot.slane %v8473_v57, 2  ;;  %v10996_v0 = vld [vmem:[#allocation50_spill] sm:$0xff]  ;;  %v10998_v54 = vld [vmem:[#allocation61_spill] sm:$0xff] }
 0x13d   : > { %v1893_v51 = vsel %vm1875_vm9, %v10985_v25, %v10984_v15  ;;  %v10990_v34 = vmov %v10984_v15  ;;  %v10994_v14 = vrot.slane %v10993_v63, 2  ;;  %v2260_v22 = vmul.f32 %v6703_v11, %v10960_v12  ;;  %v11002_v11 = vld [vmem:[#allocation67_spill] sm:$0xff]  ;;  %v11003_v63 = vld [vmem:[#allocation32_spill] sm:$0xff] }
 0x13e   : > { %v1895_v61 = vsel %vm1875_vm9, %v10990_v34, %v10989_v37  ;;  %v1994_v15 = vadd.f32 %v1893_v51, %v1634_v59  ;;  %v2259_v17 = vmul.f32 %v6702_v53, %v10960_v12  ;;  %v10999_v50 = vrot.slane %v10998_v54, 2  ;;  %v11001_v51 = vld [vmem:[#allocation31_spill] sm:$0xff] }
 0x13f   : > { %v1898_v3 = vsel %vm1875_vm9, %v10995_v44, %v10994_v14  ;;  %7045 = vperm.xlu1 %6448, %v10996_v0   ;;  %v1995_v25 = vadd.f32 %v1895_v61, %v1635_v7  ;;  %v11000_v37 = vmov %v10994_v14  ;;  %v6708_v57 = vunpack.i.h.bf16 %v8524_v18  ;;  %v11004_v0 = vld [vmem:[#allocation65_spill] sm:$0xff] }
 0x140   : > { %7050 = vperm.xlu0 %6437, %v10997_v4   ;;  %v1900_v34 = vsel %vm1875_vm9, %v11000_v37, %v10999_v50  ;;  %v1996_v5 = vadd.f32 %v1898_v3, %v1636_v32  ;;  %v6707_v19 = vunpack.i.l.bf16 %v8524_v18  ;;  %v8644_v14 = vadd.f32 %v2256_v23, %v1993_v29  ;;  %v11005_v32 = vld [vmem:[#allocation19_spill] sm:$0xff]  ;;  %v8661_v23 = vpop.permute.xlu1 %6735  ;;  %v11008_v29 = vld [vmem:[#allocation54_spill] sm:$0xff]  ;;  %v8673_v37 = vpop.permute.xlu0 %6740 }
 0x141   : > { %v8646_v7 = vadd.f32 %v2257_v46, %v1994_v15  ;;  %v1997_v59 = vadd.f32 %v1900_v34, %v1637_v20  ;;  %v1639_v53 = vadd.f32 %v11002_v11, %v11001_v51  ;;  %v8650_v61 = vadd.f32 %v2258_v6, %v1995_v25  ;;  %v11009_v20 = vld [vmem:[#allocation62_spill] sm:$0xff] }
 0x142   : > { %v8652_v44 = vadd.f32 %v2259_v17, %v1996_v5  ;;  %v1638_v4 = vadd.f32 %v11004_v0, %v11003_v63  ;;  %v11006_v3 = vrot.slane %v11005_v32, 2  ;;  %v11007_v54 = vrot.slane %v8449_v10, 2  ;;  %v11012_v10 = vld [vmem:[#allocation10_spill] sm:$0xff]  ;;  %v11016_v63 = vld [vmem:[#allocation33_spill] sm:$0xff] }
 0x143   : > { %7055 = vperm.xlu1 %6448, %v11008_v29   ;;  %v8664_v46 = vadd.f32 %v2260_v22, %v1997_v59  ;;  %v11010_v6 = vrot.slane %v11009_v20, 2  ;;  %v6713_v17 = vunpack.i.h.bf16 %v8532_v8  ;;  %v6712_v50 = vunpack.i.l.bf16 %v8532_v8  ;;  %v11013_v22 = vld [vmem:[#allocation63_spill] sm:$0xff]  ;;  %v11017_v8 = vld [vmem:[#allocation34_spill] sm:$0xff]  ;;  %v11018_v20 = vld [vmem:[#allocation20_spill] sm:$0xff] }
 0x144   : > { %v1903_v18 = vsel %vm1875_vm9, %v11007_v54, %v11006_v3  ;;  %v11011_v15 = vmov %v11006_v3  ;;  %7060 = vperm.xlu0 %6437, %v11012_v10   ;;  %v2262_v34 = vmul.f32 %v6708_v57, %v10960_v12  ;;  %v2261_v5 = vmul.f32 %v6707_v19, %v10960_v12 }
 0x145   : > { %v1905_v25 = vsel %vm1875_vm9, %v11011_v15, %v11010_v6  ;;  %v11014_v59 = vrot.slane %v11013_v22, 2  ;;  %v11015_v51 = vrot.slane %v8481_v55, 2  ;;  %v1641_v0 = vadd.f32 %v8247_v60, %v11016_v63  ;;  %v11021_v60 = vld [vmem:[#allocation12_spill] sm:$0xff] }
 0x146   : > { %v1998_v32 = vadd.f32 %v1903_v18, %v1638_v4  ;;  %v1999_v3 = vadd.f32 %v1905_v25, %v1639_v53  ;;  %v1640_v54 = vadd.f32 %v8215_v41, %v11017_v8  ;;  %v2263_v29 = vmul.f32 %v6712_v50, %v10960_v12  ;;  %v11022_v4 = vld [vmem:[#allocation36_spill] sm:$0xff]  ;;  %v11023_v18 = vld [vmem:[#allocation35_spill] sm:$0xff] }
 0x147   : > { %v1908_v11 = vsel %vm1875_vm9, %v11015_v51, %v11014_v59  ;;  %v2264_v57 = vmul.f32 %v6713_v17, %v10960_v12  ;;  %v11019_v19 = vrot.slane %v11018_v20, 2  ;;  %v11020_v6 = vmov %v11014_v59  ;;  %7065 = vperm.xlu1 %6448, %v11021_v60   ;;  %v11024_v17 = vld [vmem:[#allocation68_spill] sm:$0xff]  ;;  %v11027_v51 = vld [vmem:[#allocation13_spill] sm:$0xff] }
 0x148   : > { %v6718_v15 = vunpack.i.h.bf16 %v8560_v56  ;;  %v6717_v10 = vunpack.i.l.bf16 %v8560_v56  ;;  %v2000_v53 = vadd.f32 %v1908_v11, %v1640_v54  ;;  %v1642_v41 = vadd.f32 %v8250_v47, %v11022_v4  ;;  %7070 = vperm.xlu0 %6437, %v11027_v51   ;;  %v8712_v54 = vpop.permute.xlu1 %6745  ;;  %v11045_v51 = vld [vmem:[#allocation40_spill] sm:$0xff] }
 0x149   : > { %v1910_v55 = vsel %vm1875_vm9, %v11020_v6, %v11019_v19  ;;  %v1643_v25 = vadd.f32 %v8253_v16, %v11023_v18  ;;  %v11025_v50 = vrot.slane %v11024_v17, 2  ;;  %v11026_v59 = vrot.slane %v8478_v27, 2  ;;  %v8718_v19 = vpop.permute.xlu0 %6750 }
 0x14a   : > { %v8707_v63 = vadd.f32 %v2261_v5, %v1998_v32  ;;  %v8709_v56 = vadd.f32 %v2262_v34, %v1999_v3  ;;  %v2001_v8 = vadd.f32 %v1910_v55, %v1641_v0  ;;  %v2265_v11 = vmul.f32 %v6717_v10, %v10960_v12  ;;  %v11032_v34 = vld [vmem:[#allocation66_spill] sm:$0xff]  ;;  %v11035_v55 = vld [vmem:[#allocation37_spill] sm:$0xff] }
 0x14b   : > { %v1913_v22 = vsel %vm1875_vm9, %v11026_v59, %v11025_v50  ;;  %v8714_v47 = vadd.f32 %v2263_v29, %v2000_v53  ;;  %v6723_v20 = vunpack.i.h.bf16 %v8569_v38  ;;  %v6722_v27 = vunpack.i.l.bf16 %v8569_v38  ;;  %v11037_v53 = vld [vmem:[#allocation38_spill] sm:$0xff]  ;;  %v11038_v38 = vld [vmem:[#allocation72_spill] sm:$0xff] }
 0x14c   : > { %11028 = vst [vmem:[#allocation21_spill] sm:$0xff] %v8707_v63  ;;  %11029 = vst [vmem:[#allocation24_spill] sm:$0xff] %v8709_v56  ;;  %v2002_v16 = vadd.f32 %v1913_v22, %v1642_v41  ;;  %v8720_v6 = vadd.f32 %v2264_v57, %v2001_v8  ;;  %v2266_v5 = vmul.f32 %v6718_v15, %v10960_v12  ;;  %v11033_v32 = vrot.slane %v11032_v34, 2  ;;  %v11039_v41 = vld [vmem:[#allocation69_spill] sm:$0xff] }
 0x14d   : > { %11030 = vst [vmem:[#allocation26_spill] sm:$0xff] %v8714_v47  ;;  %v11034_v0 = vmov %v11025_v50  ;;  %v1645_v29 = vadd.f32 %v8279_v42, %v11035_v55  ;;  %v1644_v4 = vadd.f32 %v11038_v38, %v11037_v53  ;;  %v11040_v57 = vrot.slane %v11039_v41, 2  ;;  %v11042_v50 = vld [vmem:[#allocation70_spill] sm:$0xff]  ;;  %v11046_v8 = vld [vmem:[#allocation77_spill] sm:$0xff] }
 0x14e   : > { %11031 = vst [vmem:[#allocation39_spill] sm:$0xff] %v8720_v6  ;;  %v1915_v3 = vsel %vm1875_vm9, %v11034_v0, %v11033_v32  ;;  %v8730_v60 = vadd.f32 %v2265_v11, %v2002_v16  ;;  %v11041_v18 = vrot.slane %v8489_v43, 2  ;;  %v11043_v59 = vrot.slane %v11042_v50, 2  ;;  %v11047_v43 = vld [vmem:[#allocation41_spill] sm:$0xff]  ;;  %v11048_v32 = vld [vmem:[#allocation75_spill] sm:$0xff]  ;;  %v8759_v50 = vpop.permute.xlu1 %6755 }
 0x14f   : > { %v2003_v10 = vadd.f32 %v1915_v3, %v1643_v25  ;;  %v11044_v17 = vmov %v11040_v57  ;;  %v6728_v42 = vunpack.i.h.bf16 %v8611_v39  ;;  %v6727_v25 = vunpack.i.l.bf16 %v8611_v39  ;;  %v11049_v3 = vld [vmem:[#allocation73_spill] sm:$0xff] }
 0x150   : > { %11036 = vst [vmem:[#allocation58_spill] sm:$0xff] %v8730_v60  ;;  %v1918_v15 = vsel %vm1875_vm9, %v11041_v18, %v11040_v57  ;;  %v1920_v22 = vsel %vm1875_vm9, %v11044_v17, %v11043_v59  ;;  %v1647_v11 = vadd.f32 %v11046_v8, %v11045_v51  ;;  %v2268_v16 = vmul.f32 %v6723_v20, %v10960_v12  ;;  %v11052_v20 = vld [vmem:[#allocation71_spill] sm:$0xff]  ;;  %v11055_v8 = vld [vmem:[#allocation74_spill] sm:$0xff] }
 0x151   : > { %v2267_v34 = vmul.f32 %v6722_v27, %v10960_v12  ;;  %v1646_v0 = vadd.f32 %v11048_v32, %v11047_v43  ;;  %v11050_v55 = vrot.slane %v11049_v3, 2  ;;  %v11051_v53 = vrot.slane %v8486_v31, 2  ;;  %v11059_v32 = vld [vmem:[#allocation78_spill] sm:$0xff] }
 0x152   : > { %v2004_v41 = vadd.f32 %v1918_v15, %v1644_v4  ;;  %v2005_v57 = vadd.f32 %v1920_v22, %v1645_v29  ;;  %v2270_v39 = vmul.f32 %v6728_v42, %v10960_v12  ;;  %v2269_v18 = vmul.f32 %v6727_v25, %v10960_v12  ;;  %v8772_v15 = vpop.permute.xlu0 %6760  ;;  %v11058_v25 = vld [vmem:[#allocation43_spill] sm:$0xff]  ;;  %v11060_v3 = vld [vmem:[#allocation42_spill] sm:$0xff] }
 0x153   : > { %v1923_v38 = vsel %vm1875_vm9, %v11051_v53, %v11050_v55  ;;  %v11053_v59 = vrot.slane %v11052_v20, 2  ;;  %v11054_v27 = vmov %v11050_v55  ;;  %v11056_v43 = vrot.slane %v11055_v8, 2  ;;  %v11072_v8 = vld [vmem:[#allocation47_spill] sm:$0xff] }
 0x154   : > { %v2006_v51 = vadd.f32 %v1923_v38, %v1646_v0  ;;  %v11057_v31 = vrot.slane %v8498_v49, 2  ;;  %v6732_v29 = vunpack.i.l.bf16 %v8618_v35  ;;  %v6733_v42 = vunpack.i.h.bf16 %v8618_v35 }
 0x155   : > { %v1925_v17 = vsel %vm1875_vm9, %v11054_v27, %v11053_v59  ;;  %v1648_v55 = vadd.f32 %v11059_v32, %v11058_v25  ;;  %v1649_v53 = vadd.f32 %v8354_v26, %v11060_v3  ;;  %v8779_v0 = vadd.f32 %v2266_v5, %v2003_v10  ;;  %v11067_v10 = vld [vmem:[#allocation46_spill] sm:$0xff]  ;;  %v11075_v25 = vld [vmem:[#allocation48_spill] sm:$0xff]  ;;  %v11076_v32 = vld [vmem:[#allocation85_spill] sm:$0xff] }
 0x156   : > { %v1928_v4 = vsel %vm1875_vm9, %v11057_v31, %v11056_v43  ;;  %v2007_v22 = vadd.f32 %v1925_v17, %v1647_v11  ;;  %v8781_v38 = vadd.f32 %v2267_v34, %v2004_v41  ;;  %v8783_v49 = vadd.f32 %v2268_v16, %v2005_v57  ;;  %v11068_v34 = vld [vmem:[#allocation79_spill] sm:$0xff] }
 0x157   : > { %11061 = vst [vmem:[#allocation23_spill] sm:$0xff] %v8779_v0  ;;  %v2271_v20 = vmul.f32 %v6732_v29, %v10960_v12  ;;  %v8786_v59 = vadd.f32 %v2269_v18, %v2006_v51  ;;  %v2008_v11 = vadd.f32 %v1928_v4, %v1648_v55  ;;  %v6738_v35 = vunpack.i.h.bf16 %v8661_v23  ;;  %v11073_v29 = vld [vmem:[#allocation49_spill] sm:$0xff]  ;;  %v8821_v55 = vpop.permute.xlu0 %6770  ;;  %v4139_v0 = vld [vmem:[#allocation2 + $0x3c] sm:$0xe] }
 0x158   : > { %11062 = vst [vmem:[#allocation15_spill] sm:$0xff] %v8781_v38  ;;  %11063 = vst [vmem:[#allocation22_spill] sm:$0xff] %v8783_v49  ;;  %v8788_v27 = vadd.f32 %v2270_v39, %v2007_v22  ;;  %v11066_v17 = vrot.slane %v8294_v13, 2  ;;  %v6737_v5 = vunpack.i.l.bf16 %v8661_v23  ;;  %v1651_v16 = vadd.f32 %v8360_v33, %v11067_v10  ;;  %v8813_v23 = vpop.permute.xlu1 %6765  ;;  %v4138_v49 = vld [vmem:[#allocation2 + $0x30] sm:$0xe] }
 0x159   : > { %11064 = vst [vmem:[#allocation17_spill] sm:$0xff] %v8786_v59  ;;  %v11069_v41 = vrot.slane %v11068_v34, 2  ;;  %v11070_v57 = vrot.slane %v8495_v52, 2  ;;  %v8805_v18 = vmul.f32 %v6733_v42, %v10960_v12  ;;  %v8809_v13 = vadd.f32 %v2271_v20, %v2008_v11  ;;  %v11074_v52 = vld [vmem:[#allocation84_spill] sm:$0xff] }
 0x15a   : > { %11065 = vst [vmem:[#allocation44_spill] sm:$0xff] %v8788_v27  ;;  %v1930_v26 = vsel %vm1875_vm9, %v11056_v43, %v11066_v17  ;;  %v1650_v31 = vadd.f32 %v8357_v48, %v11072_v8  ;;  %v6743_v33 = vunpack.i.h.bf16 %v8673_v37  ;;  %v6742_v4 = vunpack.i.l.bf16 %v8673_v37  ;;  %v11080_v43 = vld [vmem:[#allocation80_spill] sm:$0xff] }
 0x15b   : > { %v1933_v39 = vsel %vm1875_vm9, %v11070_v57, %v11069_v41  ;;  %v8807_v51 = vadd.f32 %v1930_v26, %v1649_v53  ;;  %11071 = vst [vmem:[#allocation14_spill] sm:$0xff] %v8809_v13  ;;  %v1652_v22 = vadd.f32 %v11074_v52, %v11073_v29  ;;  %v1653_v42 = vadd.f32 %v11076_v32, %v11075_v25  ;;  %v11077_v53 = vld [vmem:[#allocation76_spill] sm:$0xff]  ;;  %v11086_v32 = vld [vmem:[#allocation53_spill] sm:$0xff] }
 0x15c   : > { %v2274_v3 = vmul.f32 %v6738_v35, %v10960_v12  ;;  %v11078_v20 = vrot.slane %v11077_v53, 2  ;;  %v11079_v48 = vmov %v11069_v41  ;;  %v2010_v17 = vadd.f32 %v1933_v39, %v1650_v31  ;;  %v11083_v35 = vld [vmem:[#allocation81_spill] sm:$0xff] }
 0x15d   : > { %v11081_v26 = vrot.slane %v11080_v43, 2  ;;  %v11082_v37 = vrot.slane %v8513_v62, 2  ;;  %v2273_v57 = vmul.f32 %v6737_v5, %v10960_v12  ;;  %v2275_v29 = vmul.f32 %v6742_v4, %v10960_v12 }
 0x15e   : > { %v1935_v11 = vsel %vm1875_vm9, %v11079_v48, %v11078_v20  ;;  %v11084_v52 = vrot.slane %v11083_v35, 2  ;;  %v6748_v39 = vunpack.i.h.bf16 %v8712_v54  ;;  %v6747_v31 = vunpack.i.l.bf16 %v8712_v54 }
 0x15f   : > { %v1938_v10 = vsel %vm1875_vm9, %v11082_v37, %v11081_v26  ;;  %v2011_v41 = vadd.f32 %v1935_v11, %v1651_v16  ;;  %v11085_v25 = vmov %v11081_v26  ;;  %v1654_v62 = vadd.f32 %v8413_v24, %v11086_v32  ;;  %v11091_v11 = vld [vmem:[#allocation52_spill] sm:$0xff]  ;;  %v11092_v26 = vld [vmem:[#allocation82_spill] sm:$0xff] }
 0x160   : > { %v2012_v8 = vadd.f32 %v1938_v10, %v1652_v22  ;;  %v1940_v34 = vsel %vm1875_vm9, %v11085_v25, %v11084_v52  ;;  %v2276_v16 = vmul.f32 %v6743_v33, %v10960_v12  ;;  %v11088_v22 = vld [vmem:[#allocation83_spill] sm:$0xff]  ;;  %v11090_v20 = vrot.slane %v8506_v21, 2  ;;  %v11097_v52 = vld [vmem:[#allocation56_spill] sm:$0xff] }
 0x161   : > { %v2013_v53 = vadd.f32 %v1940_v34, %v1653_v42  ;;  %v11089_v4 = vrot.slane %v11088_v22, 2  ;;  %v1655_v43 = vadd.f32 %v8416_v30, %v11091_v11  ;;  %v11093_v37 = vrot.slane %v11092_v26, 2  ;;  %v8861_v42 = vpop.permute.xlu1 %6775  ;;  %v8872_v34 = vpop.permute.xlu0 %6780  ;;  %v11100_v22 = vld [vmem:[#allocation89_spill] sm:$0xff] }
 0x162   : > { %v8846_v5 = vadd.f32 %v2275_v29, %v2012_v8  ;;  %v2277_v33 = vmul.f32 %v6747_v31, %v10960_v12  ;;  %v11095_v8 = vrot.slane %v8381_v40, 2  ;;  %v11096_v21 = vrot.slane %v8521_v28, 2 }
 0x163   : > { %v1943_v48 = vsel %vm1875_vm9, %v11090_v20, %v11089_v4  ;;  %v11094_v54 = vmov %v11089_v4  ;;  %v6753_v35 = vunpack.i.h.bf16 %v8718_v19  ;;  %v6752_v30 = vunpack.i.l.bf16 %v8718_v19  ;;  %v11101_v20 = vld [vmem:[#allocation86_spill] sm:$0xff] }
 0x164   : > { %11087 = vst [vmem:[#allocation27_spill] sm:$0xff] %v8846_v5  ;;  %v1945_v24 = vsel %vm1875_vm9, %v11094_v54, %v11093_v37  ;;  %v2014_v10 = vadd.f32 %v1943_v48, %v1654_v62  ;;  %v1948_v29 = vsel %vm1875_vm9, %v11096_v21, %v11095_v8  ;;  %v1656_v25 = vadd.f32 %v8423_v45, %v11097_v52  ;;  %v11099_v62 = vld [vmem:[#allocation55_spill] sm:$0xff]  ;;  %v11106_v21 = vld [vmem:[#allocation9_spill] sm:$0xff] }
 0x165   : > { %v2278_v32 = vmul.f32 %v6748_v39, %v10960_v12  ;;  %v1657_v4 = vadd.f32 %v11100_v22, %v11099_v62  ;;  %v11102_v28 = vrot.slane %v11101_v20, 2  ;;  %v11103_v48 = vmov %v11095_v8  ;;  %v11107_v52 = vld [vmem:[#allocation91_spill] sm:$0xff]  ;;  %v11109_v20 = vld [vmem:[#allocation88_spill] sm:$0xff] }
 0x166   : > { %v8875_v31 = vadd.f32 %v2277_v33, %v2014_v10  ;;  %v2280_v19 = vmul.f32 %v6753_v35, %v10960_v12  ;;  %v2016_v26 = vadd.f32 %v1948_v29, %v1656_v25  ;;  %v2279_v45 = vmul.f32 %v6752_v30, %v10960_v12  ;;  %v11104_v10 = vld [vmem:[#allocation11_spill] sm:$0xff]  ;;  %v11105_v33 = vld [vmem:[#allocation90_spill] sm:$0xff]  ;;  %v11111_v29 = vld [vmem:[#allocation92_spill] sm:$0xff] }
 0x167   : > { %v1950_v11 = vsel %vm1875_vm9, %v11103_v48, %v11102_v28  ;;  %v6758_v37 = vunpack.i.h.bf16 %v8759_v50  ;;  %v6757_v39 = vunpack.i.l.bf16 %v8759_v50  ;;  %v1658_v8 = vadd.f32 %v11105_v33, %v11104_v10  ;;  %v11113_v28 = vld [vmem:[#allocation87_spill] sm:$0xff] }
 0x168   : > { %11098 = vst [vmem:[#allocation45_spill] sm:$0xff] %v8875_v31  ;;  %v2017_v54 = vadd.f32 %v1950_v11, %v1657_v4  ;;  %v1659_v62 = vadd.f32 %v11107_v52, %v11106_v21  ;;  %v8892_v22 = vadd.f32 %v2279_v45, %v2016_v26  ;;  %v11110_v35 = vrot.slane %v11109_v20, 2  ;;  %v8908_v45 = vpop.permute.xlu1 %6785  ;;  %v3592_v31 = vld [vmem:[#allocation2 + $0xb4] sm:$0xff]  }
 0x169   : > { %v2282_v40 = vmul.f32 %v6758_v37, %v10960_v12  ;;  %v11112_v25 = vrot.slane %v11111_v29, 2  ;;  %v11114_v4 = vrot.slane %v11113_v28, 2  ;;  %v2281_v26 = vmul.f32 %v6757_v39, %v10960_v12  ;;  %v8914_v29 = vpop.permute.xlu0 %6790  ;;  %v11119_v12 = vld [vmem:[#allocation8_spill] sm:$0xff]  ;;  %v6375_v28 = vld [vmem:[#allocation2 + $0x90] sm:$0xff]  }
 0x16a   : > { %11108 = vst [vmem:[#allocation28_spill] sm:$0xff] %v8892_v22  ;;  %v11115_v50 = vmov %v11110_v35  ;;  %v8905_v11 = vadd.f32 %v2280_v19, %v2017_v54  ;;  %v6763_v37 = vunpack.i.h.bf16 %v8772_v15  ;;  %v6762_v21 = vunpack.i.l.bf16 %v8772_v15 }
 0x16b   : > { %v1953_v30 = vsel %vm1875_vm9, %v11112_v25, %v11110_v35  ;;  %v1955_v48 = vsel %vm1875_vm9, %v11115_v50, %v11114_v4  ;;  %v6768_v52 = vunpack.i.h.bf16 %v8813_v23  ;;  %v6767_v35 = vunpack.i.l.bf16 %v8813_v23 }
 0x16c   : > { %11116 = vst [vmem:[#allocation59_spill] sm:$0xff] %v8905_v11  ;;  %v2018_v10 = vadd.f32 %v1953_v30, %v1658_v8  ;;  %v2019_v33 = vadd.f32 %v1955_v48, %v1659_v62  ;;  %v2015_v20 = vadd.f32 %v1945_v24, %v1655_v43  ;;  %v6773_v54 = vunpack.i.h.bf16 %v8821_v55  ;;  %v11120_v8 = vld [vmem:[#allocation57_spill] sm:$0xff]  ;;  %v3588_v11 = vld [vmem:[#allocation2 + $0xa4] sm:$0x1] }
 0x16d   : > { %v2659_v39 = vmul.f32 %v6763_v37, %v11119_v12  ;;  %v8923_v62 = vmul.f32 %v6763_v37, %v11120_v8  ;;  %v2661_v15 = vmul.f32 %v6768_v52, %v11119_v12  ;;  %v6772_v30 = vunpack.i.l.bf16 %v8821_v55  ;;  %v3585_v55 = vld [vmem:[#allocation2 + $0x98] sm:$0x1] }
 0x16e   : > { %v8916_v25 = vadd.f32 %v2281_v26, %v2018_v10  ;;  %v8918_v19 = vadd.f32 %v2282_v40, %v2019_v33  ;;  %v8929_v23 = vadd.f32 %v8805_v18, %v8807_v51  ;;  %v8931_v43 = vadd.f32 %v2273_v57, %v2010_v17  ;;  %v3586_v33 = vld [vmem:[#allocation2 + $0x9c] sm:$0xff]   ;;  %v8952_v26 = vpop.permute.xlu0 %6800 }
 0x16f   : > { %v8933_v24 = vadd.f32 %v2274_v3, %v2011_v41  ;;  %v2660_v40 = vmul.f32 %v6767_v35, %v11119_v12  ;;  %v8936_v4 = vadd.f32 %v2276_v16, %v2013_v53  ;;  %v8938_v50 = vadd.f32 %v2278_v32, %v2015_v20  ;;  %v8948_v41 = vpop.permute.xlu1 %6795 }
 0x170   : > { %11117 = vst [vmem:[#allocation29_spill] sm:$0xff] %v8916_v25  ;;  %11118 = vst [vmem:[#allocation64_spill] sm:$0xff] %v8918_v19  ;;  %v2658_v48 = vmul.f32 %v6762_v21, %v11119_v12  ;;  %v8942_v10 = vmul.f32 %v6767_v35, %v11120_v8  ;;  %v2755_v18 = vrot.slane %v2659_v39, 1  ;;  %v2663_v17 = vmul.f32 %v6773_v54, %v11119_v12 }
 0x171   : > { %11121 = vst [vmem:[#allocation16_spill] sm:$0xff] %v8929_v23  ;;  %11122 = vst [vmem:[#allocation30_spill] sm:$0xff] %v8931_v43  ;;  %v2757_v51 = vrot.slane %v2660_v40, 1  ;;  %v8946_v3 = vmul.f32 %v6773_v54, %v11120_v8  ;;  %v2759_v16 = vrot.slane %v2661_v15, 1  ;;  %v2662_v53 = vmul.f32 %v6772_v30, %v11119_v12 }
 0x172   : > { %11123 = vst [vmem:[#allocation18_spill] sm:$0xff] %v8933_v24  ;;  %11124 = vst [vmem:[#allocation60_spill] sm:$0xff] %v8936_v4  ;;  %v6324_v32 = vunpack.c.l.bf16 %v6375_v28  ;;  %v6325_v21 = vunpack.c.h.bf16 %v6375_v28  ;;  %v3633_v52 = vunpack.c.l.bf16 %v3585_v55  ;;  %v3634_v35 = vunpack.c.l.bf16 %v3586_v33  ;;  %v6376_v55 = vld [vmem:[#allocation2 + $0xa8] sm:$0xff]  }
 0x173   : > { %11125 = vst [vmem:[#allocation50_spill] sm:$0xff] %v8938_v50  ;;  %v8955_v37 = vsel %vm1515_vm8, %v2755_v18, %v2757_v51  ;;  %v2754_v20 = vrot.slane %v2658_v48, 1  ;;  %v2760_v39 = vrot.slane %v2662_v53, 1  ;;  %v6778_v54 = vunpack.i.h.bf16 %v8861_v42  ;;  %v8982_v53 = vpop.permute.xlu0 %6810 }
 0x174   : > { %v6777_v40 = vunpack.i.l.bf16 %v8861_v42  ;;  %v7074_v19 = vpack.i.bf16 %v6325_v21, %v6324_v32  ;;  %v7079_v57 = vpack.i.bf16 %v3634_v35, %v3633_v52  ;;  %v6783_v15 = vunpack.i.h.bf16 %v8872_v34  ;;  %v8973_v21 = vpop.permute.xlu1 %6805 }
 0x175   : > { %v6782_v25 = vunpack.i.l.bf16 %v8872_v34  ;;  %v2762_v51 = vrot.slane %v2663_v17, 1  ;;  %v8963_v28 = vsel %vm1515_vm8, %v2759_v16, %v2760_v39  ;;  %v8966_v48 = vmul.f32 %v6778_v54, %v11119_v12 }
 0x176   : > { %v8970_v42 = vmul.f32 %v6772_v30, %v11120_v8  ;;  %7075 = vperm.xlu1 %6448, %v7074_v19   ;;  %7080 = vperm.xlu0 %6437, %v7079_v57   ;;  %v3635_v32 = vunpack.c.h.bf16 %v3586_v33  ;;  %v8976_v17 = vsel %vm1515_vm8, %v2754_v20, %v2755_v18  ;;  %v8980_v52 = vmul.f32 %v6778_v54, %v11120_v8 }
 0x177   : > { %v2666_v34 = vmul.f32 %v6782_v25, %v11119_v12  ;;  %v2765_v16 = vrot.slane %v8966_v48, 1  ;;  %v3636_v35 = vunpack.c.l.bf16 %v3588_v11  ;;  %v2664_v30 = vmul.f32 %v6777_v40, %v11119_v12 }
 0x178   : > { %v2667_v19 = vmul.f32 %v6783_v15, %v11119_v12  ;;  %v6328_v22 = vunpack.c.l.bf16 %v6376_v55  ;;  %v8987_v33 = vmul.f32 %v6782_v25, %v11120_v8  ;;  %v6329_v18 = vunpack.c.h.bf16 %v6376_v55 }
 0x179   : > { %v2767_v57 = vrot.slane %v2666_v34, 1  ;;  %v7084_v50 = vpack.i.bf16 %v3636_v35, %v3635_v32  ;;  %v6788_v20 = vunpack.i.h.bf16 %v8908_v45  ;;  %v6787_v11 = vunpack.i.l.bf16 %v8908_v45  ;;  %v9004_v45 = vpop.permute.xlu1 %6815 }
 0x17a   : > { %v6793_v40 = vunpack.i.h.bf16 %v8914_v29  ;;  %v8997_v15 = vsel %vm1515_vm8, %v2760_v39, %v2762_v51  ;;  %v7089_v25 = vpack.i.bf16 %v6329_v18, %v6328_v22  ;;  %v6792_v55 = vunpack.i.l.bf16 %v8914_v29  ;;  %v9008_v39 = vpop.permute.xlu0 %6820 }
 0x17b   : > { %v8992_v54 = vsel %vm1515_vm8, %v2765_v16, %v2767_v57  ;;  %7085 = vperm.xlu1 %6448, %v7084_v50   ;;  %v2669_v34 = vmul.f32 %v6788_v20, %v11119_v12  ;;  %v2764_v35 = vrot.slane %v2664_v30, 1  ;;  %v2668_v57 = vmul.f32 %v6787_v11, %v11119_v12 }
 0x17c   : > { %v2671_v48 = vmul.f32 %v6793_v40, %v11119_v12  ;;  %v2769_v4 = vrot.slane %v2667_v19, 1  ;;  %7090 = vperm.xlu0 %6437, %v7089_v25   ;;  %v2670_v50 = vmul.f32 %v6792_v55, %v11119_v12  ;;  %v3640_v22 = vunpack.c.l.bf16 %v3592_v31 }
 0x17d   : > { %v9011_v29 = vmul.f32 %v6788_v20, %v11120_v8  ;;  %v2770_v51 = vrot.slane %v2668_v57, 1  ;;  %v9014_v30 = vmul.f32 %v6787_v11, %v11120_v8  ;;  %v9017_v18 = vmul.f32 %v6793_v40, %v11120_v8  ;;  %v3598_v57 = vld [vmem:[#allocation2 + $0xcc] sm:$0xff]  }
 0x17e   : > { %v2772_v32 = vrot.slane %v2669_v34, 1  ;;  %v3641_v19 = vunpack.c.h.bf16 %v3592_v31  ;;  %v6798_v5 = vunpack.i.h.bf16 %v8948_v41  ;;  %v6797_v25 = vunpack.i.l.bf16 %v8948_v41  ;;  %v11126_v11 = vld [vmem:[#allocation25_spill] sm:$0xff]  ;;  %v9040_v59 = vpop.permute.xlu0 %6830 }
 0x17f   : > { %v9022_v55 = vsel %vm1515_vm8, %v2769_v4, %v2770_v51  ;;  %v2775_v24 = vrot.slane %v2671_v48, 1  ;;  %v2774_v43 = vrot.slane %v2670_v50, 1  ;;  %v6802_v20 = vunpack.i.l.bf16 %v8952_v26  ;;  %v4136_v50 = vld [vmem:[#allocation2 + $0x18] sm:$0xe] }
 0x180   : > { %v7094_v23 = vpack.i.bf16 %v3641_v19, %v3640_v22  ;;  %7100 = vperm.xlu0 %6437, %v11126_v11   ;;  %v2673_v40 = vmul.f32 %v6798_v5, %v11119_v12  ;;  %v2672_v34 = vmul.f32 %v6797_v25, %v11119_v12  ;;  %v6803_v31 = vunpack.i.h.bf16 %v8952_v26  ;;  %v9037_v22 = vpop.permute.xlu1 %6825  ;;  %v4137_v26 = vld [vmem:[#allocation2 + $0x24] sm:$0xe] }
 0x181   : > { %v9030_v13 = vsel %vm1515_vm8, %v2764_v35, %v2765_v16  ;;  %v9035_v48 = vmul.f32 %v6802_v20, %v11119_v12  ;;  %v3646_v27 = vunpack.c.l.bf16 %v3598_v57  ;;  %v9043_v16 = vsel %vm1515_vm8, %v2770_v51, %v2772_v32 }
 0x182   : > { %7095 = vperm.xlu1 %6448, %v7094_v23   ;;  %v2779_v5 = vrot.slane %v2673_v40, 1  ;;  %v2777_v11 = vrot.slane %v2672_v34, 1  ;;  %v9046_v35 = vsel %vm1515_vm8, %v2774_v43, %v2775_v24  ;;  %v9049_v4 = vmul.f32 %v6797_v25, %v11120_v8  ;;  %v9075_v47 = vpop.permute.xlu0 %6840 }
 0x183   : > { %v2780_v41 = vrot.slane %v9035_v48, 1  ;;  %v2675_v23 = vmul.f32 %v6803_v31, %v11119_v12  ;;  %v3647_v40 = vunpack.c.h.bf16 %v3598_v57  ;;  %v4152_v34 = vunpack.c.l.bf16 %v4136_v50  ;;  %v4140_v57 = vld [vmem:[#allocation2 + $0x48] sm:$0xe] }
 0x184   : > { %11127 = vst [vmem:[#allocation51_spill] sm:$0xff] %v9049_v4  ;;  %v9053_v19 = vsel %vm1515_vm8, %v2775_v24, %v2777_v11  ;;  %v9057_v38 = vmul.f32 %v6803_v31, %v11120_v8  ;;  %v4153_v43 = vunpack.c.l.bf16 %v4137_v26  ;;  %v6808_v51 = vunpack.i.h.bf16 %v8973_v21  ;;  %v9070_v6 = vpop.permute.xlu1 %6835 }
 0x185   : > { %v9060_v32 = vsel %vm1515_vm8, %v2779_v5, %v2780_v41  ;;  %v7104_v25 = vpack.i.bf16 %v3647_v40, %v3646_v27  ;;  %v6807_v48 = vunpack.i.l.bf16 %v8973_v21  ;;  %v6813_v24 = vunpack.i.h.bf16 %v8982_v53 }
 0x186   : > { %11128 = vst [vmem:[#allocation61_spill] sm:$0xff] %v9057_v38  ;;  %11129 = vst [vmem:[#allocation31_spill] sm:$0xff] %v9060_v32  ;;  %v6812_v11 = vunpack.i.l.bf16 %v8982_v53  ;;  %v9067_v50 = vmul.f32 %v6802_v20, %v11120_v8  ;;  %v7109_v31 = vpack.i.bf16 %v4153_v43, %v4152_v34  ;;  %v2677_v60 = vmul.f32 %v6808_v51, %v11119_v12  ;;  %v4141_v53 = vld [vmem:[#allocation2 + $0x54] sm:$0xe]  ;;  %v4145_v38 = vld [vmem:[#allocation2 + $0x84] sm:$0xe] }
 0x187   : > { %v4154_v5 = vunpack.c.l.bf16 %v4138_v49  ;;  %v2782_v27 = vrot.slane %v2675_v23, 1  ;;  %7105 = vperm.xlu1 %6448, %v7104_v25   ;;  %v2676_v21 = vmul.f32 %v6807_v48, %v11119_v12  ;;  %v4155_v43 = vunpack.c.l.bf16 %v4139_v0 }
 0x188   : > { %11130 = vst [vmem:[#allocation67_spill] sm:$0xff] %v9067_v50  ;;  %v2678_v40 = vmul.f32 %v6812_v11, %v11119_v12  ;;  %7110 = vperm.xlu0 %6437, %v7109_v31   ;;  %v2785_v34 = vrot.slane %v2677_v60, 1  ;;  %v4156_v56 = vunpack.c.l.bf16 %v4140_v57  ;;  %v9079_v49 = vmul.f32 %v6808_v51, %v11120_v8  ;;  %v4142_v57 = vld [vmem:[#allocation2 + $0x60] sm:$0xe]  ;;  %v4147_v50 = vld [vmem:[#allocation2 + $0x9c] sm:$0xe] }
 0x189   : > { %v2679_v26 = vmul.f32 %v6813_v24, %v11119_v12  ;;  %v9083_v25 = vmul.f32 %v6812_v11, %v11120_v8  ;;  %v7114_v48 = vpack.i.bf16 %v4155_v43, %v4154_v5  ;;  %v4157_v32 = vunpack.c.l.bf16 %v4141_v53 }
 0x18a   : > { %11131 = vst [vmem:[#allocation32_spill] sm:$0xff] %v9079_v49  ;;  %v2787_v23 = vrot.slane %v2678_v40, 1  ;;  %v6818_v63 = vunpack.i.h.bf16 %v9004_v45  ;;  %v6817_v4 = vunpack.i.l.bf16 %v9004_v45  ;;  %v2784_v20 = vrot.slane %v2676_v21, 1  ;;  %v9095_v40 = vpop.permute.xlu1 %6845 }
 0x18b   : > { %11132 = vst [vmem:[#allocation65_spill] sm:$0xff] %v9083_v25  ;;  %v6823_v0 = vunpack.i.h.bf16 %v9008_v39  ;;  %v6822_v51 = vunpack.i.l.bf16 %v9008_v39  ;;  %7115 = vperm.xlu1 %6448, %v7114_v48   ;;  %v7119_v11 = vpack.i.bf16 %v4157_v32, %v4156_v56  ;;  %v9098_v45 = vsel %vm1515_vm8, %v2780_v41, %v2782_v27  ;;  %v4143_v39 = vld [vmem:[#allocation2 + $0x6c] sm:$0xe] }
 0x18c   : > { %v9088_v60 = vsel %vm1515_vm8, %v2785_v34, %v2787_v23  ;;  %v2681_v31 = vmul.f32 %v6818_v63, %v11119_v12  ;;  %v2680_v5 = vmul.f32 %v6817_v4, %v11119_v12  ;;  %11134 = vst [vmem:[#allocation54_spill] sm:$0xff] %v9098_v45  ;;  %v2789_v53 = vrot.slane %v2679_v26, 1  ;;  %v4144_v23 = vld [vmem:[#allocation2 + $0x78] sm:$0xe] }
 0x18d   : > { %11133 = vst [vmem:[#allocation19_spill] sm:$0xff] %v9088_v60  ;;  %v2683_v43 = vmul.f32 %v6823_v0, %v11119_v12  ;;  %v9102_v60 = vpop.permute.xlu0 %6850  ;;  %7120 = vperm.xlu0 %6437, %v7119_v11   ;;  %v2682_v48 = vmul.f32 %v6822_v51, %v11119_v12  ;;  %v4158_v24 = vunpack.c.l.bf16 %v4142_v57  ;;  %v9107_v41 = vsel %vm1515_vm8, %v2784_v20, %v2785_v34  ;;  %v4146_v57 = vld [vmem:[#allocation2 + $0x90] sm:$0xe] }
 0x18e   : > { %v2790_v32 = vrot.slane %v2680_v5, 1  ;;  %11135 = vst [vmem:[#allocation62_spill] sm:$0xff] %v9107_v41  ;;  %v9110_v27 = vmul.f32 %v6818_v63, %v11120_v8  ;;  %v9113_v26 = vmul.f32 %v6817_v4, %v11120_v8  ;;  %v9116_v21 = vmul.f32 %v6823_v0, %v11120_v8 }
 0x18f   : > { %v2792_v49 = vrot.slane %v2681_v31, 1  ;;  %v4159_v5 = vunpack.c.l.bf16 %v4143_v39  ;;  %v4160_v51 = vunpack.c.l.bf16 %v4144_v23  ;;  %v2795_v56 = vrot.slane %v2683_v43, 1  ;;  %v9125_v31 = vpop.permute.xlu1 %6855 }
 0x190   : > { %11136 = vst [vmem:[#allocation10_spill] sm:$0xff] %v9110_v27  ;;  %11137 = vst [vmem:[#allocation63_spill] sm:$0xff] %v9113_v26  ;;  %v9119_v11 = vsel %vm1515_vm8, %v2789_v53, %v2790_v32  ;;  %v4161_v25 = vunpack.c.l.bf16 %v4145_v38  ;;  %v6828_v20 = vunpack.i.h.bf16 %v9037_v22  ;;  %v6827_v63 = vunpack.i.l.bf16 %v9037_v22  ;;  %v4148_v38 = vld [vmem:[#allocation2 + $0xa8] sm:$0xe]  ;;  %v3597_v26 = vld [vmem:[#allocation2 + $0xc8] sm:$0x1] }
 0x191   : > { %11138 = vst [vmem:[#allocation33_spill] sm:$0xff] %v9116_v21  ;;  %11139 = vst [vmem:[#allocation34_spill] sm:$0xff] %v9119_v11  ;;  %v2794_v34 = vrot.slane %v2682_v48, 1  ;;  %v7124_v41 = vpack.i.bf16 %v4159_v5, %v4158_v24  ;;  %v6833_v4 = vunpack.i.h.bf16 %v9040_v59  ;;  %v6832_v0 = vunpack.i.l.bf16 %v9040_v59  ;;  %v9129_v11 = vpop.permute.xlu0 %6860  ;;  %v4149_v5 = vld [vmem:[#allocation2 + $0xb4] sm:$0xe] }
 0x192   : > { %v7129_v53 = vpack.i.bf16 %v4161_v25, %v4160_v51  ;;  %v2685_v39 = vmul.f32 %v6828_v20, %v11119_v12  ;;  %v2684_v23 = vmul.f32 %v6827_v63, %v11119_v12  ;;  %v4162_v43 = vunpack.c.l.bf16 %v4146_v57 }
 0x193   : > { %7125 = vperm.xlu1 %6448, %v7124_v41   ;;  %v2686_v59 = vmul.f32 %v6832_v0, %v11119_v12  ;;  %v9136_v25 = vsel %vm1515_vm8, %v2790_v32, %v2792_v49  ;;  %v4163_v57 = vunpack.c.l.bf16 %v4147_v50  ;;  %v9139_v45 = vsel %vm1515_vm8, %v2794_v34, %v2795_v56  ;;  %v4150_v41 = vld [vmem:[#allocation2 + $0xc0] sm:$0xe] }
 0x194   : > { %11140 = vst [vmem:[#allocation20_spill] sm:$0xff] %v9136_v25  ;;  %7130 = vperm.xlu0 %6437, %v7129_v53   ;;  %v2799_v51 = vrot.slane %v2685_v39, 1  ;;  %v2797_v20 = vrot.slane %v2684_v23, 1  ;;  %11141 = vst [vmem:[#allocation12_spill] sm:$0xff] %v9139_v45  ;;  %v9142_v22 = vmul.f32 %v6827_v63, %v11120_v8  ;;  %v2687_v24 = vmul.f32 %v6833_v4, %v11119_v12  ;;  %v4151_v53 = vld [vmem:[#allocation2 + $0xcc] sm:$0xe] }
 0x195   : > { %v2800_v48 = vrot.slane %v2686_v59, 1  ;;  %v7134_v27 = vpack.i.bf16 %v4163_v57, %v4162_v43  ;;  %v4164_v49 = vunpack.c.l.bf16 %v4148_v38  ;;  %v4165_v32 = vunpack.c.l.bf16 %v4149_v5  ;;  %v3591_v23 = vld [vmem:[#allocation2 + $0xb0] sm:$0x1]  ;;  %v9156_v59 = vpop.permute.xlu1 %6865 }
 0x196   : > { %11142 = vst [vmem:[#allocation36_spill] sm:$0xff] %v9142_v22  ;;  %v9146_v21 = vsel %vm1515_vm8, %v2795_v56, %v2797_v20  ;;  %v9149_v39 = vmul.f32 %v6833_v4, %v11120_v8  ;;  %v6838_v63 = vunpack.i.h.bf16 %v9070_v6  ;;  %v6837_v34 = vunpack.i.l.bf16 %v9070_v6  ;;  %v9160_v20 = vpop.permute.xlu0 %6870 }
 0x197   : > { %11143 = vst [vmem:[#allocation35_spill] sm:$0xff] %v9146_v21  ;;  %v9152_v50 = vsel %vm1515_vm8, %v2799_v51, %v2800_v48  ;;  %7135 = vperm.xlu1 %6448, %v7134_v27   ;;  %v7139_v56 = vpack.i.bf16 %v4165_v32, %v4164_v49  ;;  %v6843_v43 = vunpack.i.h.bf16 %v9075_v47  ;;  %v6842_v38 = vunpack.i.l.bf16 %v9075_v47  ;;  %v3600_v47 = vld [vmem:[#allocation2 + $0xd4] sm:$0x1] }
 0x198   : > { %11144 = vst [vmem:[#allocation68_spill] sm:$0xff] %v9149_v39  ;;  %11145 = vst [vmem:[#allocation13_spill] sm:$0xff] %v9152_v50  ;;  %v4166_v5 = vunpack.c.l.bf16 %v4150_v41  ;;  %v9163_v4 = vmul.f32 %v6832_v0, %v11120_v8  ;;  %v2689_v51 = vmul.f32 %v6838_v63, %v11119_v12  ;;  %v2688_v57 = vmul.f32 %v6837_v34, %v11119_v12  ;;  %v3594_v50 = vld [vmem:[#allocation2 + $0xbc] sm:$0x1] }
 0x199   : > { %v4167_v6 = vunpack.c.l.bf16 %v4151_v53  ;;  %v2802_v27 = vrot.slane %v2687_v24, 1  ;;  %7140 = vperm.xlu0 %6437, %v7139_v56   ;;  %v2690_v49 = vmul.f32 %v6842_v38, %v11119_v12  ;;  %v3639_v32 = vunpack.c.l.bf16 %v3591_v23 }
 0x19a   : > { %v2805_v41 = vrot.slane %v2689_v51, 1  ;;  %v9171_v45 = vmul.f32 %v6838_v63, %v11120_v8  ;;  %v2691_v25 = vmul.f32 %v6843_v43, %v11119_v12  ;;  %v9175_v53 = vmul.f32 %v6842_v38, %v11120_v8  ;;  %v9180_v63 = vpop.permute.xlu1 %6875 }
 0x19b   : > { %v7144_v0 = vpack.i.bf16 %v4167_v6, %v4166_v5  ;;  %v2807_v34 = vrot.slane %v2690_v49, 1  ;;  %v3642_v21 = vunpack.c.l.bf16 %v3594_v50  ;;  %v2804_v24 = vrot.slane %v2688_v57, 1  ;;  %v9186_v49 = vpop.permute.xlu0 %6880 }
 0x19c   : > { %11146 = vst [vmem:[#allocation66_spill] sm:$0xff] %v9175_v53  ;;  %v6848_v56 = vunpack.i.h.bf16 %v9095_v40  ;;  %v6847_v23 = vunpack.i.l.bf16 %v9095_v40  ;;  %v6853_v51 = vunpack.i.h.bf16 %v9102_v60  ;;  %v6852_v6 = vunpack.i.l.bf16 %v9102_v60 }
 0x19d   : > { %7145 = vperm.xlu1 %6448, %v7144_v0   ;;  %v9183_v5 = vsel %vm1515_vm8, %v2805_v41, %v2807_v34  ;;  %v7149_v43 = vpack.i.bf16 %v3642_v21, %v3639_v32  ;;  %v3645_v38 = vunpack.c.l.bf16 %v3597_v26  ;;  %v9189_v50 = vsel %vm1515_vm8, %v2800_v48, %v2802_v27 }
 0x19e   : > { %11147 = vst [vmem:[#allocation37_spill] sm:$0xff] %v9183_v5  ;;  %v2693_v40 = vmul.f32 %v6848_v56, %v11119_v12  ;;  %v2692_v0 = vmul.f32 %v6847_v23, %v11119_v12  ;;  %v2809_v22 = vrot.slane %v2691_v25, 1  ;;  %v9196_v21 = vmul.f32 %v6848_v56, %v11120_v8 }
 0x19f   : > { %7150 = vperm.xlu0 %6437, %v7149_v43   ;;  %v3648_v60 = vunpack.c.l.bf16 %v3600_v47  ;;  %v9199_v26 = vsel %vm1515_vm8, %v2804_v24, %v2805_v41  ;;  %v9203_v32 = vmul.f32 %v6847_v23, %v11120_v8  ;;  %v2695_v34 = vmul.f32 %v6853_v51, %v11119_v12 }
 0x1a0   : > { %11148 = vst [vmem:[#allocation38_spill] sm:$0xff] %v9196_v21  ;;  %v2810_v27 = vrot.slane %v2692_v0, 1  ;;  %v9207_v57 = vmul.f32 %v6853_v51, %v11120_v8  ;;  %v2694_v25 = vmul.f32 %v6852_v6, %v11119_v12  ;;  %v2812_v56 = vrot.slane %v2693_v40, 1  ;;  %v9215_v0 = vpop.permute.xlu1 %6885 }
 0x1a1   : > { %11149 = vst [vmem:[#allocation72_spill] sm:$0xff] %v9203_v32  ;;  %v7154_v43 = vpack.i.bf16 %v3648_v60, %v3645_v38  ;;  %v6858_v41 = vunpack.i.h.bf16 %v9125_v31  ;;  %v6857_v24 = vunpack.i.l.bf16 %v9125_v31  ;;  %v6863_v48 = vunpack.i.h.bf16 %v9129_v11  ;;  %v9221_v38 = vpop.permute.xlu0 %6890 }
 0x1a2   : > { %11150 = vst [vmem:[#allocation69_spill] sm:$0xff] %v9207_v57  ;;  %v9211_v47 = vsel %vm1515_vm8, %v2809_v22, %v2810_v27  ;;  %v6862_v51 = vunpack.i.l.bf16 %v9129_v11  ;;  %v6868_v6 = vunpack.i.h.bf16 %v9156_v59  ;;  %v6867_v31 = vunpack.i.l.bf16 %v9156_v59 }
 0x1a3   : > { %11151 = vst [vmem:[#allocation70_spill] sm:$0xff] %v9211_v47  ;;  %7155 = vperm.xlu1 %6448, %v7154_v43   ;;  %v2697_v40 = vmul.f32 %v6858_v41, %v11119_v12  ;;  %v2696_v60 = vmul.f32 %v6857_v24, %v11119_v12  ;;  %v2815_v39 = vrot.slane %v2695_v34, 1  ;;  %v2699_v43 = vmul.f32 %v6863_v48, %v11119_v12 }
 0x1a4   : > { %v2698_v21 = vmul.f32 %v6862_v51, %v11119_v12  ;;  %v2814_v11 = vrot.slane %v2694_v25, 1  ;;  %v9231_v5 = vmul.f32 %v6857_v24, %v11120_v8  ;;  %v9234_v22 = vsel %vm1515_vm8, %v2810_v27, %v2812_v56  ;;  %v6896_v24 = vpop.permute.xlu1 %6895 }
 0x1a5   : > { %v2819_v47 = vrot.slane %v2697_v40, 1  ;;  %v2817_v53 = vrot.slane %v2696_v60, 1  ;;  %11153 = vst [vmem:[#allocation77_spill] sm:$0xff] %v9234_v22  ;;  %v9237_v41 = vmul.f32 %v6863_v48, %v11120_v8  ;;  %v2701_v34 = vmul.f32 %v6868_v6, %v11119_v12  ;;  %v6901_v56 = vpop.permute.xlu0 %6900 }
 0x1a6   : > { %11152 = vst [vmem:[#allocation40_spill] sm:$0xff] %v9231_v5  ;;  %v2820_v59 = vrot.slane %v2698_v21, 1  ;;  %v2822_v57 = vrot.slane %v2699_v43, 1  ;;  %v9244_v25 = vmul.f32 %v6862_v51, %v11120_v8  ;;  %v2700_v40 = vmul.f32 %v6867_v31, %v11119_v12 }
 0x1a7   : > { %11154 = vst [vmem:[#allocation41_spill] sm:$0xff] %v9237_v41  ;;  %v9241_v23 = vsel %vm1515_vm8, %v2815_v39, %v2817_v53  ;;  %v9251_v27 = vmul.f32 %v6868_v6, %v11120_v8  ;;  %v6873_v21 = vunpack.i.h.bf16 %v9160_v20  ;;  %v6872_v48 = vunpack.i.l.bf16 %v9160_v20 }
 0x1a8   : > { %11155 = vst [vmem:[#allocation75_spill] sm:$0xff] %v9241_v23  ;;  %11156 = vst [vmem:[#allocation73_spill] sm:$0xff] %v9244_v25  ;;  %v9248_v60 = vsel %vm1515_vm8, %v2819_v47, %v2820_v59  ;;  %v9256_v53 = vsel %vm1515_vm8, %v2814_v11, %v2815_v39  ;;  %v6878_v43 = vunpack.i.h.bf16 %v9180_v63  ;;  %v6877_v31 = vunpack.i.l.bf16 %v9180_v63  ;;  %v6906_v32 = vpop.permute.xlu1 %6905 }
 0x1a9   : > { %11157 = vst [vmem:[#allocation71_spill] sm:$0xff] %v9248_v60  ;;  %11158 = vst [vmem:[#allocation74_spill] sm:$0xff] %v9251_v27  ;;  %v2825_v60 = vrot.slane %v2701_v34, 1  ;;  %v2703_v6 = vmul.f32 %v6873_v21, %v11119_v12  ;;  %v2702_v23 = vmul.f32 %v6872_v48, %v11119_v12  ;;  %v2824_v20 = vrot.slane %v2700_v40, 1 }
 0x1aa   : > { %11159 = vst [vmem:[#allocation43_spill] sm:$0xff] %v9256_v53  ;;  %v2705_v22 = vmul.f32 %v6878_v43, %v11119_v12  ;;  %v2704_v39 = vmul.f32 %v6877_v31, %v11119_v12  ;;  %v9268_v11 = vsel %vm1515_vm8, %v2820_v59, %v2822_v57  ;;  %v6883_v47 = vunpack.i.h.bf16 %v9186_v49  ;;  %v6911_v59 = vpop.permute.xlu0 %6910 }
 0x1ab   : > { %11160 = vst [vmem:[#allocation78_spill] sm:$0xff] %v9268_v11  ;;  %v2827_v63 = vrot.slane %v2702_v23, 1  ;;  %v2829_v34 = vrot.slane %v2703_v6, 1  ;;  %v9273_v21 = vmul.f32 %v6872_v48, %v11120_v8  ;;  %v9276_v41 = vmul.f32 %v6878_v43, %v11120_v8 }
 0x1ac   : > { %v2830_v40 = vrot.slane %v2704_v39, 1  ;;  %v9282_v12 = vmul.f32 %v6877_v31, %v11120_v8  ;;  %v6882_v57 = vunpack.i.l.bf16 %v9186_v49  ;;  %v6888_v23 = vunpack.i.h.bf16 %v9215_v0 }
 0x1ad   : > { %11161 = vst [vmem:[#allocation42_spill] sm:$0xff] %v9273_v21  ;;  %11162 = vst [vmem:[#allocation46_spill] sm:$0xff] %v9276_v41  ;;  %v9279_v25 = vsel %vm1515_vm8, %v2825_v60, %v2827_v63  ;;  %v9287_v6 = vsel %vm1515_vm8, %v2824_v20, %v2825_v60  ;;  %v2832_v48 = vrot.slane %v2705_v22, 1  ;;  %v6887_v39 = vunpack.i.l.bf16 %v9215_v0  ;;  %v11168_v21 = vld [vmem:[#allocation7_spill] sm:$0xff] }
 0x1ae   : > { %11163 = vst [vmem:[#allocation79_spill] sm:$0xff] %v9279_v25  ;;  %11164 = vst [vmem:[#allocation47_spill] sm:$0xff] %v9282_v12  ;;  %v9290_v43 = vsel %vm1515_vm8, %v2829_v34, %v2830_v40  ;;  %v9294_v63 = vmul.f32 %v6883_v47, %v11120_v8  ;;  %v3017_v31 = vmul.f32 %v6882_v57, %v11120_v8  ;;  %v6893_v51 = vunpack.i.h.bf16 %v9221_v38  ;;  %v9320_v34 = vpop.permute.xlu1 %6915 }
 0x1af   : > { %11165 = vst [vmem:[#allocation49_spill] sm:$0xff] %v9287_v6  ;;  %11166 = vst [vmem:[#allocation84_spill] sm:$0xff] %v9290_v43  ;;  %v6892_v49 = vunpack.i.l.bf16 %v9221_v38  ;;  %v9300_v25 = vmul.f32 %v6888_v23, %v11120_v8  ;;  %v6898_v60 = vunpack.i.h.bf16 %v6896_v24  ;;  %v6897_v20 = vunpack.i.l.bf16 %v6896_v24 }
 0x1b0   : > { %v6903_v22 = vunpack.i.h.bf16 %v6901_v56  ;;  %v9306_v47 = vmul.f32 %v6887_v39, %v11120_v8  ;;  %v9309_v57 = vsel %vm1515_vm8, %v2830_v40, %v2832_v48  ;;  %v9312_v38 = vmul.f32 %v6893_v51, %v11120_v8  ;;  %v6002_v51 = vld [vmem:[%s10700_s1 + $0x6] sm:$0x1]  ;;  %v6921_v48 = vpop.permute.xlu0 %6920 }
 0x1b1   : > { %11167 = vst [vmem:[#allocation48_spill] sm:$0xff] %v9309_v57  ;;  %v9315_v23 = vmul.f32 %v6892_v49, %v11120_v8  ;;  %v9318_v24 = vmul.f32 %v6898_v60, %v11120_v8  ;;  %v9323_v43 = vmul.f32 %v6897_v20, %v11120_v8  ;;  %v6902_v0 = vunpack.i.l.bf16 %v6901_v56 }
 0x1b2   : > { %v9326_v39 = vmul.f32 %v6903_v22, %v11120_v8  ;;  %v6908_v40 = vunpack.i.h.bf16 %v6906_v32  ;;  %v3118_v49 = vrot.slane %v9294_v63, 2  ;;  %v3113_v41 = vrot.slane %v3017_v31, 2 }
 0x1b3   : > { %v6907_v12 = vunpack.i.l.bf16 %v6906_v32  ;;  %v3123_v57 = vrot.slane %v9306_v47, 2  ;;  %v9335_v20 = vmul.f32 %v6902_v0, %v11120_v8  ;;  %v6913_v56 = vunpack.i.h.bf16 %v6911_v59 }
 0x1b4   : > { %v9338_v22 = vmul.f32 %v6908_v40, %v11120_v8  ;;  %v6912_v27 = vunpack.i.l.bf16 %v6911_v59  ;;  %v3324_v63 = vunpack.c.l.bf16 %v6002_v51  ;;  %v6923_v32 = vunpack.i.h.bf16 %v6921_v48  ;;  %v6931_v47 = vpop.permute.xlu0 %6930 }
 0x1b5   : > { %v9342_v6 = vmul.f32 %v6907_v12, %v11120_v8  ;;  %v6926_v12 = vpop.permute.xlu1 %6925  ;;  %v9356_v51 = vmul.f32 %v6913_v56, %v11120_v8  ;;  %v6922_v31 = vunpack.i.l.bf16 %v6921_v48  ;;  %v2866_v11 = vadd.f32 %v8976_v17, %v8581_v9 }
 0x1b6   : > { %v9352_v5 = vrot.slane %v3324_v63, %v11168_v21  ;;  %v9360_v60 = vmul.f32 %v6912_v27, %v11120_v8  ;;  %v2867_v63 = vadd.f32 %v8955_v37, %v8583_v1  ;;  %v11170_v59 = vrot.slane %v8923_v62, 2 }
 0x1b7   : > { %11169 = vst [vmem:[#allocation85_spill] sm:$0xff] %v9356_v51  ;;  %v11171_v48 = vrot.slane %v8942_v10, 2  ;;  %v6928_v9 = vunpack.i.h.bf16 %v6926_v12  ;;  %v6927_v17 = vunpack.i.l.bf16 %v6926_v12  ;;  %v2868_v1 = vadd.f32 %v8963_v28, %v8586_v36 }
 0x1b8   : > { %v3490_v40 = vmul.f32 %v6923_v32, %v9352_v5  ;;  %v3115_v56 = vsel %vm1875_vm9, %v3113_v41, %v11170_v59  ;;  %v11172_v21 = vmov %v11170_v59  ;;  %v3489_v27 = vmul.f32 %v6922_v31, %v9352_v5  ;;  %v6941_v59 = vpop.permute.xlu0 %6940 }
 0x1b9   : > { %v3117_v0 = vsel %vm1875_vm9, %v11172_v21, %v11171_v48  ;;  %v3225_v53 = vadd.f32 %v3115_v56, %v2866_v11  ;;  %v2869_v37 = vadd.f32 %v8997_v15, %v8591_v2  ;;  %v11173_v41 = vrot.slane %v8970_v42, 2  ;;  %v6936_v28 = vpop.permute.xlu1 %6935 }
 0x1ba   : > { %v3226_v51 = vadd.f32 %v3117_v0, %v2867_v63  ;;  %v11174_v62 = vrot.slane %v8946_v3, 2  ;;  %v3492_v0 = vmul.f32 %v6928_v9, %v9352_v5  ;;  %v3491_v36 = vmul.f32 %v6927_v17, %v9352_v5 }
 0x1bb   : > { %v3120_v10 = vsel %vm1875_vm9, %v3118_v49, %v11173_v41  ;;  %v11175_v21 = vmov %v11173_v41  ;;  %v9388_v11 = vadd.f32 %v3489_v27, %v3225_v53  ;;  %v11176_v12 = vrot.slane %v8980_v52, 2 }
 0x1bc   : > { %v3122_v31 = vsel %vm1875_vm9, %v11175_v21, %v11174_v62  ;;  %v9390_v32 = vadd.f32 %v3490_v40, %v3226_v51  ;;  %v3227_v2 = vadd.f32 %v3120_v10, %v2868_v1  ;;  %v6933_v3 = vunpack.i.h.bf16 %v6931_v47 }
 0x1bd   : > { %v3228_v15 = vadd.f32 %v3122_v31, %v2869_v37  ;;  %v3125_v49 = vsel %vm1875_vm9, %v3123_v57, %v11176_v12  ;;  %v6932_v42 = vunpack.i.l.bf16 %v6931_v47  ;;  %v2870_v53 = vadd.f32 %v9030_v13, %v8602_v58 }
 0x1be   : > { %v2871_v40 = vadd.f32 %v8992_v54, %v8644_v14  ;;  %v11177_v51 = vrot.slane %v8987_v33, 2  ;;  %v11178_v63 = vmov %v11176_v12  ;;  %v9406_v48 = vadd.f32 %v3491_v36, %v3227_v2  ;;  %v11185_v12 = vld [vmem:[#allocation51_spill] sm:$0xff] }
 0x1bf   : > { %v9408_v27 = vadd.f32 %v3492_v0, %v3228_v15  ;;  %v3494_v57 = vmul.f32 %v6933_v3, %v9352_v5  ;;  %v6938_v9 = vunpack.i.h.bf16 %v6936_v28  ;;  %v3229_v47 = vadd.f32 %v3125_v49, %v2870_v53 }
 0x1c0   : > { %v3127_v56 = vsel %vm1875_vm9, %v11178_v63, %v11177_v51  ;;  %v3493_v58 = vmul.f32 %v6932_v42, %v9352_v5  ;;  %v6937_v13 = vunpack.i.l.bf16 %v6936_v28  ;;  %v2872_v33 = vadd.f32 %v9022_v55, %v8646_v7  ;;  %v6946_v55 = vpop.permute.xlu1 %6945  ;;  %v11188_v51 = vld [vmem:[#allocation21_spill] sm:$0xff]  ;;  %v11189_v63 = vld [vmem:[#allocation31_spill] sm:$0xff] }
 0x1c1   : > { %v3230_v17 = vadd.f32 %v3127_v56, %v2871_v40  ;;  %v3496_v14 = vmul.f32 %v6938_v9, %v9352_v5  ;;  %v2873_v52 = vadd.f32 %v9043_v16, %v8650_v61  ;;  %v11179_v54 = vrot.slane %v9014_v30, 2  ;;  %v11191_v9 = vld [vmem:[#allocation54_spill] sm:$0xff] }
 0x1c2   : > { %v11180_v1 = vrot.slane %v9300_v25, 2  ;;  %v9422_v41 = vadd.f32 %v3493_v58, %v3229_v47  ;;  %v11181_v62 = vrot.slane %v9011_v29, 2  ;;  %v3495_v7 = vmul.f32 %v6937_v13, %v9352_v5  ;;  %v6951_v25 = vpop.permute.xlu0 %6950  ;;  %v11192_v47 = vld [vmem:[#allocation67_spill] sm:$0xff] }
 0x1c3   : > { %v9424_v10 = vadd.f32 %v3494_v57, %v3230_v17  ;;  %v11182_v21 = vmov %v11179_v54  ;;  %v6943_v0 = vunpack.i.h.bf16 %v6941_v59  ;;  %v6942_v36 = vunpack.i.l.bf16 %v6941_v59  ;;  %v11190_v57 = vld [vmem:[#allocation24_spill] sm:$0xff] }
 0x1c4   : > { %v3130_v37 = vsel %vm1875_vm9, %v11180_v1, %v11179_v54  ;;  %v3132_v31 = vsel %vm1875_vm9, %v11182_v21, %v11181_v62  ;;  %v2874_v28 = vadd.f32 %v9046_v35, %v8652_v44  ;;  %v2875_v2 = vadd.f32 %v9053_v19, %v8664_v46 }
 0x1c5   : > { %v3231_v61 = vadd.f32 %v3130_v37, %v2872_v33  ;;  %v3232_v16 = vadd.f32 %v3132_v31, %v2873_v52  ;;  %v11183_v29 = vrot.slane %v9017_v18, 2  ;;  %v11184_v30 = vrot.slane %v9315_v23, 2  ;;  %v6956_v31 = vpop.permute.xlu1 %6955 }
 0x1c6   : > { %v11186_v49 = vrot.slane %v11185_v12, 2  ;;  %v3498_v44 = vmul.f32 %v6943_v0, %v9352_v5  ;;  %v3497_v46 = vmul.f32 %v6942_v36, %v9352_v5  ;;  %v6948_v40 = vunpack.i.h.bf16 %v6946_v55  ;;  %v11203_v12 = vld [vmem:[#allocation39_spill] sm:$0xff] }
 0x1c7   : > { %v3135_v15 = vsel %vm1875_vm9, %v11184_v30, %v11183_v29  ;;  %v11187_v3 = vmov %v11183_v29  ;;  %v9446_v59 = vadd.f32 %v3495_v7, %v3231_v61  ;;  %v9448_v53 = vadd.f32 %v3496_v14, %v3232_v16  ;;  %v11195_v14 = vld [vmem:[#allocation61_spill] sm:$0xff]  ;;  %v11201_v29 = vld [vmem:[#allocation26_spill] sm:$0xff] }
 0x1c8   : > { %v3137_v42 = vsel %vm1875_vm9, %v11187_v3, %v11186_v49  ;;  %v3233_v19 = vadd.f32 %v3135_v15, %v2874_v28  ;;  %v6947_v23 = vunpack.i.l.bf16 %v6946_v55  ;;  %v2876_v56 = vadd.f32 %v11189_v63, %v11188_v51  ;;  %v6961_v28 = vpop.permute.xlu0 %6960  ;;  %v11202_v30 = vld [vmem:[#allocation62_spill] sm:$0xff]  ;;  %v11204_v49 = vld [vmem:[#allocation19_spill] sm:$0xff] }
 0x1c9   : > { %v3234_v35 = vadd.f32 %v3137_v42, %v2875_v2  ;;  %v2877_v18 = vadd.f32 %v11191_v9, %v11190_v57  ;;  %v11193_v17 = vrot.slane %v11192_v47, 2  ;;  %v11194_v58 = vrot.slane %v9312_v38, 2  ;;  %v11198_v38 = vld [vmem:[#allocation32_spill] sm:$0xff]  ;;  %v11205_v42 = vld [vmem:[#allocation65_spill] sm:$0xff]  ;;  %v11208_v9 = vld [vmem:[#allocation58_spill] sm:$0xff] }
 0x1ca   : > { %v11196_v33 = vrot.slane %v11195_v14, 2  ;;  %v9466_v1 = vadd.f32 %v3497_v46, %v3233_v19  ;;  %v3500_v62 = vmul.f32 %v6948_v40, %v9352_v5  ;;  %v3499_v21 = vmul.f32 %v6947_v23, %v9352_v5  ;;  %v11212_v14 = vld [vmem:[#allocation63_spill] sm:$0xff] }
 0x1cb   : > { %v3140_v13 = vsel %vm1875_vm9, %v11194_v58, %v11193_v17  ;;  %v11197_v52 = vmov %v11193_v17  ;;  %v9468_v37 = vadd.f32 %v3498_v44, %v3234_v35  ;;  %v11199_v61 = vrot.slane %v11198_v38, 2  ;;  %v11210_v17 = vld [vmem:[#allocation23_spill] sm:$0xff]  ;;  %v11211_v58 = vld [vmem:[#allocation20_spill] sm:$0xff] }
 0x1cc   : > { %v3142_v54 = vsel %vm1875_vm9, %v11197_v52, %v11196_v33  ;;  %v3235_v7 = vadd.f32 %v3140_v13, %v2876_v56  ;;  %v11200_v16 = vrot.slane %v9323_v43, 2  ;;  %v6953_v36 = vunpack.i.h.bf16 %v6951_v25 }
 0x1cd   : > { %v3236_v55 = vadd.f32 %v3142_v54, %v2877_v18  ;;  %v6952_v2 = vunpack.i.l.bf16 %v6951_v25  ;;  %v2878_v15 = vadd.f32 %v11202_v30, %v11201_v29  ;;  %v2879_v3 = vadd.f32 %v11204_v49, %v11203_v12  ;;  %v11209_v18 = vld [vmem:[#allocation34_spill] sm:$0xff]  ;;  %v11218_v30 = vld [vmem:[#allocation15_spill] sm:$0xff] }
 0x1ce   : > { %v3145_v0 = vsel %vm1875_vm9, %v11200_v16, %v11199_v61  ;;  %v11206_v44 = vrot.slane %v11205_v42, 2  ;;  %v11207_v46 = vmov %v11199_v61  ;;  %v9486_v35 = vadd.f32 %v3499_v21, %v3235_v7  ;;  %v11215_v7 = vld [vmem:[#allocation10_spill] sm:$0xff]  ;;  %v6966_v16 = vpop.permute.xlu1 %6965 }
 0x1cf   : > { %v9488_v43 = vadd.f32 %v3500_v62, %v3236_v55  ;;  %v3502_v40 = vmul.f32 %v6953_v36, %v9352_v5  ;;  %v6958_v23 = vunpack.i.h.bf16 %v6956_v31  ;;  %v3237_v25 = vadd.f32 %v3145_v0, %v2878_v15  ;;  %v11219_v15 = vld [vmem:[#allocation12_spill] sm:$0xff]  ;;  %v11220_v49 = vld [vmem:[#allocation22_spill] sm:$0xff] }
 0x1d0   : > { %v3147_v19 = vsel %vm1875_vm9, %v11207_v46, %v11206_v44  ;;  %v3501_v63 = vmul.f32 %v6952_v2, %v9352_v5  ;;  %v6957_v56 = vunpack.i.l.bf16 %v6956_v31  ;;  %v2880_v47 = vadd.f32 %v11209_v18, %v11208_v9  ;;  %v11222_v44 = vld [vmem:[#allocation33_spill] sm:$0xff] }
 0x1d1   : > { %v3238_v51 = vadd.f32 %v3147_v19, %v2879_v3  ;;  %v3504_v57 = vmul.f32 %v6958_v23, %v9352_v5  ;;  %v2881_v13 = vadd.f32 %v11211_v58, %v11210_v17  ;;  %v11213_v33 = vrot.slane %v11212_v14, 2  ;;  %v11221_v3 = vld [vmem:[#allocation35_spill] sm:$0xff]  ;;  %v11225_v23 = vld [vmem:[#allocation36_spill] sm:$0xff]  ;;  %v11229_v14 = vld [vmem:[#allocation13_spill] sm:$0xff] }
 0x1d2   : > { %v11214_v52 = vrot.slane %v9318_v24, 2  ;;  %v9502_v62 = vadd.f32 %v3501_v63, %v3237_v25  ;;  %v11216_v31 = vrot.slane %v11215_v7, 2  ;;  %v3503_v61 = vmul.f32 %v6957_v56, %v9352_v5  ;;  %v9512_v24 = vpop.permute.xlu0 %6970 }
 0x1d3   : > { %v9504_v21 = vadd.f32 %v3502_v40, %v3238_v51  ;;  %v11217_v55 = vmov %v11213_v33  ;;  %v6963_v2 = vunpack.i.h.bf16 %v6961_v28  ;;  %v6962_v29 = vunpack.i.l.bf16 %v6961_v28 }
 0x1d4   : > { %v3150_v54 = vsel %vm1875_vm9, %v11214_v52, %v11213_v33  ;;  %v3152_v38 = vsel %vm1875_vm9, %v11217_v55, %v11216_v31  ;;  %v2882_v12 = vadd.f32 %v11219_v15, %v11218_v30  ;;  %v2883_v42 = vadd.f32 %v11221_v3, %v11220_v49  ;;  %v11230_v52 = vld [vmem:[#allocation44_spill] sm:$0xff] }
 0x1d5   : > { %v3239_v0 = vadd.f32 %v3150_v54, %v2880_v47  ;;  %v3240_v36 = vadd.f32 %v3152_v38, %v2881_v13  ;;  %v11223_v46 = vrot.slane %v11222_v44, 2  ;;  %v11224_v19 = vrot.slane %v9335_v20, 2  ;;  %v11228_v13 = vld [vmem:[#allocation17_spill] sm:$0xff]  ;;  %v11233_v55 = vld [vmem:[#allocation68_spill] sm:$0xff] }
 0x1d6   : > { %v11226_v25 = vrot.slane %v11225_v23, 2  ;;  %v3506_v9 = vmul.f32 %v6963_v2, %v9352_v5  ;;  %v3505_v18 = vmul.f32 %v6962_v29, %v9352_v5  ;;  %v6968_v58 = vunpack.i.h.bf16 %v6966_v16  ;;  %v9554_v29 = vpop.permute.xlu1 %6975  ;;  %v6981_v3 = vpop.permute.xlu0 %6980  ;;  %v11241_v23 = vld [vmem:[#allocation37_spill] sm:$0xff] }
 0x1d7   : > { %v3155_v40 = vsel %vm1875_vm9, %v11224_v19, %v11223_v46  ;;  %v11227_v51 = vmov %v11223_v46  ;;  %v9528_v63 = vadd.f32 %v3503_v61, %v3239_v0  ;;  %v9530_v56 = vadd.f32 %v3504_v57, %v3240_v36  ;;  %v11239_v46 = vld [vmem:[#allocation14_spill] sm:$0xff] }
 0x1d8   : > { %v3157_v28 = vsel %vm1875_vm9, %v11227_v51, %v11226_v25  ;;  %v3241_v47 = vadd.f32 %v3155_v40, %v2882_v12  ;;  %v6967_v20 = vunpack.i.l.bf16 %v6966_v16  ;;  %v2884_v33 = vadd.f32 %v11229_v14, %v11228_v13  ;;  %v11240_v40 = vld [vmem:[#allocation16_spill] sm:$0xff]  ;;  %v11242_v51 = vld [vmem:[#allocation66_spill] sm:$0xff] }
 0x1d9   : > { %v3242_v17 = vadd.f32 %v3157_v28, %v2883_v42  ;;  %v2885_v54 = vadd.f32 %v9189_v50, %v11230_v52  ;;  %v11231_v7 = vrot.slane %v9163_v4, 2  ;;  %v11232_v31 = vrot.slane %v9326_v39, 2  ;;  %v11246_v52 = vld [vmem:[#allocation30_spill] sm:$0xff] }
 0x1da   : > { %v11234_v38 = vrot.slane %v11233_v55, 2  ;;  %v9548_v36 = vadd.f32 %v3505_v18, %v3241_v47  ;;  %v3508_v2 = vmul.f32 %v6968_v58, %v9352_v5  ;;  %v3507_v50 = vmul.f32 %v6967_v20, %v9352_v5 }
 0x1db   : > { %v3160_v57 = vsel %vm1875_vm9, %v11232_v31, %v11231_v7  ;;  %v11235_v61 = vmov %v11231_v7  ;;  %v9550_v16 = vadd.f32 %v3506_v9, %v3242_v17  ;;  %v11236_v15 = vrot.slane %v9171_v45, 2  ;;  %v11248_v31 = vld [vmem:[#allocation18_spill] sm:$0xff] }
 0x1dc   : > { %v3162_v0 = vsel %vm1875_vm9, %v11235_v61, %v11234_v38  ;;  %v3243_v30 = vadd.f32 %v3160_v57, %v2884_v33  ;;  %v11237_v12 = vrot.slane %v9342_v6, 2  ;;  %v6973_v49 = vunpack.i.h.bf16 %v9512_v24  ;;  %v11249_v57 = vld [vmem:[#allocation77_spill] sm:$0xff]  ;;  %v11250_v38 = vld [vmem:[#allocation72_spill] sm:$0xff] }
 0x1dd   : > { %v3244_v39 = vadd.f32 %v3162_v0, %v2885_v54  ;;  %v11238_v42 = vunpack.i.h.bf16 %v9320_v34  ;;  %v2886_v19 = vadd.f32 %v9199_v26, %v11239_v46  ;;  %v2887_v25 = vadd.f32 %v11241_v23, %v11240_v40  ;;  %v11247_v54 = vld [vmem:[#allocation70_spill] sm:$0xff]  ;;  %v11257_v40 = vld [vmem:[#allocation27_spill] sm:$0xff] }
 0x1de   : > { %v3165_v4 = vsel %vm1875_vm9, %v11237_v12, %v11236_v15  ;;  %v11243_v28 = vrot.slane %v11242_v51, 2  ;;  %v11244_v6 = vmov %v11236_v15  ;;  %v9576_v18 = vadd.f32 %v3507_v50, %v3243_v30  ;;  %v11254_v30 = vld [vmem:[#allocation38_spill] sm:$0xff]  ;;  %v11258_v23 = vld [vmem:[#allocation43_spill] sm:$0xff]  ;;  %v11259_v51 = vld [vmem:[#allocation60_spill] sm:$0xff] }
 0x1df   : > { %v9565_v44 = vmul.f32 %v11238_v42, %v11120_v8  ;;  %v9578_v47 = vadd.f32 %v3508_v2, %v3244_v39  ;;  %v3510_v17 = vmul.f32 %v6973_v49, %v9352_v5  ;;  %v6978_v58 = vunpack.i.h.bf16 %v9554_v29  ;;  %v11253_v2 = vld [vmem:[#allocation85_spill] sm:$0xff] }
 0x1e0   : > { %v3167_v9 = vsel %vm1875_vm9, %v11244_v6, %v11243_v28  ;;  %v3173_v20 = vrot.slane %v9360_v60, 2  ;;  %v11245_v26 = vunpack.i.l.bf16 %v9320_v34  ;;  %v9586_v14 = vadd.f32 %v3165_v4, %v2886_v19  ;;  %v6986_v4 = vpop.permute.xlu1 %6985  ;;  %v6991_v19 = vpop.permute.xlu0 %6990  ;;  %v11261_v6 = vld [vmem:[#allocation69_spill] sm:$0xff] }
 0x1e1   : > { %v3246_v33 = vadd.f32 %v3167_v9, %v2887_v25  ;;  %v3512_v45 = vmul.f32 %v6978_v58, %v9352_v5  ;;  %v2888_v7 = vadd.f32 %v11247_v54, %v11246_v52  ;;  %v2889_v55 = vadd.f32 %v11249_v57, %v11248_v31  ;;  %v11263_v58 = vld [vmem:[#allocation40_spill] sm:$0xff] }
 0x1e2   : > { %v3059_v13 = vmul.f32 %v11245_v26, %v11120_v8  ;;  %v11251_v61 = vrot.slane %v11250_v38, 2  ;;  %v11252_v0 = vrot.slane %v9338_v22, 2  ;;  %v3178_v34 = vrot.slane %v11253_v2, 2  ;;  %v11268_v2 = vld [vmem:[#allocation50_spill] sm:$0xff] }
 0x1e3   : > { %v3188_v8 = vrot.slane %v9565_v44, 2  ;;  %v9600_v50 = vadd.f32 %v3510_v17, %v3246_v33  ;;  %v11255_v39 = vrot.slane %v11254_v30, 2  ;;  %v6983_v46 = vunpack.i.h.bf16 %v6981_v3  ;;  %v11260_v44 = vld [vmem:[#allocation75_spill] sm:$0xff]  ;;  %v11269_v30 = vld [vmem:[#allocation78_spill] sm:$0xff] }
 0x1e4   : > { %v3170_v60 = vsel %vm1875_vm9, %v11252_v0, %v11251_v61  ;;  %v11256_v15 = vmov %v11251_v61  ;;  %v6982_v22 = vunpack.i.l.bf16 %v6981_v3  ;;  %v2890_v25 = vadd.f32 %v11258_v23, %v11257_v40  ;;  %v11266_v0 = vld [vmem:[#allocation45_spill] sm:$0xff] }
 0x1e5   : > { %v3172_v12 = vsel %vm1875_vm9, %v11256_v15, %v11255_v39  ;;  %v9607_v49 = vadd.f32 %v3170_v60, %v2888_v7  ;;  %v2891_v28 = vadd.f32 %v11260_v44, %v11259_v51  ;;  %v11262_v9 = vrot.slane %v11261_v6, 2  ;;  %v11267_v60 = vld [vmem:[#allocation71_spill] sm:$0xff]  ;;  %v11270_v15 = vld [vmem:[#allocation73_spill] sm:$0xff]  ;;  %v6996_v51 = vpop.permute.xlu1 %6995  ;;  %v11276_v6 = vld [vmem:[#allocation74_spill] sm:$0xff] }
 0x1e6   : > { %v3248_v42 = vadd.f32 %v3172_v12, %v2889_v55  ;;  %v11264_v26 = vrot.slane %v11263_v58, 2  ;;  %v3183_v54 = vrot.slane %v3059_v13, 2  ;;  %v3514_v3 = vmul.f32 %v6983_v46, %v9352_v5  ;;  %v9646_v58 = vpop.permute.xlu0 %7000 }
 0x1e7   : > { %v3175_v17 = vsel %vm1875_vm9, %v3173_v20, %v11262_v9  ;;  %v11265_v33 = vmov %v11262_v9  ;;  %v3513_v31 = vmul.f32 %v6982_v22, %v9352_v5  ;;  %v6988_v38 = vunpack.i.h.bf16 %v6986_v4 }
 0x1e8   : > { %v3177_v52 = vsel %vm1875_vm9, %v11265_v33, %v11264_v26  ;;  %v9621_v7 = vadd.f32 %v3512_v45, %v3248_v42  ;;  %v3249_v57 = vadd.f32 %v3175_v17, %v2890_v25  ;;  %v6987_v61 = vunpack.i.l.bf16 %v6986_v4  ;;  %v11272_v45 = vld [vmem:[#allocation41_spill] sm:$0xff]  ;;  %v11278_v33 = vld [vmem:[#allocation28_spill] sm:$0xff] }
 0x1e9   : > { %v3250_v55 = vadd.f32 %v3177_v52, %v2891_v28  ;;  %v2892_v20 = vadd.f32 %v11267_v60, %v11266_v0  ;;  %v2893_v39 = vadd.f32 %v11269_v30, %v11268_v2  ;;  %v11271_v12 = vrot.slane %v11270_v15, 2  ;;  %v11279_v52 = vld [vmem:[#allocation49_spill] sm:$0xff] }
 0x1ea   : > { %v11273_v42 = vrot.slane %v11272_v45, 2  ;;  %v9637_v40 = vadd.f32 %v3513_v31, %v3249_v57  ;;  %v3516_v4 = vmul.f32 %v6988_v38, %v9352_v5  ;;  %v3515_v25 = vmul.f32 %v6987_v61, %v9352_v5  ;;  %v11281_v57 = vld [vmem:[#allocation79_spill] sm:$0xff]  ;;  %v11282_v38 = vld [vmem:[#allocation42_spill] sm:$0xff]  ;;  %v6004_v45 = vld [vmem:[%s10700_s1 + $0x8] sm:$0x1] }
 0x1eb   : > { %v3180_v13 = vsel %vm1875_vm9, %v3178_v34, %v11271_v12  ;;  %v11274_v46 = vmov %v11271_v12  ;;  %v9639_v23 = vadd.f32 %v3514_v3, %v3250_v55  ;;  %v11277_v9 = vrot.slane %v11276_v6, 2  ;;  %v11280_v3 = vld [vmem:[#allocation59_spill] sm:$0xff] }
 0x1ec   : > { %v3182_v22 = vsel %vm1875_vm9, %v11274_v46, %v11273_v42  ;;  %v3251_v44 = vadd.f32 %v3180_v13, %v2892_v20  ;;  %v6993_v17 = vunpack.i.h.bf16 %v6991_v19  ;;  %v6992_v26 = vunpack.i.l.bf16 %v6991_v19  ;;  %v6003_v13 = vld [vmem:[%s10700_s1 + $0x7] sm:$0x1]  ;;  %v11286_v46 = vld [vmem:[#allocation29_spill] sm:$0xff] }
 0x1ed   : > { %11275 = vst [vmem:[#allocation76_spill] sm:$0xff] %v9639_v23  ;;  %v3252_v28 = vadd.f32 %v3182_v22, %v2893_v39  ;;  %v3185_v34 = vsel %vm1875_vm9, %v3183_v54, %v11277_v9  ;;  %v2894_v31 = vadd.f32 %v11279_v52, %v11278_v33  ;;  %v2895_v55 = vadd.f32 %v11281_v57, %v11280_v3  ;;  %v11287_v22 = vld [vmem:[#allocation84_spill] sm:$0xff]  ;;  %v11290_v6 = vld [vmem:[#allocation47_spill] sm:$0xff]  ;;  %v9687_v57 = vpop.permute.xlu1 %7005 }
 0x1ee   : > { %v11283_v0 = vrot.slane %v11282_v38, 2  ;;  %v11284_v61 = vmov %v11277_v9  ;;  %v9657_v20 = vadd.f32 %v3515_v25, %v3251_v44  ;;  %v3518_v54 = vmul.f32 %v6993_v17, %v9352_v5  ;;  %v11288_v25 = vld [vmem:[#allocation64_spill] sm:$0xff] }
 0x1ef   : > { %v9659_v2 = vadd.f32 %v3516_v4, %v3252_v28  ;;  %v6998_v30 = vunpack.i.h.bf16 %v6996_v51  ;;  %v3253_v19 = vadd.f32 %v3185_v34, %v2894_v31  ;;  %v3517_v15 = vmul.f32 %v6992_v26, %v9352_v5  ;;  %v11289_v44 = vld [vmem:[#allocation48_spill] sm:$0xff]  ;;  %v11294_v26 = vld [vmem:[#allocation46_spill] sm:$0xff] }
 0x1f0   : > { %v3187_v60 = vsel %vm1875_vm9, %v11284_v61, %v11283_v0  ;;  %v6997_v12 = vunpack.i.l.bf16 %v6996_v51  ;;  %v2896_v4 = vadd.f32 %v11287_v22, %v11286_v46  ;;  %v2897_v28 = vadd.f32 %v11289_v44, %v11288_v25 }
 0x1f1   : > { %11285 = vst [vmem:[#allocation80_spill] sm:$0xff] %v9659_v2  ;;  %v3254_v39 = vadd.f32 %v3187_v60, %v2895_v55  ;;  %v3520_v42 = vmul.f32 %v6998_v30, %v9352_v5  ;;  %v11291_v9 = vrot.slane %v11290_v6, 2  ;;  %v9677_v34 = vadd.f32 %v3517_v15, %v3253_v19  ;;  %v7011_v60 = vpop.permute.xlu0 %7010  ;;  %v11299_v19 = vld [vmem:[#allocation7_spill] sm:$0xff]  ;;  %v9710_v25 = vpop.permute.xlu1 %7015 }
 0x1f2   : > { %v11295_v33 = vrot.slane %v11294_v26, 2  ;;  %v3519_v3 = vmul.f32 %v6997_v12, %v9352_v5  ;;  %v3651_v0 = vunpack.c.l.bf16 %v6003_v13  ;;  %v4170_v61 = vunpack.c.l.bf16 %v6004_v45 }
 0x1f3   : > { %v3190_v51 = vsel %vm1875_vm9, %v3188_v8, %v11291_v9  ;;  %11292 = vst [vmem:[#allocation81_spill] sm:$0xff] %v9677_v34  ;;  %v9679_v17 = vadd.f32 %v3518_v54, %v3254_v39  ;;  %v11296_v52 = vmov %v11291_v9  ;;  %v7003_v8 = vunpack.i.h.bf16 %v9646_v58 }
 0x1f4   : > { %v3192_v31 = vsel %vm1875_vm9, %v11296_v52, %v11295_v33  ;;  %v3255_v55 = vadd.f32 %v3190_v51, %v2896_v4  ;;  %v9695_v39 = vrot.slane %v3651_v0, %v11299_v19  ;;  %v9698_v15 = vrot.slane %v4170_v61, %v11299_v19 }
 0x1f5   : > { %11293 = vst [vmem:[#allocation53_spill] sm:$0xff] %v9679_v17  ;;  %v3256_v38 = vadd.f32 %v3192_v31, %v2897_v28  ;;  %v7007_v12 = vunpack.i.l.bf16 %v9687_v57  ;;  %v7013_v46 = vunpack.i.h.bf16 %v7011_v60  ;;  %v6972_v13 = vunpack.i.l.bf16 %v9512_v24 }
 0x1f6   : > { %v9690_v30 = vadd.f32 %v3519_v3, %v3255_v55  ;;  %11300 = vst [vmem:[#allocation82_spill] sm:$0xff] %v9695_v39  ;;  %v9702_v22 = vmul.f32 %v7003_v8, %v9695_v39  ;;  %v9706_v45 = vmul.f32 %v7003_v8, %v9698_v15  ;;  %v7012_v26 = vunpack.i.l.bf16 %v7011_v60  ;;  %v9721_v3 = vpop.permute.xlu0 %7020  ;;  %v9733_v60 = vld [vmem:[%s10701_s2] ss:$0 sm:$0xff] }
 0x1f7   : > { %v9692_v54 = vadd.f32 %v3520_v42, %v3256_v38  ;;  %v3898_v42 = vmul.f32 %v7007_v12, %v9695_v39  ;;  %v4257_v4 = vmul.f32 %v7007_v12, %v9698_v15  ;;  %v3901_v44 = vmul.f32 %v7013_v46, %v9695_v39 }
 0x1f8   : > { %11297 = vst [vmem:[#allocation83_spill] sm:$0xff] %v9690_v30  ;;  %v10789_v28 = vrot.slane %v9702_v22, 1  ;;  %v4260_v51 = vmul.f32 %v7013_v46, %v9698_v15  ;;  %v7018_v24 = vunpack.i.h.bf16 %v9710_v25  ;;  %v3509_v33 = vmul.f32 %v6972_v13, %v9352_v5 }
 0x1f9   : > { %11298 = vst [vmem:[#allocation52_spill] sm:$0xff] %v9692_v54  ;;  %v3995_v6 = vrot.slane %v3898_v42, 1  ;;  %v4354_v9 = vrot.slane %v4257_v4, 2  ;;  %v10788_v52 = vrot.slane %v9706_v45, 2  ;;  %v4000_v38 = vrot.slane %v3901_v44, 1 }
 0x1fa   : > { %v9725_v0 = vmul.f32 %v7012_v26, %v9695_v39  ;;  %v9728_v61 = vmul.f32 %v7012_v26, %v9698_v15  ;;  %v4359_v19 = vrot.slane %v4260_v51, 2  ;;  %v9739_v12 = vmul.f32 %v7018_v24, %v9695_v39 }
 0x1fb   : > { %v3996_v31 = vsel %vm1515_vm8, %v10789_v28, %v3995_v6  ;;  %v4355_v8 = vsel %vm1875_vm9, %v10788_v52, %v4354_v9  ;;  %v7022_v42 = vunpack.i.l.bf16 %v9721_v3  ;;  %v9745_v4 = vadd.f32 %v3509_v33, %v9586_v14  ;;  %v9751_v6 = vld [vmem:[%s10702_s3] ss:$0 sm:$0xff]  ;;  %v7026_v9 = vpop.permute.xlu1 %7025 }
 0x1fc   : > { %v4105_v55 = vadd.f32 %v3996_v31, %v9390_v32  ;;  %v10790_v46 = vrot.slane %v9725_v0, 1  ;;  %v10791_v13 = vrot.slane %v9728_v61, 2  ;;  %v6977_v44 = vunpack.i.l.bf16 %v9554_v29 }
 0x1fd   : > { %v7002_v51 = vunpack.i.l.bf16 %v9646_v58  ;;  %v7242_v14 = vmov 1983009808   ;;  %v4263_v28 = vmul.f32 %v7022_v42, %v9698_v15 }
 0x1fe   : > { %v4464_v32 = vadd.f32 %v4355_v8, %v4105_v55  ;;  %v4001_v31 = vsel %vm1515_vm8, %v10790_v46, %v4000_v38  ;;  %v9759_v55 = vmul.f32 %v7018_v24, %v9698_v15  ;;  %v4672_v33 = vunpack.c.l.s4 %v7242_v14 }
 0x1ff   : > { %v4107_v29 = vadd.f32 %v4001_v31, %v9408_v27  ;;  %v4360_v8 = vsel %vm1875_vm9, %v10791_v13, %v4359_v19  ;;  %v7028_v38 = vunpack.i.h.bf16 %v7026_v9  ;;  %v7008_v24 = vunpack.i.h.bf16 %v9687_v57 }
 0x200   : > { %v4503_v26 = vmul.f32 %v9733_v60, %v4464_v32  ;;  %11301 = vst [vmem:[#allocation56_spill] sm:$0xff] %v9759_v55  ;;  %v3904_v32 = vmul.f32 %v7022_v42, %v9695_v39  ;;  %v7027_v14 = vunpack.i.l.bf16 %v7026_v9  ;;  %v10792_v27 = vrot.slane %v9759_v55, 2 }
 0x201   : > { %v4466_v46 = vadd.f32 %v4360_v8, %v4107_v29  ;;  %v4364_v17 = vrot.slane %v4263_v28, 2  ;;  %v3907_v13 = vmul.f32 %v7028_v38, %v9695_v39  ;;  %v3896_v42 = vmul.f32 %v7002_v51, %v9695_v39 }
 0x202   : > { %v4542_v58 = vadd.f32 %v9751_v6, %v4503_v26  ;;  %v4005_v31 = vrot.slane %v3904_v32, 1  ;;  %v4266_v26 = vmul.f32 %v7028_v38, %v9698_v15  ;;  %v9775_v52 = vmul.f32 %v7027_v14, %v9695_v39 }
 0x203   : > { %v4505_v19 = vmul.f32 %v9733_v60, %v4466_v46  ;;  %v4673_v23 = vunpack.c.0.s8 %v4672_v33  ;;  %v11302_v57 = vrot.slane %v9739_v12, 1  ;;  %v9782_v29 = vmul.f32 %v7027_v14, %v9698_v15 }
 0x204   : > { %v4574_v54 = vmax.f32 %v4542_v58, 0.0  ;;  %v3511_v28 = vmul.f32 %v6977_v44, %v9352_v5  ;;  %v4010_v58 = vrot.slane %v3907_v13, 1  ;;  %v4365_v32 = vsel %vm1875_vm9, %v10792_v27, %v4364_v17  ;;  %v9794_v44 = vpop.permute.xlu0 %7030 }
 0x205   : > { %v4006_v9 = vsel %vm1515_vm8, %v11302_v57, %v4005_v31  ;;  %11303 = vst [vmem:[#allocation55_spill] sm:$0xff] %v9782_v29  ;;  %v4544_v46 = vadd.f32 %v9751_v6, %v4505_v19  ;;  %v4369_v51 = vrot.slane %v4266_v26, 2  ;;  %v10794_v33 = vrot.slane %v9775_v52, 1  ;;  %v9803_v26 = vpop.permute.xlu1 %7035 }
 0x206   : > { %v4109_v8 = vadd.f32 %v4006_v9, %v9424_v10  ;;  %v10793_v38 = vrot.slane %v9782_v29, 2  ;;  %v3899_v31 = vmul.f32 %v7008_v24, %v9695_v39  ;;  %v4609_v14 = vsel %vm4605_vm10, %v4574_v54, -inf  ;;  %v11304_v10 = vld [vmem:[#allocation6_spill] sm:$0xff] }
 0x207   : > { %v4576_v57 = vmax.f32 %v4544_v46, 0.0  ;;  %v3992_v19 = vrot.slane %v3896_v42, 1  ;;  %v9797_v13 = vsub.s32 %v4673_v23, %v11304_v10  ;;  %v7017_v9 = vunpack.i.l.bf16 %v9710_v25 }
 0x208   : > { %v4468_v5 = vadd.f32 %v4365_v32, %v4109_v8  ;;  %v4011_v17 = vsel %vm1515_vm8, %v10794_v33, %v4010_v58  ;;  %v7023_v54 = vunpack.i.h.bf16 %v9721_v3  ;;  %v9810_v42 = vadd.f32 %v3511_v28, %v9607_v49 }
 0x209   : > { %v4610_v24 = vsel %vm4605_vm10, %v4576_v57, -inf  ;;  %v4111_v8 = vadd.f32 %v4011_v17, %v9448_v53  ;;  %v4370_v25 = vsel %vm1875_vm9, %v10793_v38, %v4369_v51  ;;  %v7033_v58 = vunpack.i.h.bf16 %v9794_v44 }
 0x20a   : > { %v4507_v46 = vmul.f32 %v9733_v60, %v4468_v5  ;;  %v4611_v23 = vmax.f32 %v4609_v14, %v4610_v24  ;;  %v7037_v3 = vunpack.i.l.bf16 %v9803_v26  ;;  %v11305_v5 = vrot.slane %v9702_v22, 1 }
 0x20b   : > { %v4470_v57 = vadd.f32 %v4370_v25, %v4111_v8  ;;  %v3997_v10 = vrot.slane %v3899_v31, 1  ;;  %v3902_v14 = vmul.f32 %v7017_v9, %v9695_v39  ;;  %v9824_v51 = vmul.f32 %v7023_v54, %v9695_v39 }
 0x20c   : > { %v4546_v32 = vadd.f32 %v9751_v6, %v4507_v46  ;;  %v3994_v53 = vsel %vm1515_vm8, %v3992_v19, %v11305_v5  ;;  %v4687_v49 = vcombine.high %v4611_v23, %v4611_v23  ;;  %v4694_v28 = vrot.slane %v4611_v23, %v9797_v13 }
 0x20d   : > { %v4509_v17 = vmul.f32 %v9733_v60, %v4470_v57  ;;  %v3910_v24 = vmul.f32 %v7037_v3, %v9695_v39  ;;  %v9831_v19 = vmul.f32 %v7033_v58, %v9695_v39  ;;  %v4269_v9 = vmul.f32 %v7037_v3, %v9698_v15 }
 0x20e   : > { %v4701_v46 = vrot.slane %v4687_v49, %v9797_v13  ;;  %v4702_v8 = vcombine.high %v4694_v28, %v4694_v28  ;;  %v5035_v22 = vsel %vm5006_vm11, %v4694_v28, -inf  ;;  %v4578_v25 = vmax.f32 %v4546_v32, 0.0 }
 0x20f   : > { %v5036_v31 = vrot.slane %v5035_v22, 4  ;;  %v4548_v23 = vadd.f32 %v9751_v6, %v4509_v17  ;;  %v4015_v27 = vrot.slane %v3910_v24, 1  ;;  %v11306_v28 = vrot.slane %v9725_v0, 1 }
 0x210   : > { %v4703_v54 = vcombine.high %v4701_v46, %v4701_v46  ;;  %v5042_v5 = vsel %vm5006_vm11, %v4702_v8, -inf  ;;  %v5049_v57 = vsel %vm5006_vm11, %v4701_v46, -inf  ;;  %v10797_v17 = vrot.slane %v9831_v19, 1 }
 0x211   : > { %v5037_v38 = vmax.f32 %v5035_v22, %v5036_v31  ;;  %v5043_v49 = vrot.slane %v5042_v5, 4  ;;  %v5050_v33 = vrot.slane %v5049_v57, 4  ;;  %v4580_v2 = vmax.f32 %v4548_v23, 0.0 }
 0x212   : > { %v3999_v55 = vsel %vm1515_vm8, %v3997_v10, %v11306_v28  ;;  %v5056_v32 = vsel %vm5006_vm11, %v4703_v54, -inf  ;;  %v9843_v3 = vmul.f32 %v7033_v58, %v9698_v15  ;;  %v4002_v24 = vrot.slane %v3902_v14, 1  ;;  %v7041_v10 = vpop.permute.xlu0 %7040 }
 0x213   : > { %v5038_v30 = vrot.slane %v5037_v38, 2  ;;  %v5044_v8 = vmax.f32 %v5042_v5, %v5043_v49  ;;  %v5051_v34 = vmax.f32 %v5049_v57, %v5050_v33  ;;  %v5057_v46 = vrot.slane %v5056_v32, 4 }
 0x214   : > { %11307 = vst [vmem:[#allocation89_spill] sm:$0xff] %v9843_v3  ;;  %v4615_v22 = vsel %vm4605_vm10, %v4578_v25, -inf  ;;  %v4616_v31 = vsel %vm4605_vm10, %v4580_v2, -inf  ;;  %v4016_v0 = vsel %vm1515_vm8, %v10797_v17, %v4015_v27  ;;  %v4374_v29 = vrot.slane %v4269_v9, 2 }
 0x215   : > { %v5045_v23 = vrot.slane %v5044_v8, 2  ;;  %v5052_v54 = vrot.slane %v5051_v34, 2  ;;  %v5058_v28 = vmax.f32 %v5056_v32, %v5057_v46  ;;  %v9851_v58 = vadd.f32 %v3994_v53, %v9388_v11 }
 0x216   : > { %v4617_v5 = vmax.f32 %v4615_v22, %v4616_v31  ;;  %v10798_v33 = vrot.slane %v9843_v3, 2  ;;  %v7032_v14 = vunpack.i.l.bf16 %v9794_v44  ;;  %v5039_v25 = vmax.f32 %v5037_v38, %v5038_v30 }
 0x217   : > { %v5059_v57 = vrot.slane %v5058_v28, 2  ;;  %v4113_v2 = vadd.f32 %v4016_v0, %v9468_v37  ;;  %v7043_v49 = vunpack.i.h.bf16 %v7041_v10  ;;  %v9857_v27 = vadd.f32 %v3999_v55, %v9406_v48 }
 0x218   : > { %v4007_v17 = vrot.slane %v9824_v51, 1  ;;  %v4721_v32 = vcombine.high %v4617_v5, %v4617_v5  ;;  %v4728_v9 = vrot.slane %v4617_v5, %v9797_v13  ;;  %v5046_v11 = vmax.f32 %v5044_v8, %v5045_v23 }
 0x219   : > { %11308 = vst [vmem:[#allocation86_spill] sm:$0xff] %v9857_v27  ;;  %v5053_v53 = vmax.f32 %v5051_v34, %v5052_v54  ;;  %v11309_v46 = vrot.slane %v9739_v12, 1  ;;  %v4375_v30 = vsel %vm1875_vm9, %v10798_v33, %v4374_v29  ;;  %v5060_v37 = vmax.f32 %v5058_v28, %v5059_v57 }
 0x21a   : > { %v4735_v38 = vrot.slane %v4721_v32, %v9797_v13  ;;  %v4736_v48 = vcombine.high %v4728_v9, %v4728_v9  ;;  %v5091_v55 = vsel %vm5006_vm11, %v4728_v9, -inf  ;;  %v5040_v44 = vrot.slane %v5039_v25, 1 }
 0x21b   : > { %v4004_v22 = vsel %vm1515_vm8, %v4002_v24, %v11309_v46  ;;  %v3908_v51 = vmul.f32 %v7032_v14, %v9695_v39  ;;  %v4472_v31 = vadd.f32 %v4375_v30, %v4113_v2  ;;  %v3913_v34 = vmul.f32 %v7043_v49, %v9695_v39 }
 0x21c   : > { %v4737_v8 = vcombine.high %v4735_v38, %v4735_v38  ;;  %v5092_v12 = vrot.slane %v5091_v55, 4  ;;  %v5098_v24 = vsel %vm5006_vm11, %v4736_v48, -inf  ;;  %v5105_v0 = vsel %vm5006_vm11, %v4735_v38, -inf }
 0x21d   : > { %v5047_v23 = vrot.slane %v5046_v11, 1  ;;  %v5054_v29 = vrot.slane %v5053_v53, 1  ;;  %v9874_v54 = vadd.f32 %v4004_v22, %v9422_v41  ;;  %v7042_v28 = vunpack.i.l.bf16 %v7041_v10 }
 0x21e   : > { %v5061_v5 = vrot.slane %v5060_v37, 1  ;;  %v5099_v57 = vrot.slane %v5098_v24, 4  ;;  %v5106_v32 = vrot.slane %v5105_v0, 4  ;;  %v5112_v14 = vsel %vm5006_vm11, %v4737_v8, -inf }
 0x21f   : > { %11310 = vst [vmem:[#allocation11_spill] sm:$0xff] %v9874_v54  ;;  %v5093_v2 = vmax.f32 %v5091_v55, %v5092_v12  ;;  %v5113_v9 = vrot.slane %v5112_v14, 4  ;;  %v4012_v46 = vrot.slane %v3908_v51, 1  ;;  %v7038_v30 = vunpack.i.h.bf16 %v9803_v26 }
 0x220   : > { %v5041_v33 = vmax.f32 %v5039_v25, %v5040_v44  ;;  %v4511_v48 = vmul.f32 %v9733_v60, %v4472_v31  ;;  %v4020_v38 = vrot.slane %v3913_v34, 1  ;;  %v4272_v3 = vmul.f32 %v7043_v49, %v9698_v15  ;;  %v9888_v49 = vpop.permute.xlu1 %7045 }
 0x221   : > { %v5100_v27 = vmax.f32 %v5098_v24, %v5099_v57  ;;  %v5107_v41 = vmax.f32 %v5105_v0, %v5106_v32  ;;  %v3912_v10 = vmul.f32 %v7042_v28, %v9695_v39  ;;  %v9882_v22 = vmul.f32 %v7042_v28, %v9698_v15 }
 0x222   : > { %v5048_v54 = vmax.f32 %v5046_v11, %v5047_v23  ;;  %v5055_v8 = vmax.f32 %v5053_v53, %v5054_v29  ;;  %v5062_v55 = vmax.f32 %v5060_v37, %v5061_v5  ;;  %v11311_v51 = vrot.slane %v9775_v52, 1 }
 0x223   : > { %v5094_v25 = vrot.slane %v5093_v2, 2  ;;  %v5114_v44 = vmax.f32 %v5112_v14, %v5113_v9  ;;  %v3911_v31 = vmul.f32 %v7038_v30, %v9695_v39  ;;  %v4018_v34 = vrot.slane %v3912_v10, 1  ;;  %v9907_v30 = vpop.permute.xlu0 %7050 }
 0x224   : > { %v4009_v26 = vsel %vm1515_vm8, %v4007_v17, %v11311_v51  ;;  %v11312_v12 = vrot.slane %v9831_v19, 1  ;;  %v4550_v0 = vadd.f32 %v9751_v6, %v4511_v48  ;;  %v4379_v11 = vrot.slane %v4272_v3, 2 }
 0x225   : > { %v10800_v53 = vrot.slane %v9882_v22, 2  ;;  %v6081_v37 = vpack.c.bf16 %v5041_v33, %v5041_v33  ;;  %v5101_v52 = vrot.slane %v5100_v27, 2  ;;  %v5108_v23 = vrot.slane %v5107_v41, 2 }
 0x226   : > { %v4014_v24 = vsel %vm1515_vm8, %v4012_v46, %v11312_v12  ;;  %v4021_v17 = vsel %vm1515_vm8, %v4018_v34, %v4020_v38  ;;  %v6082_v29 = vpack.c.bf16 %v5048_v54, %v5048_v54  ;;  %v6083_v28 = vpack.c.bf16 %v5055_v8, %v5055_v8 }
 0x227   : > { %v6084_v5 = vpack.c.bf16 %v5062_v55, %v5062_v55  ;;  %v7048_v57 = vunpack.i.h.bf16 %v9888_v49  ;;  %v9898_v32 = vadd.f32 %v4009_v26, %v9446_v59  ;;  %v5095_v19 = vmax.f32 %v5093_v2, %v5094_v25  ;;  %v7056_v2 = vpop.permute.xlu1 %7055 }
 0x228   : > { %v5115_v14 = vrot.slane %v5114_v44, 2  ;;  %v4115_v9 = vadd.f32 %v4021_v17, %v9488_v43  ;;  %v9902_v3 = vadd.f32 %v4014_v24, %v9466_v1  ;;  %v4017_v33 = vrot.slane %v3911_v31, 1 }
 0x229   : > { %v4582_v46 = vmax.f32 %v4550_v0, 0.0  ;;  %v4380_v54 = vsel %vm1875_vm9, %v10800_v53, %v4379_v11  ;;  %v9909_v48 = vunpack.c.l.b16 %v6081_v37  ;;  %v5102_v38 = vmax.f32 %v5100_v27, %v5101_v52 }
 0x22a   : > { %v5109_v59 = vmax.f32 %v5107_v41, %v5108_v23  ;;  %v4474_v10 = vadd.f32 %v4380_v54, %v4115_v9  ;;  %v9911_v8 = vunpack.c.l.b16 %v6082_v29  ;;  %v9913_v43 = vunpack.c.l.b16 %v6083_v28 }
 0x22b   : > { %v9915_v1 = vunpack.c.l.b16 %v6084_v5  ;;  %v9918_v55 = vmul.f32 %v7048_v57, %v9695_v39  ;;  %v5096_v51 = vrot.slane %v5095_v19, 1  ;;  %v5116_v26 = vmax.f32 %v5114_v44, %v5115_v14 }
 0x22c   : > { %v4513_v25 = vmul.f32 %v9733_v60, %v4474_v10  ;;  %v7052_v31 = vunpack.i.l.bf16 %v9907_v30  ;;  %v4621_v27 = vsel %vm4605_vm10, %v4582_v46, -inf  ;;  %v9924_v41 = vmul.f32 %v7048_v57, %v9698_v15 }
 0x22d   : > { %11313 = vst [vmem:[#allocation90_spill] sm:$0xff] %v9915_v1  ;;  %v7047_v12 = vunpack.i.l.bf16 %v9888_v49  ;;  %v7058_v24 = vunpack.i.h.bf16 %v7056_v2  ;;  %v5103_v0 = vrot.slane %v5102_v38, 1  ;;  %v5110_v11 = vrot.slane %v5109_v59, 1 }
 0x22e   : > { %v4019_v37 = vsel %vm1515_vm8, %v4017_v33, %v4018_v34  ;;  %v4552_v52 = vadd.f32 %v9751_v6, %v4513_v25  ;;  %v10803_v44 = vrot.slane %v9918_v55, 1  ;;  %v3916_v23 = vmul.f32 %v7052_v31, %v9695_v39 }
 0x22f   : > { %v4275_v17 = vmul.f32 %v7052_v31, %v9698_v15  ;;  %v3919_v29 = vmul.f32 %v7058_v24, %v9695_v39  ;;  %v5097_v28 = vmax.f32 %v5095_v19, %v5096_v51  ;;  %v5117_v5 = vrot.slane %v5116_v26, 1 }
 0x230   : > { %v4584_v57 = vmax.f32 %v4552_v52, 0.0  ;;  %v7057_v14 = vunpack.i.l.bf16 %v7056_v2  ;;  %v10801_v49 = vrot.slane %v9924_v41, 2  ;;  %v4025_v9 = vrot.slane %v3916_v23, 1 }
 0x231   : > { %v4384_v46 = vrot.slane %v4275_v17, 2  ;;  %v4278_v34 = vmul.f32 %v7058_v24, %v9698_v15  ;;  %v4030_v54 = vrot.slane %v3919_v29, 1  ;;  %v5104_v31 = vmax.f32 %v5102_v38, %v5103_v0 }
 0x232   : > { %v4622_v33 = vsel %vm4605_vm10, %v4584_v57, -inf  ;;  %v9937_v10 = vmul.f32 %v7057_v14, %v9695_v39  ;;  %v9940_v25 = vmul.f32 %v7057_v14, %v9698_v15  ;;  %v5111_v19 = vmax.f32 %v5109_v59, %v5110_v11 }
 0x233   : > { %v4623_v51 = vmax.f32 %v4621_v27, %v4622_v33  ;;  %v4026_v2 = vsel %vm1515_vm8, %v10803_v44, %v4025_v9  ;;  %v6089_v52 = vpack.c.bf16 %v5097_v28, %v5097_v28  ;;  %v3914_v23 = vmul.f32 %v7047_v12, %v9695_v39  ;;  %v7061_v33 = vpop.permute.xlu0 %7060  ;;  %v9967_v44 = vpop.permute.xlu1 %7065 }
 0x234   : > { %v4117_v24 = vadd.f32 %v4026_v2, %v9504_v21  ;;  %v10802_v17 = vrot.slane %v9937_v10, 1  ;;  %v5118_v29 = vmax.f32 %v5116_v26, %v5117_v5  ;;  %v4385_v38 = vsel %vm1875_vm9, %v10801_v49, %v4384_v46 }
 0x235   : > { %v4755_v57 = vcombine.high %v4623_v51, %v4623_v51  ;;  %v4762_v53 = vrot.slane %v4623_v51, %v9797_v13  ;;  %v4389_v27 = vrot.slane %v4278_v34, 2  ;;  %v10804_v12 = vrot.slane %v9940_v25, 2 }
 0x236   : > { %v4476_v59 = vadd.f32 %v4385_v38, %v4117_v24  ;;  %v4031_v0 = vsel %vm1515_vm8, %v10802_v17, %v4030_v54  ;;  %v6090_v11 = vpack.c.bf16 %v5104_v31, %v5104_v31  ;;  %v6091_v5 = vpack.c.bf16 %v5111_v19, %v5111_v19 }
 0x237   : > { %v4769_v21 = vrot.slane %v4755_v57, %v9797_v13  ;;  %v4770_v28 = vcombine.high %v4762_v53, %v4762_v53  ;;  %v5147_v26 = vsel %vm5006_vm11, %v4762_v53, -inf  ;;  %v4119_v46 = vadd.f32 %v4031_v0, %v9530_v56 }
 0x238   : > { %v5148_v14 = vrot.slane %v5147_v26, 4  ;;  %v4515_v9 = vmul.f32 %v9733_v60, %v4476_v59  ;;  %v4022_v2 = vrot.slane %v3914_v23, 1  ;;  %v4390_v53 = vsel %vm1875_vm9, %v10804_v12, %v4389_v27 }
 0x239   : > { %v4771_v34 = vcombine.high %v4769_v21, %v4769_v21  ;;  %v5154_v51 = vsel %vm5006_vm11, %v4770_v28, -inf  ;;  %v5161_v54 = vsel %vm5006_vm11, %v4769_v21, -inf  ;;  %v6092_v19 = vpack.c.bf16 %v5118_v29, %v5118_v29 }
 0x23a   : > { %v5149_v24 = vmax.f32 %v5147_v26, %v5148_v14  ;;  %v5155_v31 = vrot.slane %v5154_v51, 4  ;;  %v5162_v38 = vrot.slane %v5161_v54, 4  ;;  %v4478_v59 = vadd.f32 %v4390_v53, %v4119_v46 }
 0x23b   : > { %v5168_v57 = vsel %vm5006_vm11, %v4771_v34, -inf  ;;  %v7063_v49 = vunpack.i.h.bf16 %v7061_v33  ;;  %v4554_v28 = vadd.f32 %v9751_v6, %v4515_v9  ;;  %v9969_v23 = vunpack.c.l.b16 %v6089_v52 }
 0x23c   : > { %v5156_v56 = vmax.f32 %v5154_v51, %v5155_v31  ;;  %v5163_v0 = vmax.f32 %v5161_v54, %v5162_v38  ;;  %v5169_v17 = vrot.slane %v5168_v57, 4  ;;  %v9972_v21 = vadd.f32 %v4019_v37, %v9486_v35 }
 0x23d   : > { %11314 = vst [vmem:[#allocation9_spill] sm:$0xff] %v9969_v23  ;;  %v7053_v26 = vunpack.i.h.bf16 %v9907_v30  ;;  %v4517_v29 = vmul.f32 %v9733_v60, %v4478_v59  ;;  %v9976_v27 = vunpack.c.l.b16 %v6090_v11  ;;  %v9978_v14 = vunpack.c.l.b16 %v6091_v5  ;;  %v7071_v30 = vpop.permute.xlu0 %7070 }
 0x23e   : > { %v5150_v46 = vrot.slane %v5149_v24, 2  ;;  %v11317_v34 = vrot.slane %v9918_v55, 1  ;;  %v5157_v51 = vrot.slane %v5156_v56, 2  ;;  %v9985_v54 = vmul.f32 %v7063_v49, %v9695_v39 }
 0x23f   : > { %11315 = vst [vmem:[#allocation91_spill] sm:$0xff] %v9976_v27  ;;  %11316 = vst [vmem:[#allocation88_spill] sm:$0xff] %v9978_v14  ;;  %v4556_v52 = vadd.f32 %v9751_v6, %v4517_v29  ;;  %v7067_v35 = vunpack.i.l.bf16 %v9967_v44  ;;  %v9988_v37 = vunpack.c.l.b16 %v6092_v19  ;;  %v5164_v11 = vrot.slane %v5163_v0, 2 }
 0x240   : > { %v4024_v9 = vsel %vm1515_vm8, %v4022_v2, %v11317_v34  ;;  %v5170_v31 = vmax.f32 %v5168_v57, %v5169_v17  ;;  %v4586_v5 = vmax.f32 %v4554_v28, 0.0  ;;  %v3917_v38 = vmul.f32 %v7053_v26, %v9695_v39 }
 0x241   : > { %11318 = vst [vmem:[#allocation92_spill] sm:$0xff] %v9988_v37  ;;  %v4588_v53 = vmax.f32 %v4556_v52, 0.0  ;;  %v3922_v55 = vmul.f32 %v7067_v35, %v9695_v39  ;;  %v4281_v2 = vmul.f32 %v7067_v35, %v9698_v15  ;;  %v5151_v59 = vmax.f32 %v5149_v24, %v5150_v46 }
 0x242   : > { %v9994_v29 = vmul.f32 %v7063_v49, %v9698_v15  ;;  %v7062_v34 = vunpack.i.l.bf16 %v7061_v33  ;;  %v7073_v12 = vunpack.i.h.bf16 %v7071_v30  ;;  %v5158_v14 = vmax.f32 %v5156_v56, %v5157_v51 }
 0x243   : > { %v4628_v19 = vsel %vm4605_vm10, %v4588_v53, -inf  ;;  %v10805_v37 = vrot.slane %v9985_v54, 1  ;;  %v4035_v17 = vrot.slane %v3922_v55, 1  ;;  %v5165_v57 = vmax.f32 %v5163_v0, %v5164_v11 }
 0x244   : > { %11319 = vst [vmem:[#allocation87_spill] sm:$0xff] %v9994_v29  ;;  %v5171_v28 = vrot.slane %v5170_v31, 2  ;;  %v4627_v26 = vsel %vm4605_vm10, %v4586_v5, -inf  ;;  %v4394_v52 = vrot.slane %v4281_v2, 2  ;;  %v10000_v27 = vadd.f32 %v4024_v9, %v9502_v62 }
 0x245   : > { %v4027_v24 = vrot.slane %v3917_v38, 1  ;;  %v4629_v46 = vmax.f32 %v4627_v26, %v4628_v19  ;;  %v4036_v49 = vsel %vm1515_vm8, %v10805_v37, %v4035_v17  ;;  %v5152_v33 = vrot.slane %v5151_v59, 1 }
 0x246   : > { %v10806_v56 = vrot.slane %v9994_v29, 2  ;;  %v3920_v51 = vmul.f32 %v7062_v34, %v9695_v39  ;;  %v3925_v0 = vmul.f32 %v7073_v12, %v9695_v39  ;;  %v5159_v35 = vrot.slane %v5158_v14, 1 }
 0x247   : > { %v4789_v11 = vcombine.high %v4629_v46, %v4629_v46  ;;  %v4796_v5 = vrot.slane %v4629_v46, %v9797_v13  ;;  %v4121_v62 = vadd.f32 %v4036_v49, %v9550_v16  ;;  %v5166_v9 = vrot.slane %v5165_v57, 1 }
 0x248   : > { %v5172_v38 = vmax.f32 %v5170_v31, %v5171_v28  ;;  %v4395_v53 = vsel %vm1875_vm9, %v10806_v56, %v4394_v52  ;;  %v7072_v55 = vunpack.i.l.bf16 %v7071_v30  ;;  %v4040_v37 = vrot.slane %v3925_v0, 1 }
 0x249   : > { %v4803_v2 = vrot.slane %v4789_v11, %v9797_v13  ;;  %v4804_v19 = vcombine.high %v4796_v5, %v4796_v5  ;;  %v5203_v34 = vsel %vm5006_vm11, %v4796_v5, -inf  ;;  %v4480_v17 = vadd.f32 %v4395_v53, %v4121_v62 }
 0x24a   : > { %v5204_v26 = vrot.slane %v5203_v34, 4  ;;  %v4284_v23 = vmul.f32 %v7073_v12, %v9698_v15  ;;  %v10017_v46 = vmul.f32 %v7072_v55, %v9695_v39  ;;  %v5153_v62 = vmax.f32 %v5151_v59, %v5152_v33 }
 0x24b   : > { %v4805_v16 = vcombine.high %v4803_v2, %v4803_v2  ;;  %v5210_v31 = vsel %vm5006_vm11, %v4804_v19, -inf  ;;  %v5217_v28 = vsel %vm5006_vm11, %v4803_v2, -inf  ;;  %v4519_v30 = vmul.f32 %v9733_v60, %v4480_v17 }
 0x24c   : > { %v5205_v52 = vmax.f32 %v5203_v34, %v5204_v26  ;;  %v5211_v49 = vrot.slane %v5210_v31, 4  ;;  %v5218_v11 = vrot.slane %v5217_v28, 4  ;;  %v4038_v5 = vrot.slane %v10017_v46, 1  ;;  %v10031_v34 = vpop.permute.xlu1 %7075 }
 0x24d   : > { %v11320_v0 = vrot.slane %v9937_v10, 1  ;;  %v7068_v53 = vunpack.i.h.bf16 %v9967_v44  ;;  %v10028_v56 = vmul.f32 %v7072_v55, %v9698_v15  ;;  %v5173_v19 = vrot.slane %v5172_v38, 1 }
 0x24e   : > { %v5212_v29 = vmax.f32 %v5210_v31, %v5211_v49  ;;  %v5224_v2 = vsel %vm5006_vm11, %v4805_v16, -inf  ;;  %v4399_v17 = vrot.slane %v4284_v23, 2  ;;  %v5160_v26 = vmax.f32 %v5158_v14, %v5159_v35 }
 0x24f   : > { %v4029_v12 = vsel %vm1515_vm8, %v4027_v24, %v11320_v0  ;;  %v4032_v1 = vrot.slane %v3920_v51, 1  ;;  %v4041_v59 = vsel %vm1515_vm8, %v4038_v5, %v4040_v37  ;;  %v10808_v10 = vrot.slane %v10028_v56, 2 }
 0x250   : > { %v5167_v33 = vmax.f32 %v5165_v57, %v5166_v9  ;;  %v5206_v24 = vrot.slane %v5205_v52, 2  ;;  %v5219_v46 = vmax.f32 %v5217_v28, %v5218_v11  ;;  %v4558_v44 = vadd.f32 %v9751_v6, %v4519_v30 }
 0x251   : > { %v5225_v55 = vrot.slane %v5224_v2, 4  ;;  %v3923_v0 = vmul.f32 %v7068_v53, %v9695_v39  ;;  %v4123_v31 = vadd.f32 %v4041_v59, %v9578_v47  ;;  %v7078_v23 = vunpack.i.h.bf16 %v10031_v34 }
 0x252   : > { %v5174_v16 = vmax.f32 %v5172_v38, %v5173_v19  ;;  %v6097_v49 = vpack.c.bf16 %v5153_v62, %v5153_v62  ;;  %v5213_v14 = vrot.slane %v5212_v29, 2  ;;  %v4400_v37 = vsel %vm1875_vm9, %v10808_v10, %v4399_v17  ;;  %v10048_v38 = vpop.permute.xlu0 %7080 }
 0x253   : > { %v6098_v51 = vpack.c.bf16 %v5160_v26, %v5160_v26  ;;  %v10043_v57 = vadd.f32 %v4029_v12, %v9528_v63  ;;  %v11321_v35 = vrot.slane %v9985_v54, 1  ;;  %v4482_v28 = vadd.f32 %v4400_v37, %v4123_v31 }
 0x254   : > { %v6099_v30 = vpack.c.bf16 %v5167_v33, %v5167_v33  ;;  %v5207_v47 = vmax.f32 %v5205_v52, %v5206_v24  ;;  %v5220_v11 = vrot.slane %v5219_v46, 2  ;;  %v4590_v53 = vmax.f32 %v4558_v44, 0.0 }
 0x255   : > { %v4034_v9 = vsel %vm1515_vm8, %v4032_v1, %v11321_v35  ;;  %v5226_v62 = vmax.f32 %v5224_v2, %v5225_v55  ;;  %v4037_v19 = vrot.slane %v3923_v0, 1  ;;  %v4521_v59 = vmul.f32 %v9733_v60, %v4482_v28 }
 0x256   : > { %v10052_v17 = vmul.f32 %v7078_v23, %v9695_v39  ;;  %v6100_v63 = vpack.c.bf16 %v5174_v16, %v5174_v16  ;;  %v10054_v12 = vunpack.c.l.b16 %v6097_v49  ;;  %v5214_v54 = vmax.f32 %v5212_v29, %v5213_v14  ;;  %v7086_v49 = vpop.permute.xlu1 %7085 }
 0x257   : > { %v10057_v1 = vadd.f32 %v4034_v9, %v9548_v36  ;;  %v10059_v26 = vunpack.c.l.b16 %v6098_v51  ;;  %v4560_v52 = vadd.f32 %v9751_v6, %v4521_v59  ;;  %v10063_v33 = vmul.f32 %v7078_v23, %v9698_v15 }
 0x258   : > { %11322 = vst [vmem:[#allocation8_spill] sm:$0xff] %v10054_v12  ;;  %v7082_v2 = vunpack.i.l.bf16 %v10048_v38  ;;  %v10066_v24 = vunpack.c.l.b16 %v6099_v30  ;;  %v5208_v44 = vrot.slane %v5207_v47, 1  ;;  %v5221_v55 = vmax.f32 %v5219_v46, %v5220_v11 }
 0x259   : > { %11323 = vst [vmem:[#allocation57_spill] sm:$0xff] %v10057_v1  ;;  %11324 = vst [vmem:[#allocation25_spill] sm:$0xff] %v10059_v26  ;;  %v4633_v0 = vsel %vm4605_vm10, %v4590_v53, -inf  ;;  %v5227_v31 = vrot.slane %v5226_v62, 2  ;;  %v4592_v29 = vmax.f32 %v4560_v52, 0.0  ;;  %v10809_v36 = vrot.slane %v10052_v17, 1 }
 0x25a   : > { %11325 = vst [vmem:[#allocation51_spill] sm:$0xff] %v10063_v33  ;;  %11326 = vst [vmem:[#allocation21_spill] sm:$0xff] %v10066_v24  ;;  %v3928_v16 = vmul.f32 %v7082_v2, %v9695_v39  ;;  %v10071_v14 = vunpack.c.l.b16 %v6100_v63  ;;  %v5215_v37 = vrot.slane %v5214_v54, 1  ;;  %v10074_v23 = vsel %vm1515_vm8, %v4037_v19, %v4038_v5 }
 0x25b   : > { %v7077_v51 = vunpack.i.l.bf16 %v10031_v34  ;;  %v4634_v35 = vsel %vm4605_vm10, %v4592_v29, -inf  ;;  %v4287_v28 = vmul.f32 %v7082_v2, %v9698_v15  ;;  %v5209_v30 = vmax.f32 %v5207_v47, %v5208_v44 }
 0x25c   : > { %11327 = vst [vmem:[#allocation31_spill] sm:$0xff] %v10071_v14  ;;  %v4045_v9 = vrot.slane %v3928_v16, 1  ;;  %v4635_v11 = vmax.f32 %v4633_v0, %v4634_v35  ;;  %v7088_v53 = vunpack.i.h.bf16 %v7086_v49  ;;  %v7087_v59 = vunpack.i.l.bf16 %v7086_v49 }
 0x25d   : > { %v5222_v52 = vrot.slane %v5221_v55, 1  ;;  %v5228_v63 = vmax.f32 %v5226_v62, %v5227_v31  ;;  %v4404_v19 = vrot.slane %v4287_v28, 2  ;;  %v5216_v46 = vmax.f32 %v5214_v54, %v5215_v37 }
 0x25e   : > { %v4046_v5 = vsel %vm1515_vm8, %v10809_v36, %v4045_v9  ;;  %v4823_v10 = vcombine.high %v4635_v11, %v4635_v11  ;;  %v4830_v34 = vrot.slane %v4635_v11, %v9797_v13  ;;  %v3931_v16 = vmul.f32 %v7088_v53, %v9695_v39 }
 0x25f   : > { %v4125_v29 = vadd.f32 %v4046_v5, %v9600_v50  ;;  %v3926_v47 = vmul.f32 %v7077_v51, %v9695_v39  ;;  %v11328_v2 = vrot.slane %v10063_v33, 2  ;;  %v10091_v62 = vmul.f32 %v7087_v59, %v9695_v39 }
 0x260   : > { %v4837_v0 = vrot.slane %v4823_v10, %v9797_v13  ;;  %v4838_v31 = vcombine.high %v4830_v34, %v4830_v34  ;;  %v5259_v49 = vsel %vm5006_vm11, %v4830_v34, -inf  ;;  %v4290_v35 = vmul.f32 %v7088_v53, %v9698_v15 }
 0x261   : > { %v4405_v44 = vsel %vm1875_vm9, %v11328_v2, %v4404_v19  ;;  %v5260_v50 = vrot.slane %v5259_v49, 4  ;;  %v4050_v9 = vrot.slane %v3931_v16, 1  ;;  %v4048_v54 = vrot.slane %v10091_v62, 1 }
 0x262   : > { %v10098_v37 = vmul.f32 %v7087_v59, %v9698_v15  ;;  %v4839_v51 = vcombine.high %v4837_v0, %v4837_v0  ;;  %v5266_v28 = vsel %vm5006_vm11, %v4838_v31, -inf  ;;  %v5273_v11 = vsel %vm5006_vm11, %v4837_v0, -inf  ;;  %v7091_v0 = vpop.permute.xlu0 %7090 }
 0x263   : > { %v4484_v5 = vadd.f32 %v4405_v44, %v4125_v29  ;;  %v5229_v19 = vrot.slane %v5228_v63, 1  ;;  %v5261_v10 = vmax.f32 %v5259_v49, %v5260_v50  ;;  %v5267_v2 = vrot.slane %v5266_v28, 4 }
 0x264   : > { %v5274_v36 = vrot.slane %v5273_v11, 4  ;;  %v5280_v34 = vsel %vm5006_vm11, %v4839_v51, -inf  ;;  %v7083_v53 = vunpack.i.h.bf16 %v10048_v38  ;;  %v4409_v16 = vrot.slane %v4290_v35, 2 }
 0x265   : > { %v4051_v62 = vsel %vm1515_vm8, %v4048_v54, %v4050_v9  ;;  %v5262_v33 = vrot.slane %v5261_v10, 2  ;;  %v5268_v59 = vmax.f32 %v5266_v28, %v5267_v2  ;;  %v5281_v24 = vrot.slane %v5280_v34, 4 }
 0x266   : > { %v5275_v14 = vmax.f32 %v5273_v11, %v5274_v36  ;;  %v5223_v26 = vmax.f32 %v5221_v55, %v5222_v52  ;;  %v4523_v31 = vmul.f32 %v9733_v60, %v4484_v5  ;;  %v4127_v29 = vadd.f32 %v4051_v62, %v9621_v7 }
 0x267   : > { %v10812_v44 = vrot.slane %v10098_v37, 2  ;;  %v6105_v49 = vpack.c.bf16 %v5209_v30, %v5209_v30  ;;  %v5269_v50 = vrot.slane %v5268_v59, 2  ;;  %v5282_v51 = vmax.f32 %v5280_v34, %v5281_v24 }
 0x268   : > { %v4042_v1 = vrot.slane %v3926_v47, 1  ;;  %v5230_v38 = vmax.f32 %v5228_v63, %v5229_v19  ;;  %v5263_v35 = vmax.f32 %v5261_v10, %v5262_v33  ;;  %v5276_v12 = vrot.slane %v5275_v14, 2  ;;  %v7096_v10 = vpop.permute.xlu1 %7095 }
 0x269   : > { %v3929_v9 = vmul.f32 %v7083_v53, %v9695_v39  ;;  %v5283_v28 = vrot.slane %v5282_v51, 2  ;;  %v4410_v55 = vsel %vm1875_vm9, %v10812_v44, %v4409_v16  ;;  %v7093_v36 = vunpack.i.h.bf16 %v7091_v0 }
 0x26a   : > { %v7092_v52 = vunpack.i.l.bf16 %v7091_v0  ;;  %v6106_v7 = vpack.c.bf16 %v5216_v46, %v5216_v46  ;;  %v10114_v11 = vadd.f32 %v10074_v23, %v9576_v18  ;;  %v4562_v24 = vadd.f32 %v9751_v6, %v4523_v31 }
 0x26b   : > { %v4486_v30 = vadd.f32 %v4410_v55, %v4127_v29  ;;  %v6107_v63 = vpack.c.bf16 %v5223_v26, %v5223_v26  ;;  %v10117_v33 = vunpack.c.l.b16 %v6105_v49  ;;  %v5270_v47 = vmax.f32 %v5268_v59, %v5269_v50 }
 0x26c   : > { %v11329_v5 = vrot.slane %v10052_v17, 1  ;;  %v5264_v2 = vrot.slane %v5263_v35, 1  ;;  %v5277_v34 = vmax.f32 %v5275_v14, %v5276_v12  ;;  %v5284_v53 = vmax.f32 %v5282_v51, %v5283_v28 }
 0x26d   : > { %v4525_v46 = vmul.f32 %v9733_v60, %v4486_v30  ;;  %v6108_v16 = vpack.c.bf16 %v5230_v38, %v5230_v38  ;;  %v4047_v18 = vrot.slane %v3929_v9, 1  ;;  %v10124_v23 = vmul.f32 %v7093_v36, %v9695_v39  ;;  %v7106_v30 = vpop.permute.xlu1 %7105 }
 0x26e   : > { %v4044_v19 = vsel %vm1515_vm8, %v4042_v1, %v11329_v5  ;;  %v3932_v26 = vmul.f32 %v7092_v52, %v9695_v39  ;;  %v10127_v62 = vunpack.c.l.b16 %v6106_v7  ;;  %v4594_v59 = vmax.f32 %v4562_v24, 0.0 }
 0x26f   : > { %11330 = vst [vmem:[#allocation24_spill] sm:$0xff] %v10124_v23  ;;  %v4564_v17 = vadd.f32 %v9751_v6, %v4525_v46  ;;  %v7098_v31 = vunpack.i.h.bf16 %v7096_v10  ;;  %v10130_v1 = vunpack.c.l.b16 %v6107_v63  ;;  %v5271_v29 = vrot.slane %v5270_v47, 1 }
 0x270   : > { %v4049_v12 = vsel %vm1515_vm8, %v4047_v18, %v4048_v54  ;;  %v10134_v60 = vmul.f32 %v7093_v36, %v9698_v15  ;;  %v5265_v14 = vmax.f32 %v5263_v35, %v5264_v2  ;;  %v5278_v0 = vrot.slane %v5277_v34, 1  ;;  %v7101_v36 = vpop.permute.xlu0 %7100 }
 0x271   : > { %v5285_v49 = vrot.slane %v5284_v53, 1  ;;  %v4596_v50 = vmax.f32 %v4564_v17, 0.0  ;;  %v10136_v51 = vunpack.c.l.b16 %v6108_v16  ;;  %v10139_v38 = vadd.f32 %v4044_v19, %v9745_v4 }
 0x272   : > { %v10811_v6 = vrot.slane %v10124_v23, 1  ;;  %v4052_v9 = vrot.slane %v3932_v26, 1  ;;  %v4639_v28 = vsel %vm4605_vm10, %v4594_v59, -inf  ;;  %v10144_v55 = vadd.f32 %v4049_v12, %v9810_v42 }
 0x273   : > { %v4640_v54 = vsel %vm4605_vm10, %v4596_v50, -inf  ;;  %v10148_v35 = vmul.f32 %v7098_v31, %v9695_v39  ;;  %v5272_v52 = vmax.f32 %v5270_v47, %v5271_v29  ;;  %v10152_v4 = vmul.f32 %v7098_v31, %v9698_v15 }
 0x274   : > { %v4641_v7 = vmax.f32 %v4639_v28, %v4640_v54  ;;  %v5279_v63 = vmax.f32 %v5277_v34, %v5278_v0  ;;  %v5286_v5 = vmax.f32 %v5284_v53, %v5285_v49  ;;  %v6113_v19 = vpack.c.bf16 %v5265_v14, %v5265_v14 }
 0x275   : > { %11331 = vst [vmem:[#allocation54_spill] sm:$0xff] %v10148_v35  ;;  %v7097_v2 = vunpack.i.l.bf16 %v7096_v10  ;;  %v4054_v16 = vsel %vm1515_vm8, %v4052_v9, %v10811_v6  ;;  %v7103_v18 = vunpack.i.h.bf16 %v7101_v36  ;;  %v7102_v26 = vunpack.i.l.bf16 %v7101_v36 }
 0x276   : > { %v4857_v42 = vcombine.high %v4641_v7, %v4641_v7  ;;  %v4864_v46 = vrot.slane %v4641_v7, %v9797_v13  ;;  %v7108_v59 = vunpack.i.h.bf16 %v7106_v30  ;;  %v7107_v17 = vunpack.i.l.bf16 %v7106_v30 }
 0x277   : > { %v6114_v31 = vpack.c.bf16 %v5272_v52, %v5272_v52  ;;  %v6115_v10 = vpack.c.bf16 %v5279_v63, %v5279_v63  ;;  %v6116_v12 = vpack.c.bf16 %v5286_v5, %v5286_v5  ;;  %v3935_v0 = vmul.f32 %v7097_v2, %v9695_v39 }
 0x278   : > { %v4871_v29 = vrot.slane %v4857_v42, %v9797_v13  ;;  %v4872_v34 = vcombine.high %v4864_v46, %v4864_v46  ;;  %v5315_v53 = vsel %vm5006_vm11, %v4864_v46, -inf  ;;  %v10165_v28 = vmul.f32 %v7103_v18, %v9695_v39 }
 0x279   : > { %v5316_v14 = vrot.slane %v5315_v53, 4  ;;  %v3938_v36 = vmul.f32 %v7102_v26, %v9695_v39  ;;  %v10169_v52 = vmul.f32 %v7108_v59, %v9695_v39  ;;  %v3941_v7 = vmul.f32 %v7107_v17, %v9695_v39 }
 0x27a   : > { %v4873_v49 = vcombine.high %v4871_v29, %v4871_v29  ;;  %v5322_v50 = vsel %vm5006_vm11, %v4872_v34, -inf  ;;  %v5329_v9 = vsel %vm5006_vm11, %v4871_v29, -inf  ;;  %11332 = vst [vmem:[#allocation67_spill] sm:$0xff] %v10165_v28  ;;  %v10172_v30 = vunpack.c.l.b16 %v6113_v19  ;;  %v7111_v34 = vpop.permute.xlu0 %7110 }
 0x27b   : > { %v5317_v54 = vmax.f32 %v5315_v53, %v5316_v14  ;;  %11333 = vst [vmem:[#allocation61_spill] sm:$0xff] %v10169_v52  ;;  %v10175_v63 = vadd.f32 %v4054_v16, %v9637_v40  ;;  %v10179_v2 = vmul.f32 %v7103_v18, %v9698_v15  ;;  %v10181_v42 = vunpack.c.l.b16 %v6114_v31  ;;  %v7116_v53 = vpop.permute.xlu1 %7115 }
 0x27c   : > { %v5323_v46 = vrot.slane %v5322_v50, 4  ;;  %v5330_v29 = vrot.slane %v5329_v9, 4  ;;  %v4057_v26 = vrot.slane %v3935_v0, 1  ;;  %v10183_v14 = vunpack.c.l.b16 %v6115_v10 }
 0x27d   : > { %11334 = vst [vmem:[#allocation32_spill] sm:$0xff] %v10179_v2  ;;  %v10185_v17 = vunpack.c.l.b16 %v6116_v12  ;;  %v5336_v19 = vsel %vm5006_vm11, %v4873_v49, -inf  ;;  %v5318_v16 = vrot.slane %v5317_v54, 2  ;;  %v4062_v6 = vrot.slane %v3938_v36, 1 }
 0x27e   : > { %v4067_v24 = vrot.slane %v3941_v7, 1  ;;  %v7113_v5 = vunpack.i.h.bf16 %v7111_v34  ;;  %v7112_v44 = vunpack.i.l.bf16 %v7111_v34  ;;  %v7118_v0 = vunpack.i.h.bf16 %v7116_v53 }
 0x27f   : > { %v5324_v47 = vmax.f32 %v5322_v50, %v5323_v46  ;;  %v5331_v23 = vmax.f32 %v5329_v9, %v5330_v29  ;;  %v5337_v10 = vrot.slane %v5336_v19, 4  ;;  %v11335_v12 = vrot.slane %v10148_v35, 1 }
 0x280   : > { %v4258_v49 = vmul.f32 %v7113_v5, %v9698_v15  ;;  %v4255_v40 = vmul.f32 %v7112_v44, %v9698_v15  ;;  %v4264_v36 = vmul.f32 %v7118_v0, %v9698_v15  ;;  %v7117_v18 = vunpack.i.l.bf16 %v7116_v53 }
 0x281   : > { %v4059_v39 = vsel %vm1515_vm8, %v4057_v26, %v11335_v12  ;;  %v5319_v7 = vmax.f32 %v5317_v54, %v5318_v16  ;;  %v11336_v31 = vrot.slane %v10165_v28, 1  ;;  %v10201_v50 = vmul.f32 %v7108_v59, %v9698_v15 }
 0x282   : > { %v11338_v9 = vrot.slane %v10169_v52, 1  ;;  %v4356_v29 = vrot.slane %v4258_v49, 2  ;;  %v4351_v26 = vrot.slane %v4255_v40, 2  ;;  %v4366_v5 = vrot.slane %v4264_v36, 2  ;;  %v11341_v40 = vld [vmem:[#allocation55_spill] sm:$0xff] }
 0x283   : > { %v4064_v34 = vsel %vm1515_vm8, %v4062_v6, %v11336_v31  ;;  %11337 = vst [vmem:[#allocation26_spill] sm:$0xff] %v10201_v50  ;;  %v4261_v44 = vmul.f32 %v7117_v18, %v9698_v15  ;;  %v5325_v12 = vrot.slane %v5324_v47, 2  ;;  %v5332_v0 = vrot.slane %v5331_v23, 2 }
 0x284   : > { %v4069_v46 = vsel %vm1515_vm8, %v4067_v24, %v11338_v9  ;;  %v10207_v53 = vmax.f32 %v5336_v19, %v5337_v10  ;;  %v10210_v54 = vadd.f32 %v4059_v39, %v9657_v20  ;;  %v11339_v6 = vrot.slane %v9706_v45, 2  ;;  %v11343_v9 = vld [vmem:[#allocation81_spill] sm:$0xff]  ;;  %v11345_v39 = vld [vmem:[#allocation83_spill] sm:$0xff]  ;;  %v7121_v45 = vpop.permute.xlu0 %7120 }
 0x285   : > { %v11340_v16 = vrot.slane %v9728_v61, 2  ;;  %v4361_v31 = vrot.slane %v4261_v44, 2  ;;  %v11342_v49 = vrot.slane %v11341_v40, 2  ;;  %v5320_v36 = vrot.slane %v5319_v7, 1  ;;  %v11347_v61 = vld [vmem:[#allocation86_spill] sm:$0xff]  ;;  %v7126_v40 = vpop.permute.xlu1 %7125 }
 0x286   : > { %v4353_v59 = vsel %vm1875_vm9, %v4351_v26, %v11339_v6  ;;  %v10222_v19 = vadd.f32 %v4064_v34, %v11343_v9  ;;  %v10226_v10 = vadd.f32 %v4069_v46, %v11345_v39  ;;  %v10236_v34 = vmax.f32 %v5331_v23, %v5332_v0  ;;  %v11350_v46 = vld [vmem:[#allocation11_spill] sm:$0xff] }
 0x287   : > { %v4358_v24 = vsel %vm1875_vm9, %v4356_v29, %v11340_v16  ;;  %v4368_v18 = vsel %vm1875_vm9, %v4366_v5, %v11342_v49  ;;  %v4463_v26 = vadd.f32 %v4353_v59, %v9851_v58  ;;  %v11348_v29 = vld [vmem:[#allocation56_spill] sm:$0xff]  ;;  %v10234_v49 = vmax.f32 %v5324_v47, %v5325_v12  ;;  %v10243_v58 = vld [vmem:[%s10701_s2] ss:$0 sm:$0xff] }
 0x288   : > { %11344 = vst [vmem:[#allocation62_spill] sm:$0xff] %v10222_v19  ;;  %11346 = vst [vmem:[#allocation39_spill] sm:$0xff] %v10226_v10  ;;  %v4465_v6 = vadd.f32 %v4358_v24, %v11347_v61  ;;  %v11349_v44 = vrot.slane %v11348_v29, 2  ;;  %v4469_v5 = vadd.f32 %v4368_v18, %v9898_v32  ;;  %v10248_v47 = vmax.f32 %v5319_v7, %v5320_v36  ;;  %v10254_v18 = vld [vmem:[%s10702_s3] ss:$0 sm:$0xff] }
 0x289   : > { %v4502_v59 = vmul.f32 %v10243_v58, %v4463_v26  ;;  %v7122_v12 = vunpack.i.l.bf16 %v7121_v45  ;;  %v7128_v0 = vunpack.i.h.bf16 %v7126_v40 }
 0x28a   : > { %v4363_v16 = vsel %vm1875_vm9, %v4361_v31, %v11349_v44  ;;  %v4504_v24 = vmul.f32 %v10243_v58, %v4465_v6  ;;  %v4508_v32 = vmul.f32 %v10243_v58, %v4469_v5  ;;  %v7123_v31 = vunpack.i.h.bf16 %v7121_v45 }
 0x28b   : > { %v4467_v39 = vadd.f32 %v4363_v16, %v11350_v46  ;;  %v4541_v61 = vadd.f32 %v10254_v18, %v4502_v59  ;;  %v4267_v36 = vmul.f32 %v7122_v12, %v9698_v15  ;;  %v4276_v45 = vmul.f32 %v7128_v0, %v9698_v15 }
 0x28c   : > { %v4543_v26 = vadd.f32 %v10254_v18, %v4504_v24  ;;  %v4547_v6 = vadd.f32 %v10254_v18, %v4508_v32  ;;  %v4270_v29 = vmul.f32 %v7123_v31, %v9698_v15  ;;  %v7127_v44 = vunpack.i.l.bf16 %v7126_v40 }
 0x28d   : > { %v4506_v23 = vmul.f32 %v10243_v58, %v4467_v39  ;;  %v4573_v16 = vmax.f32 %v4541_v61, 0.0  ;;  %v4371_v9 = vrot.slane %v4267_v36, 2  ;;  %v4386_v59 = vrot.slane %v4276_v45, 2 }
 0x28e   : > { %v4575_v5 = vmax.f32 %v4543_v26, 0.0  ;;  %v4579_v46 = vmax.f32 %v4547_v6, 0.0  ;;  %v4376_v39 = vrot.slane %v4270_v29, 2  ;;  %v4273_v24 = vmul.f32 %v7127_v44, %v9698_v15  ;;  %v11352_v26 = vld [vmem:[#allocation89_spill] sm:$0xff] }
 0x28f   : > { %v4545_v7 = vadd.f32 %v10254_v18, %v4506_v23  ;;  %v4606_v32 = vsel %vm4605_vm10, %v4573_v16, -inf  ;;  %v11351_v12 = vrot.slane %v9882_v22, 2  ;;  %v11353_v6 = vrot.slane %v11352_v26, 2 }
 0x290   : > { %v4607_v31 = vsel %vm4605_vm10, %v4575_v5, -inf  ;;  %v4613_v23 = vsel %vm4605_vm10, %v4579_v46, -inf  ;;  %v4381_v44 = vrot.slane %v4273_v24, 2  ;;  %v11354_v16 = vrot.slane %v9940_v25, 2 }
 0x291   : > { %v4577_v20 = vmax.f32 %v4545_v7, 0.0  ;;  %v4378_v0 = vsel %vm1875_vm9, %v4376_v39, %v11351_v12  ;;  %v4608_v40 = vmax.f32 %v4606_v32, %v4607_v31  ;;  %v4373_v29 = vsel %vm1875_vm9, %v4371_v9, %v11353_v6 }
 0x292   : > { %v4473_v7 = vadd.f32 %v4378_v0, %v9972_v21  ;;  %v4471_v45 = vadd.f32 %v4373_v29, %v9902_v3  ;;  %v4388_v5 = vsel %vm1875_vm9, %v4386_v59, %v11354_v16  ;;  %v11355_v3 = vrot.slane %v9924_v41, 2 }
 0x293   : > { %v4612_v61 = vsel %vm4605_vm10, %v4577_v20, -inf  ;;  %v4670_v22 = vcombine.high %v4608_v40, %v4608_v40  ;;  %v4677_v46 = vrot.slane %v4608_v40, %v9797_v13  ;;  %v10282_v20 = vadd.f32 %v4388_v5, %v10043_v57 }
 0x294   : > { %v4614_v36 = vmax.f32 %v4612_v61, %v4613_v23  ;;  %v4512_v39 = vmul.f32 %v10243_v58, %v4473_v7  ;;  %v10286_v21 = vmul.f32 %v10243_v58, %v4471_v45  ;;  %v10291_v25 = vsel %vm1875_vm9, %v4381_v44, %v11355_v3 }
 0x295   : > { %v4684_v59 = vrot.slane %v4670_v22, %v9797_v13  ;;  %v4685_v24 = vcombine.high %v4677_v46, %v4677_v46  ;;  %v5007_v31 = vsel %vm5006_vm11, %v4677_v46, -inf }
 0x296   : > { %v4704_v32 = vcombine.high %v4614_v36, %v4614_v36  ;;  %v4711_v9 = vrot.slane %v4614_v36, %v9797_v13  ;;  %v10296_v23 = vadd.f32 %v10254_v18, %v4512_v39  ;;  %v5008_v57 = vrot.slane %v5007_v31, 4 }
 0x297   : > { %v4686_v61 = vcombine.high %v4684_v59, %v4684_v59  ;;  %v5014_v41 = vsel %vm5006_vm11, %v4685_v24, -inf  ;;  %v5021_v26 = vsel %vm5006_vm11, %v4684_v59, -inf }
 0x298   : > { %v4718_v12 = vrot.slane %v4704_v32, %v9797_v13  ;;  %v4719_v0 = vcombine.high %v4711_v9, %v4711_v9  ;;  %v5063_v40 = vsel %vm5006_vm11, %v4711_v9, -inf  ;;  %v5009_v29 = vmax.f32 %v5007_v31, %v5008_v57 }
 0x299   : > { %v5064_v6 = vrot.slane %v5063_v40, 4  ;;  %v5015_v7 = vrot.slane %v5014_v41, 4  ;;  %v5022_v36 = vrot.slane %v5021_v26, 4  ;;  %v5028_v44 = vsel %vm5006_vm11, %v4686_v61, -inf }
 0x29a   : > { %v4720_v45 = vcombine.high %v4718_v12, %v4718_v12  ;;  %v5070_v5 = vsel %vm5006_vm11, %v4719_v0, -inf  ;;  %v5077_v22 = vsel %vm5006_vm11, %v4718_v12, -inf  ;;  %v5010_v46 = vrot.slane %v5009_v29, 2 }
 0x29b   : > { %v5065_v16 = vmax.f32 %v5063_v40, %v5064_v6  ;;  %v5016_v39 = vmax.f32 %v5014_v41, %v5015_v7  ;;  %v5023_v32 = vmax.f32 %v5021_v26, %v5022_v36  ;;  %v5029_v9 = vrot.slane %v5028_v44, 4 }
 0x29c   : > { %v5071_v24 = vrot.slane %v5070_v5, 4  ;;  %v5078_v52 = vrot.slane %v5077_v22, 4  ;;  %v5084_v59 = vsel %vm5006_vm11, %v4720_v45, -inf  ;;  %v5011_v31 = vmax.f32 %v5009_v29, %v5010_v46 }
 0x29d   : > { %v5066_v3 = vrot.slane %v5065_v16, 2  ;;  %v5017_v57 = vrot.slane %v5016_v39, 2  ;;  %v5024_v28 = vrot.slane %v5023_v32, 2  ;;  %v5030_v35 = vmax.f32 %v5028_v44, %v5029_v9 }
 0x29e   : > { %v5072_v40 = vmax.f32 %v5070_v5, %v5071_v24  ;;  %v5079_v6 = vmax.f32 %v5077_v22, %v5078_v52  ;;  %v5085_v0 = vrot.slane %v5084_v59, 4  ;;  %v5012_v12 = vrot.slane %v5011_v31, 1 }
 0x29f   : > { %v5067_v61 = vmax.f32 %v5065_v16, %v5066_v3  ;;  %v5018_v10 = vmax.f32 %v5016_v39, %v5017_v57  ;;  %v5025_v41 = vmax.f32 %v5023_v32, %v5024_v28  ;;  %v5031_v26 = vrot.slane %v5030_v35, 2 }
 0x2a0   : > { %v5073_v36 = vrot.slane %v5072_v40, 2  ;;  %v5080_v19 = vrot.slane %v5079_v6, 2  ;;  %v5086_v2 = vmax.f32 %v5084_v59, %v5085_v0  ;;  %v5013_v29 = vmax.f32 %v5011_v31, %v5012_v12 }
 0x2a1   : > { %v5068_v7 = vrot.slane %v5067_v61, 1  ;;  %v5019_v45 = vrot.slane %v5018_v10, 1  ;;  %v5026_v46 = vrot.slane %v5025_v41, 1  ;;  %v5032_v44 = vmax.f32 %v5030_v35, %v5031_v26 }
 0x2a2   : > { %v5074_v5 = vmax.f32 %v5072_v40, %v5073_v36  ;;  %v5081_v52 = vmax.f32 %v5079_v6, %v5080_v19  ;;  %v5087_v22 = vrot.slane %v5086_v2, 2  ;;  %v6077_v32 = vpack.c.bf16 %v5013_v29, %v5013_v29 }
 0x2a3   : > { %v5069_v16 = vmax.f32 %v5067_v61, %v5068_v7  ;;  %v5020_v9 = vmax.f32 %v5018_v10, %v5019_v45  ;;  %v5027_v39 = vmax.f32 %v5025_v41, %v5026_v46  ;;  %v5033_v28 = vrot.slane %v5032_v44, 1 }
 0x2a4   : > { %v5075_v3 = vrot.slane %v5074_v5, 1  ;;  %v5082_v24 = vrot.slane %v5081_v52, 1  ;;  %v5088_v57 = vmax.f32 %v5086_v2, %v5087_v22  ;;  %v5711_v50 = vunpack.c.l.b16 %v6077_v32 }
 0x2a5   : > { %v6085_v59 = vpack.c.bf16 %v5069_v16, %v5069_v16  ;;  %v5034_v0 = vmax.f32 %v5032_v44, %v5033_v28  ;;  %v6078_v31 = vpack.c.bf16 %v5020_v9, %v5020_v9  ;;  %v6079_v12 = vpack.c.bf16 %v5027_v39, %v5027_v39 }
 0x2a6   : > { %v5076_v35 = vmax.f32 %v5074_v5, %v5075_v3  ;;  %v5083_v26 = vmax.f32 %v5081_v52, %v5082_v24  ;;  %v5089_v61 = vrot.slane %v5088_v57, 1  ;;  %v4549_v10 = vadd.f32 %v10254_v18, %v10286_v21 }
 0x2a7   : > { %v5719_v40 = vunpack.c.l.b16 %v6085_v59  ;;  %v6080_v19 = vpack.c.bf16 %v5034_v0, %v5034_v0  ;;  %v5712_v6 = vunpack.c.l.b16 %v6078_v31  ;;  %v5713_v7 = vunpack.c.l.b16 %v6079_v12 }
 0x2a8   : > { %v5090_v41 = vmax.f32 %v5088_v57, %v5089_v61  ;;  %v6086_v36 = vpack.c.bf16 %v5076_v35, %v5076_v35  ;;  %v6087_v29 = vpack.c.bf16 %v5083_v26, %v5083_v26  ;;  %v4583_v2 = vmax.f32 %v10296_v23, 0.0  ;;  %v11356_v35 = vld [vmem:[#allocation90_spill] sm:$0xff] }
 0x2a9   : > { %v5714_v45 = vunpack.c.l.b16 %v6080_v19  ;;  %v5776_v46 = vsel %vm5775_vm12, %v5712_v6, %v5711_v50  ;;  %v4581_v44 = vmax.f32 %v4549_v10, 0.0  ;;  %v4475_v16 = vadd.f32 %v10291_v25, %v10000_v27  ;;  %v11358_v6 = vld [vmem:[#allocation91_spill] sm:$0xff] }
 0x2aa   : > { %v5778_v5 = vsel %vm5777_vm13, %v5713_v7, %v5776_v46  ;;  %v6088_v52 = vpack.c.bf16 %v5090_v41, %v5090_v41  ;;  %v5720_v22 = vunpack.c.l.b16 %v6086_v36  ;;  %v5721_v9 = vunpack.c.l.b16 %v6087_v29  ;;  %v11359_v41 = vld [vmem:[#allocation88_spill] sm:$0xff] }
 0x2ab   : > { %v5780_v39 = vsel %vm5779_vm14, %v5714_v45, %v5778_v5  ;;  %v4618_v21 = vsel %vm4605_vm10, %v4581_v44, -inf  ;;  %v4619_v28 = vsel %vm4605_vm10, %v4583_v2, -inf  ;;  %v4514_v23 = vmul.f32 %v10243_v58, %v4475_v16  ;;  %v11360_v46 = vld [vmem:[#allocation92_spill] sm:$0xff] }
 0x2ac   : > { %v5782_v50 = vsel %vm5781_vm15, %v9909_v48, %v5780_v39  ;;  %v5722_v32 = vunpack.c.l.b16 %v6088_v52  ;;  %v5789_v3 = vsel %vm5775_vm12, %v5720_v22, %v5719_v40  ;;  %v4620_v27 = vmax.f32 %v4618_v21, %v4619_v28  ;;  %v7131_v22 = vpop.permute.xlu0 %7130 }
 0x2ad   : > { %v5784_v25 = vsel %vm5783_vm0, %v9911_v8, %v5782_v50  ;;  %v5790_v24 = vsel %vm5777_vm13, %v5721_v9, %v5789_v3  ;;  %v4516_v57 = vmul.f32 %v10243_v58, %v10282_v20  ;;  %v4553_v59 = vadd.f32 %v10254_v18, %v4514_v23  ;;  %v11357_v8 = vld [vmem:[#allocation9_spill] sm:$0xff] }
 0x2ae   : > { %v5786_v0 = vsel %vm5785_vm1, %v9913_v43, %v5784_v25  ;;  %v5791_v31 = vsel %vm5779_vm14, %v5722_v32, %v5790_v24  ;;  %v4738_v48 = vcombine.high %v4620_v27, %v4620_v27  ;;  %v4745_v12 = vrot.slane %v4620_v27, %v9797_v13 }
 0x2af   : > { %v10332_v26 = vsel %vm5787_vm2, %v11356_v35, %v5786_v0  ;;  %v5792_v61 = vsel %vm5781_vm15, %v11357_v8, %v5791_v31  ;;  %v4555_v40 = vadd.f32 %v10254_v18, %v4516_v57  ;;  %v4585_v20 = vmax.f32 %v4553_v59, 0.0 }
 0x2b0   : > { %v5327_v19 = vrot.slane %v10234_v49, 1  ;;  %v5793_v43 = vsel %vm5783_vm0, %v11358_v6, %v5792_v61  ;;  %v4752_v7 = vrot.slane %v4738_v48, %v9797_v13  ;;  %v4753_v10 = vcombine.high %v4745_v12, %v4745_v12 }
 0x2b1   : > { %v5794_v36 = vsel %vm5785_vm1, %v11359_v41, %v5793_v43  ;;  %v5119_v29 = vsel %vm5006_vm11, %v4745_v12, -inf  ;;  %v4587_v2 = vmax.f32 %v4555_v40, 0.0  ;;  %v4624_v45 = vsel %vm4605_vm10, %v4585_v20, -inf }
 0x2b2   : > { %v10347_v44 = vsel %vm5787_vm2, %v11360_v46, %v5794_v36  ;;  %v4754_v16 = vcombine.high %v4752_v7, %v4752_v7  ;;  %v5120_v5 = vrot.slane %v5119_v29, 4  ;;  %v5126_v52 = vsel %vm5006_vm11, %v4753_v10, -inf }
 0x2b3   : > { %v5334_v9 = vrot.slane %v10236_v34, 1  ;;  %v5127_v39 = vrot.slane %v5126_v52, 4  ;;  %v5133_v21 = vsel %vm5006_vm11, %v4752_v7, -inf  ;;  %v4625_v28 = vsel %vm4605_vm10, %v4587_v2, -inf }
 0x2b4   : > { %v5121_v23 = vmax.f32 %v5119_v29, %v5120_v5  ;;  %v5134_v50 = vrot.slane %v5133_v21, 4  ;;  %v5140_v32 = vsel %vm5006_vm11, %v4754_v16, -inf  ;;  %v4626_v3 = vmax.f32 %v4624_v45, %v4625_v28 }
 0x2b5   : > { %v5128_v27 = vmax.f32 %v5126_v52, %v5127_v39  ;;  %v5141_v25 = vrot.slane %v5140_v32, 4  ;;  %v7133_v24 = vunpack.i.h.bf16 %v7131_v22  ;;  %v7132_v57 = vunpack.i.l.bf16 %v7131_v22 }
 0x2b6   : > { %v5122_v59 = vrot.slane %v5121_v23, 2  ;;  %v5135_v0 = vmax.f32 %v5133_v21, %v5134_v50  ;;  %v4772_v31 = vcombine.high %v4626_v3, %v4626_v3  ;;  %v4779_v48 = vrot.slane %v4626_v3, %v9797_v13 }
 0x2b7   : > { %v5129_v12 = vrot.slane %v5128_v27, 2  ;;  %v5142_v35 = vmax.f32 %v5140_v32, %v5141_v25  ;;  %v4282_v8 = vmul.f32 %v7133_v24, %v9698_v15  ;;  %v4279_v61 = vmul.f32 %v7132_v57, %v9698_v15 }
 0x2b8   : > { %v5123_v40 = vmax.f32 %v5121_v23, %v5122_v59  ;;  %v5136_v20 = vrot.slane %v5135_v0, 2  ;;  %v4786_v6 = vrot.slane %v4772_v31, %v9797_v13  ;;  %v4787_v43 = vcombine.high %v4779_v48, %v4779_v48 }
 0x2b9   : > { %v5130_v7 = vmax.f32 %v5128_v27, %v5129_v12  ;;  %v5143_v10 = vrot.slane %v5142_v35, 2  ;;  %v5175_v41 = vsel %vm5006_vm11, %v4779_v48, -inf  ;;  %v4396_v36 = vrot.slane %v4282_v8, 2 }
 0x2ba   : > { %v5124_v29 = vrot.slane %v5123_v40, 1  ;;  %v5137_v2 = vmax.f32 %v5135_v0, %v5136_v20  ;;  %v4788_v45 = vcombine.high %v4786_v6, %v4786_v6  ;;  %v5176_v46 = vrot.slane %v5175_v41, 4 }
 0x2bb   : > { %v5131_v16 = vrot.slane %v5130_v7, 1  ;;  %v5144_v5 = vmax.f32 %v5142_v35, %v5143_v10  ;;  %v5182_v52 = vsel %vm5006_vm11, %v4787_v43, -inf  ;;  %v5189_v22 = vsel %vm5006_vm11, %v4786_v6, -inf }
 0x2bc   : > { %v5125_v39 = vmax.f32 %v5123_v40, %v5124_v29  ;;  %v5138_v21 = vrot.slane %v5137_v2, 1  ;;  %v5177_v28 = vmax.f32 %v5175_v41, %v5176_v46  ;;  %v5183_v23 = vrot.slane %v5182_v52, 4 }
 0x2bd   : > { %v5132_v50 = vmax.f32 %v5130_v7, %v5131_v16  ;;  %v5145_v32 = vrot.slane %v5144_v5, 1  ;;  %v5190_v3 = vrot.slane %v5189_v22, 4  ;;  %v5196_v27 = vsel %vm5006_vm11, %v4788_v45, -inf }
 0x2be   : > { %v5139_v25 = vmax.f32 %v5137_v2, %v5138_v21  ;;  %v6093_v24 = vpack.c.bf16 %v5125_v39, %v5125_v39  ;;  %v5178_v57 = vrot.slane %v5177_v28, 2  ;;  %v5184_v59 = vmax.f32 %v5182_v52, %v5183_v23  ;;  %v11361_v23 = vld [vmem:[#allocation87_spill] sm:$0xff] }
 0x2bf   : > { %v5146_v0 = vmax.f32 %v5144_v5, %v5145_v32  ;;  %v6094_v31 = vpack.c.bf16 %v5132_v50, %v5132_v50  ;;  %v5191_v48 = vmax.f32 %v5189_v22, %v5190_v3  ;;  %v5197_v12 = vrot.slane %v5196_v27, 4 }
 0x2c0   : > { %v6095_v35 = vpack.c.bf16 %v5139_v25, %v5139_v25  ;;  %v5727_v8 = vunpack.c.l.b16 %v6093_v24  ;;  %v5179_v20 = vmax.f32 %v5177_v28, %v5178_v57  ;;  %v5185_v40 = vrot.slane %v5184_v59, 2  ;;  %v11364_v24 = vld [vmem:[#allocation8_spill] sm:$0xff] }
 0x2c1   : > { %v6096_v6 = vpack.c.bf16 %v5146_v0, %v5146_v0  ;;  %v5728_v43 = vunpack.c.l.b16 %v6094_v31  ;;  %v5192_v10 = vrot.slane %v5191_v48, 2  ;;  %v5198_v7 = vmax.f32 %v5196_v27, %v5197_v12  ;;  %v11365_v31 = vld [vmem:[#allocation57_spill] sm:$0xff] }
 0x2c2   : > { %v5729_v41 = vunpack.c.l.b16 %v6095_v35  ;;  %v5180_v29 = vrot.slane %v5179_v20, 1  ;;  %v5186_v46 = vmax.f32 %v5184_v59, %v5185_v40  ;;  %v4391_v45 = vrot.slane %v4279_v61, 2  ;;  %v11366_v12 = vld [vmem:[#allocation25_spill] sm:$0xff] }
 0x2c3   : > { %v5730_v2 = vunpack.c.l.b16 %v6096_v6  ;;  %v5796_v16 = vsel %vm5775_vm12, %v5728_v43, %v5727_v8  ;;  %v5193_v52 = vmax.f32 %v5191_v48, %v5192_v10  ;;  %v5199_v5 = vrot.slane %v5198_v7, 2  ;;  %v7136_v6 = vpop.permute.xlu1 %7135 }
 0x2c4   : > { %v5797_v22 = vsel %vm5777_vm13, %v5729_v41, %v5796_v16  ;;  %v5181_v39 = vmax.f32 %v5179_v20, %v5180_v29  ;;  %v5187_v21 = vrot.slane %v5186_v46, 1  ;;  %v11362_v28 = vrot.slane %v11361_v23, 2  ;;  %v11369_v29 = vld [vmem:[#allocation31_spill] sm:$0xff]  ;;  %v7141_v16 = vpop.permute.xlu0 %7140 }
 0x2c5   : > { %v5798_v32 = vsel %vm5779_vm14, %v5730_v2, %v5797_v22  ;;  %v5194_v3 = vrot.slane %v5193_v52, 1  ;;  %v5200_v27 = vmax.f32 %v5198_v7, %v5199_v5  ;;  %v11363_v25 = vrot.slane %v10028_v56, 2 }
 0x2c6   : > { %v4393_v50 = vsel %vm1875_vm9, %v4391_v45, %v11362_v28  ;;  %v5799_v57 = vsel %vm5781_vm15, %v11364_v24, %v5798_v32  ;;  %v5188_v59 = vmax.f32 %v5186_v46, %v5187_v21  ;;  %v6101_v0 = vpack.c.bf16 %v5181_v39, %v5181_v39 }
 0x2c7   : > { %v4398_v61 = vsel %vm1875_vm9, %v4396_v36, %v11363_v25  ;;  %v4479_v48 = vadd.f32 %v4393_v50, %v11365_v31  ;;  %v5800_v35 = vsel %vm5783_vm0, %v11366_v12, %v5799_v57  ;;  %v5195_v8 = vmax.f32 %v5193_v52, %v5194_v3  ;;  %v11368_v36 = vld [vmem:[#allocation21_spill] sm:$0xff] }
 0x2c8   : > { %v5201_v20 = vrot.slane %v5200_v27, 1  ;;  %v4481_v40 = vadd.f32 %v4398_v61, %v10114_v11  ;;  %v11367_v43 = vrot.slane %v10207_v53, 2  ;;  %v5801_v10 = vsel %vm5785_vm1, %v11368_v36, %v5800_v35 }
 0x2c9   : > { %v6102_v7 = vpack.c.bf16 %v5188_v59, %v5188_v59  ;;  %v4518_v41 = vmul.f32 %v10243_v58, %v4479_v48  ;;  %v10387_v46 = vsel %vm5787_vm2, %v11369_v29, %v5801_v10  ;;  %v6103_v2 = vpack.c.bf16 %v5195_v8, %v5195_v8 }
 0x2ca   : > { %v10380_v56 = vmax.f32 %v10207_v53, %v11367_v43  ;;  %v5202_v45 = vmax.f32 %v5200_v27, %v5201_v20  ;;  %v4520_v11 = vmul.f32 %v10243_v58, %v4481_v40  ;;  %v5735_v52 = vunpack.c.l.b16 %v6101_v0 }
 0x2cb   : > { %v5736_v5 = vunpack.c.l.b16 %v6102_v7  ;;  %v4557_v53 = vadd.f32 %v10254_v18, %v4518_v41  ;;  %v7138_v22 = vunpack.i.h.bf16 %v7136_v6  ;;  %v5737_v21 = vunpack.c.l.b16 %v6103_v2  ;;  %v11371_v41 = vld [vmem:[#allocation51_spill] sm:$0xff] }
 0x2cc   : > { %v6104_v39 = vpack.c.bf16 %v5202_v45, %v5202_v45  ;;  %v4559_v23 = vadd.f32 %v10254_v18, %v4520_v11  ;;  %v7137_v28 = vunpack.i.l.bf16 %v7136_v6  ;;  %v7143_v27 = vunpack.i.h.bf16 %v7141_v16 }
 0x2cd   : > { %v5803_v50 = vsel %vm5775_vm12, %v5736_v5, %v5735_v52  ;;  %v4589_v32 = vmax.f32 %v4557_v53, 0.0  ;;  %v4288_v3 = vmul.f32 %v7138_v22, %v9698_v15  ;;  %v7142_v48 = vunpack.i.l.bf16 %v7141_v16 }
 0x2ce   : > { %v5738_v25 = vunpack.c.l.b16 %v6104_v39  ;;  %v5804_v61 = vsel %vm5777_vm13, %v5737_v21, %v5803_v50  ;;  %v4591_v24 = vmax.f32 %v4559_v23, 0.0  ;;  %v4285_v57 = vmul.f32 %v7137_v28, %v9698_v15 }
 0x2cf   : > { %v4630_v59 = vsel %vm4605_vm10, %v4589_v32, -inf  ;;  %v4406_v0 = vrot.slane %v4288_v3, 2  ;;  %v4294_v31 = vmul.f32 %v7143_v27, %v9698_v15  ;;  %v10401_v12 = vmax.f32 %v10234_v49, %v5327_v19 }
 0x2d0   : > { %v5805_v35 = vsel %vm5779_vm14, %v5738_v25, %v5804_v61  ;;  %v4631_v8 = vsel %vm4605_vm10, %v4591_v24, -inf  ;;  %v4401_v20 = vrot.slane %v4285_v57, 2  ;;  %v11370_v43 = vrot.slane %v10098_v37, 2 }
 0x2d1   : > { %v5806_v40 = vsel %vm5781_vm15, %v10117_v33, %v5805_v35  ;;  %v4632_v6 = vmax.f32 %v4630_v59, %v4631_v8  ;;  %v4416_v10 = vrot.slane %v4294_v31, 2  ;;  %v11372_v49 = vrot.slane %v11371_v41, 2 }
 0x2d2   : > { %v4408_v36 = vsel %vm1875_vm9, %v4406_v0, %v11370_v43  ;;  %v5807_v7 = vsel %vm5783_vm0, %v10127_v62, %v5806_v40  ;;  %v4291_v45 = vmul.f32 %v7142_v48, %v9698_v15  ;;  %v10424_v62 = vmax.f32 %v10236_v34, %v5334_v9 }
 0x2d3   : > { %v4403_v19 = vsel %vm1875_vm9, %v4401_v20, %v11372_v49  ;;  %v4485_v29 = vadd.f32 %v4408_v36, %v10144_v55  ;;  %v5808_v33 = vsel %vm5785_vm1, %v10130_v1, %v5807_v7  ;;  %v4806_v2 = vcombine.high %v4632_v6, %v4632_v6 }
 0x2d4   : > { %v4813_v37 = vrot.slane %v4632_v6, %v9797_v13  ;;  %v4483_v11 = vadd.f32 %v4403_v19, %v10139_v38  ;;  %v10428_v16 = vsel %vm5787_vm2, %v10136_v51, %v5808_v33  ;;  %v4411_v52 = vrot.slane %v4291_v45, 2 }
 0x2d5   : > { %v4524_v55 = vmul.f32 %v10243_v58, %v4485_v29  ;;  %v4820_v5 = vrot.slane %v4806_v2, %v9797_v13  ;;  %v11373_v22 = vrot.slane %v10152_v4, 2  ;;  %v11374_v51 = vrot.slane %v10134_v60, 2 }
 0x2d6   : > { %v4821_v1 = vcombine.high %v4813_v37, %v4813_v37  ;;  %v5231_v53 = vsel %vm5006_vm11, %v4813_v37, -inf  ;;  %v4522_v34 = vmul.f32 %v10243_v58, %v4483_v11  ;;  %v5341_v41 = vrot.slane %v10380_v56, 1 }
 0x2d7   : > { %v4418_v38 = vsel %vm1875_vm9, %v4416_v10, %v11373_v22  ;;  %v5232_v39 = vrot.slane %v5231_v53, 4  ;;  %v4563_v9 = vadd.f32 %v10254_v18, %v4524_v55  ;;  %v4413_v21 = vsel %vm1875_vm9, %v4411_v52, %v11374_v51 }
 0x2d8   : > { %v4822_v23 = vcombine.high %v4820_v5, %v4820_v5  ;;  %v5238_v28 = vsel %vm5006_vm11, %v4821_v1, -inf  ;;  %v5245_v50 = vsel %vm5006_vm11, %v4820_v5, -inf  ;;  %v4487_v32 = vadd.f32 %v4413_v21, %v10175_v63 }
 0x2d9   : > { %v5233_v3 = vmax.f32 %v5231_v53, %v5232_v39  ;;  %v5239_v27 = vrot.slane %v5238_v28, 4  ;;  %v5246_v25 = vrot.slane %v5245_v50, 4  ;;  %v4561_v61 = vadd.f32 %v10254_v18, %v4522_v34 }
 0x2da   : > { %v5252_v24 = vsel %vm5006_vm11, %v4822_v23, -inf  ;;  %v4595_v57 = vmax.f32 %v4563_v9, 0.0  ;;  %v4489_v59 = vadd.f32 %v4418_v38, %v10210_v54  ;;  %v4526_v0 = vmul.f32 %v10243_v58, %v4487_v32 }
 0x2db   : > { %v5234_v31 = vrot.slane %v5233_v3, 2  ;;  %v5240_v48 = vmax.f32 %v5238_v28, %v5239_v27  ;;  %v5247_v35 = vmax.f32 %v5245_v50, %v5246_v25  ;;  %v5253_v8 = vrot.slane %v5252_v24, 4 }
 0x2dc   : > { %v4593_v20 = vmax.f32 %v4561_v61, 0.0  ;;  %v4637_v40 = vsel %vm4605_vm10, %v4595_v57, -inf  ;;  %v4528_v63 = vmul.f32 %v10243_v58, %v4489_v59  ;;  %v4565_v6 = vadd.f32 %v10254_v18, %v4526_v0 }
 0x2dd   : > { %v5235_v43 = vmax.f32 %v5233_v3, %v5234_v31  ;;  %v5241_v36 = vrot.slane %v5240_v48, 2  ;;  %v5248_v10 = vrot.slane %v5247_v35, 2  ;;  %v5254_v7 = vmax.f32 %v5252_v24, %v5253_v8 }
 0x2de   : > { %v4636_v54 = vsel %vm4605_vm10, %v4593_v20, -inf  ;;  %v4567_v49 = vadd.f32 %v10254_v18, %v4528_v63  ;;  %v4597_v19 = vmax.f32 %v4565_v6, 0.0  ;;  %v6121_v37 = vpack.c.bf16 %v10248_v47, %v10248_v47 }
 0x2df   : > { %v5236_v29 = vrot.slane %v5235_v43, 1  ;;  %v5242_v45 = vmax.f32 %v5240_v48, %v5241_v36  ;;  %v5249_v33 = vmax.f32 %v5247_v35, %v5248_v10  ;;  %v5255_v2 = vrot.slane %v5254_v7, 2 }
 0x2e0   : > { %v4638_v11 = vmax.f32 %v4636_v54, %v4637_v40  ;;  %v4599_v55 = vmax.f32 %v4567_v49, 0.0  ;;  %v4642_v52 = vsel %vm4605_vm10, %v4597_v19, -inf  ;;  %v10458_v38 = vmax.f32 %v10380_v56, %v5341_v41 }
 0x2e1   : > { %v5237_v5 = vmax.f32 %v5235_v43, %v5236_v29  ;;  %v5243_v1 = vrot.slane %v5242_v45, 1  ;;  %v5250_v53 = vrot.slane %v5249_v33, 1  ;;  %v5256_v22 = vmax.f32 %v5254_v7, %v5255_v2 }
 0x2e2   : > { %v4840_v39 = vcombine.high %v4638_v11, %v4638_v11  ;;  %v4847_v34 = vrot.slane %v4638_v11, %v9797_v13  ;;  %v4643_v9 = vsel %vm4605_vm10, %v4599_v55, -inf  ;;  %v6122_v40 = vpack.c.bf16 %v10401_v12, %v10401_v12 }
 0x2e3   : > { %v5244_v51 = vmax.f32 %v5242_v45, %v5243_v1  ;;  %v5251_v21 = vmax.f32 %v5249_v33, %v5250_v53  ;;  %v5257_v23 = vrot.slane %v5256_v22, 1  ;;  %v6109_v28 = vpack.c.bf16 %v5237_v5, %v5237_v5  ;;  %v7146_v45 = vpop.permute.xlu1 %7145 }
 0x2e4   : > { %v4854_v50 = vrot.slane %v4840_v39, %v9797_v13  ;;  %v4855_v32 = vcombine.high %v4847_v34, %v4847_v34  ;;  %v5287_v3 = vsel %vm5006_vm11, %v4847_v34, -inf  ;;  %v4644_v27 = vmax.f32 %v4642_v52, %v4643_v9 }
 0x2e5   : > { %v5258_v25 = vmax.f32 %v5256_v22, %v5257_v23  ;;  %v6110_v61 = vpack.c.bf16 %v5244_v51, %v5244_v51  ;;  %v6111_v24 = vpack.c.bf16 %v5251_v21, %v5251_v21  ;;  %v5743_v56 = vunpack.c.l.b16 %v6109_v28 }
 0x2e6   : > { %v4856_v57 = vcombine.high %v4854_v50, %v4854_v50  ;;  %v5288_v59 = vrot.slane %v5287_v3, 4  ;;  %v5294_v0 = vsel %vm5006_vm11, %v4855_v32, -inf  ;;  %v5301_v31 = vsel %vm5006_vm11, %v4854_v50, -inf }
 0x2e7   : > { %v6112_v48 = vpack.c.bf16 %v5258_v25, %v5258_v25  ;;  %v5744_v35 = vunpack.c.l.b16 %v6110_v61  ;;  %v5745_v8 = vunpack.c.l.b16 %v6111_v24  ;;  %v5295_v20 = vrot.slane %v5294_v0, 4 }
 0x2e8   : > { %v5289_v63 = vmax.f32 %v5287_v3, %v5288_v59  ;;  %v5302_v6 = vrot.slane %v5301_v31, 4  ;;  %v5308_v43 = vsel %vm5006_vm11, %v4856_v57, -inf  ;;  %v4881_v29 = vrot.slane %v4644_v27, %v9797_v13 }
 0x2e9   : > { %v5746_v36 = vunpack.c.l.b16 %v6112_v48  ;;  %v5810_v10 = vsel %vm5775_vm12, %v5744_v35, %v5743_v56  ;;  %v5296_v7 = vmax.f32 %v5294_v0, %v5295_v20  ;;  %v5309_v41 = vrot.slane %v5308_v43, 4 }
 0x2ea   : > { %v5811_v54 = vsel %vm5777_vm13, %v5745_v8, %v5810_v10  ;;  %v5290_v49 = vrot.slane %v5289_v63, 2  ;;  %v5303_v19 = vmax.f32 %v5301_v31, %v5302_v6  ;;  %v4874_v11 = vcombine.high %v4644_v27, %v4644_v27 }
 0x2eb   : > { %v5812_v33 = vsel %vm5779_vm14, %v5746_v36, %v5811_v54  ;;  %v5297_v2 = vrot.slane %v5296_v7, 2  ;;  %v5310_v12 = vmax.f32 %v5308_v43, %v5309_v41  ;;  %v4889_v1 = vcombine.high %v4881_v29, %v4881_v29 }
 0x2ec   : > { %v5813_v55 = vsel %vm5781_vm15, %v10172_v30, %v5812_v33  ;;  %v5291_v52 = vmax.f32 %v5289_v63, %v5290_v49  ;;  %v5304_v5 = vrot.slane %v5303_v19, 2  ;;  %v7148_v34 = vunpack.i.h.bf16 %v7146_v45 }
 0x2ed   : > { %v5814_v53 = vsel %vm5783_vm0, %v10181_v42, %v5813_v55  ;;  %v5298_v22 = vmax.f32 %v5296_v7, %v5297_v2  ;;  %v5311_v39 = vrot.slane %v5310_v12, 2  ;;  %v6123_v9 = vpack.c.bf16 %v10424_v62, %v10424_v62 }
 0x2ee   : > { %v5815_v51 = vsel %vm5785_vm1, %v10183_v14, %v5814_v53  ;;  %v5292_v21 = vrot.slane %v5291_v52, 1  ;;  %v5305_v23 = vmax.f32 %v5303_v19, %v5304_v5  ;;  %v4888_v32 = vrot.slane %v4874_v11, %v9797_v13 }
 0x2ef   : > { %v10483_v30 = vsel %vm5787_vm2, %v10185_v17, %v5815_v51  ;;  %v5299_v28 = vrot.slane %v5298_v22, 1  ;;  %v5312_v50 = vmax.f32 %v5310_v12, %v5311_v39  ;;  %v5755_v42 = vunpack.c.l.b16 %v6121_v37 }
 0x2f0   : > { %v5293_v3 = vmax.f32 %v5291_v52, %v5292_v21  ;;  %v5306_v27 = vrot.slane %v5305_v23, 1  ;;  %v5350_v62 = vsel %vm5006_vm11, %v4889_v1, -inf  ;;  %v5343_v61 = vsel %vm5006_vm11, %v4881_v29, -inf  ;;  %v11375_v52 = vld [vmem:[#allocation26_spill] sm:$0xff] }
 0x2f1   : > { %v5300_v25 = vmax.f32 %v5298_v22, %v5299_v28  ;;  %v5313_v14 = vrot.slane %v5312_v50, 1  ;;  %v4300_v24 = vmul.f32 %v7148_v34, %v9698_v15  ;;  %v5351_v57 = vrot.slane %v5350_v62, 4  ;;  %v11377_v34 = vld [vmem:[#allocation32_spill] sm:$0xff] }
 0x2f2   : > { %v5307_v17 = vmax.f32 %v5305_v23, %v5306_v27  ;;  %v6117_v56 = vpack.c.bf16 %v5293_v3, %v5293_v3  ;;  %v7147_v59 = vunpack.i.l.bf16 %v7146_v45  ;;  %v6124_v0 = vpack.c.bf16 %v10458_v38, %v10458_v38  ;;  %v11379_v23 = vld [vmem:[#allocation62_spill] sm:$0xff]  ;;  %v11380_v3 = vld [vmem:[#allocation39_spill] sm:$0xff] }
 0x2f3   : > { %v5314_v31 = vmax.f32 %v5312_v50, %v5313_v14  ;;  %v6118_v47 = vpack.c.bf16 %v5300_v25, %v5300_v25  ;;  %v4890_v37 = vcombine.high %v4888_v32, %v4888_v32  ;;  %v5756_v48 = vunpack.c.l.b16 %v6122_v40 }
 0x2f4   : > { %v5757_v35 = vunpack.c.l.b16 %v6123_v9  ;;  %v6119_v8 = vpack.c.bf16 %v5307_v17, %v5307_v17  ;;  %v5344_v20 = vrot.slane %v5343_v61, 4  ;;  %v5751_v6 = vunpack.c.l.b16 %v6117_v56 }
 0x2f5   : > { %v6120_v63 = vpack.c.bf16 %v5314_v31, %v5314_v31  ;;  %v5752_v43 = vunpack.c.l.b16 %v6118_v47  ;;  %v4426_v36 = vrot.slane %v4300_v24, 2  ;;  %v5352_v7 = vmax.f32 %v5350_v62, %v5351_v57  ;;  %v7151_v62 = vpop.permute.xlu0 %7150  ;;  %v11381_v31 = vld [vmem:[#allocation82_spill] sm:$0xff] }
 0x2f6   : > { %v5753_v10 = vunpack.c.l.b16 %v6119_v8  ;;  %v5357_v41 = vsel %vm5006_vm11, %v4888_v32, -inf  ;;  %v4297_v54 = vmul.f32 %v7147_v59, %v9698_v15  ;;  %v5758_v49 = vunpack.c.l.b16 %v6124_v0 }
 0x2f7   : > { %v5754_v38 = vunpack.c.l.b16 %v6120_v63  ;;  %v5817_v19 = vsel %vm5775_vm12, %v5752_v43, %v5751_v6  ;;  %v5364_v40 = vsel %vm5006_vm11, %v4890_v37, -inf  ;;  %v5838_v29 = vpack.c.b16 %v10332_v26, %v10332_v26 }
 0x2f8   : > { %v5818_v45 = vsel %vm5777_vm13, %v5753_v10, %v5817_v19  ;;  %v5345_v33 = vmax.f32 %v5343_v61, %v5344_v20  ;;  %v4421_v2 = vrot.slane %v4297_v54, 2  ;;  %v5839_v12 = vpack.c.b16 %v10347_v44, %v10347_v44 }
 0x2f9   : > { %v5819_v11 = vsel %vm5779_vm14, %v5754_v38, %v5818_v45  ;;  %v5358_v55 = vrot.slane %v5357_v41, 4  ;;  %v11376_v5 = vrot.slane %v11375_v52, 2  ;;  %v5353_v22 = vrot.slane %v5352_v7, 2  ;;  %5855 = vst.msk [vmem:[%s10529_s30] sm:$0xf] %vm5854_vm3, %v5838_v29 }
 0x2fa   : > { %v5820_v53 = vsel %vm5781_vm15, %v5755_v42, %v5819_v11  ;;  %v5365_v39 = vrot.slane %v5364_v40, 4  ;;  %v11378_v26 = vrot.slane %v11377_v34, 2  ;;  %v5840_v44 = vpack.c.b16 %v10387_v46, %v10387_v46  ;;  %5856 = vst.msk [vmem:[%s10529_s30 + $0x4] sm:$0xf] %vm5854_vm3, %v5839_v12  ;;  %v11384_v11 = vld [vmem:[#allocation24_spill] sm:$0xff] }
 0x2fb   : > { %v4428_v1 = vsel %vm1875_vm9, %v4426_v36, %v11376_v5  ;;  %v5841_v51 = vpack.c.b16 %v10428_v16, %v10428_v16  ;;  %v5821_v21 = vsel %vm5783_vm0, %v5756_v48, %v5820_v53  ;;  %v5842_v50 = vpack.c.b16 %v10483_v30, %v10483_v30  ;;  %v10545_v48 = vpop.permute.xlu1 %7155 }
 0x2fc   : > { %v4423_v9 = vsel %vm1875_vm9, %v4421_v2, %v11378_v26  ;;  %v5822_v32 = vsel %vm5785_vm1, %v5757_v35, %v5821_v21  ;;  %v5346_v42 = vrot.slane %v5345_v33, 2  ;;  %v4493_v27 = vadd.f32 %v4428_v1, %v11380_v3  ;;  %5857 = vst.msk [vmem:[%s10529_s30 + $0x8] sm:$0xf] %vm5854_vm3, %v5840_v44  ;;  %v11386_v1 = vld [vmem:[#allocation80_spill] sm:$0xff] }
 0x2fd   : > { %v4491_v28 = vadd.f32 %v4423_v9, %v11379_v23  ;;  %v5823_v25 = vsel %vm5787_vm2, %v5758_v49, %v5822_v32  ;;  %v5359_v14 = vmax.f32 %v5357_v41, %v5358_v55  ;;  %v5354_v16 = vmax.f32 %v5352_v7, %v5353_v22  ;;  %5858 = vst.msk [vmem:[%s10529_s30 + $0xc] sm:$0xf] %vm5854_vm3, %v5841_v51  ;;  %v11388_v44 = vld [vmem:[#allocation76_spill] sm:$0xff] }
 0x2fe   : > { %v5843_v61 = vpack.c.b16 %v5823_v25, %v5823_v25  ;;  %v5366_v24 = vmax.f32 %v5364_v40, %v5365_v39  ;;  %v4532_v17 = vmul.f32 %v10243_v58, %v4493_v27  ;;  %v7153_v30 = vunpack.i.h.bf16 %v7151_v62  ;;  %5859 = vst.msk [vmem:[%s10529_s30 + $0x10] sm:$0xf] %vm5854_vm3, %v5842_v50  ;;  %v11382_v40 = vld [vmem:[#allocation54_spill] sm:$0xff] }
 0x2ff   : > { %v4530_v46 = vmul.f32 %v10243_v58, %v4491_v28  ;;  %v5347_v57 = vmax.f32 %v5345_v33, %v5346_v42  ;;  %v7152_v0 = vunpack.i.l.bf16 %v7151_v62  ;;  %v5360_v58 = vrot.slane %v5359_v14, 2 }
 0x300   : > { %v4571_v59 = vadd.f32 %v10254_v18, %v4532_v17  ;;  %5860 = vst.msk [vmem:[%s10529_s30 + $0x14] sm:$0xf] %vm5854_vm3, %v5843_v61  ;;  %v3937_v47 = vmul.f32 %v7153_v30, %v11381_v31  ;;  %v4296_v37 = vmul.f32 %v7153_v30, %v9698_v15  ;;  %v5355_v35 = vrot.slane %v5354_v16, 1 }
 0x301   : > { %v4569_v56 = vadd.f32 %v10254_v18, %v4530_v46  ;;  %v5367_v8 = vrot.slane %v5366_v24, 2  ;;  %v3934_v63 = vmul.f32 %v7152_v0, %v11381_v31  ;;  %v4293_v10 = vmul.f32 %v7152_v0, %v9698_v15 }
 0x302   : > { %v4603_v20 = vmax.f32 %v4571_v59, 0.0  ;;  %v4060_v43 = vrot.slane %v3937_v47, 1  ;;  %v4419_v36 = vrot.slane %v4296_v37, 2  ;;  %v5348_v7 = vrot.slane %v5347_v57, 1 }
 0x303   : > { %v4601_v18 = vmax.f32 %v4569_v56, 0.0  ;;  %v4055_v54 = vrot.slane %v3934_v63, 1  ;;  %v7158_v49 = vunpack.i.h.bf16 %v10545_v48  ;;  %v5361_v38 = vmax.f32 %v5359_v14, %v5360_v58  ;;  %v10574_v14 = vld [vmem:[%s10701_s2] ss:$0 sm:$0xff] }
 0x304   : > { %v4649_v41 = vsel %vm4605_vm10, %v4603_v20, -inf  ;;  %v11383_v29 = vrot.slane %v11382_v40, 1  ;;  %v4414_v33 = vrot.slane %v4293_v10, 2  ;;  %v5356_v2 = vmax.f32 %v5354_v16, %v5355_v35  ;;  %v11392_v40 = vld [vmem:[#allocation61_spill] sm:$0xff] }
 0x305   : > { %v4648_v6 = vsel %vm4605_vm10, %v4601_v18, -inf  ;;  %v5368_v12 = vmax.f32 %v5366_v24, %v5367_v8  ;;  %v11385_v55 = vrot.slane %v11384_v11, 1  ;;  %v11387_v26 = vrot.slane %v10152_v4, 2 }
 0x306   : > { %v4650_v19 = vmax.f32 %v4648_v6, %v4649_v41  ;;  %v4061_v45 = vsel %vm1515_vm8, %v11383_v29, %v4060_v43  ;;  %v11389_v21 = vrot.slane %v10134_v60, 2  ;;  %v3943_v50 = vmul.f32 %v7158_v49, %v11381_v31 }
 0x307   : > { %v4056_v5 = vsel %vm1515_vm8, %v11385_v55, %v4055_v54  ;;  %v4131_v53 = vadd.f32 %v4061_v45, %v11386_v1  ;;  %v4420_v9 = vsel %vm1875_vm9, %v11387_v26, %v4419_v36  ;;  %v7157_v32 = vunpack.i.l.bf16 %v10545_v48 }
 0x308   : > { %v4908_v22 = vcombine.high %v4650_v19, %v4650_v19  ;;  %v4915_v39 = vrot.slane %v4650_v19, %v9797_v13  ;;  %v4129_v51 = vadd.f32 %v4056_v5, %v11388_v44  ;;  %v4415_v23 = vsel %vm1875_vm9, %v11389_v21, %v4414_v33  ;;  %v11394_v5 = vld [vmem:[#allocation53_spill] sm:$0xff] }
 0x309   : > { %v4490_v28 = vadd.f32 %v4420_v9, %v4131_v53  ;;  %v5349_v4 = vmax.f32 %v5347_v57, %v5348_v7  ;;  %v5362_v25 = vrot.slane %v5361_v38, 1  ;;  %v3940_v46 = vmul.f32 %v7157_v32, %v11381_v31  ;;  %v10583_v57 = vld [vmem:[%s10702_s3] ss:$0 sm:$0xff]  ;;  %v11395_v9 = vld [vmem:[#allocation52_spill] sm:$0xff] }
 0x30a   : > { %v4922_v42 = vrot.slane %v4908_v22, %v9797_v13  ;;  %v4923_v3 = vcombine.high %v4915_v39, %v4915_v39  ;;  %v5399_v27 = vsel %vm5006_vm11, %v4915_v39, -inf  ;;  %v4488_v62 = vadd.f32 %v4415_v23, %v4129_v51  ;;  %v11390_v7 = vld [vmem:[#allocation67_spill] sm:$0xff] }
 0x30b   : > { %v4529_v60 = vmul.f32 %v10574_v14, %v4490_v28  ;;  %v5369_v61 = vrot.slane %v5368_v12, 1  ;;  %v6126_v56 = vpack.c.bf16 %v5356_v2, %v5356_v2  ;;  %v5400_v30 = vrot.slane %v5399_v27, 4 }
 0x30c   : > { %v4924_v16 = vcombine.high %v4922_v42, %v4922_v42  ;;  %v5406_v24 = vsel %vm5006_vm11, %v4923_v3, -inf  ;;  %v4527_v17 = vmul.f32 %v10574_v14, %v4488_v62  ;;  %v5413_v0 = vsel %vm5006_vm11, %v4922_v42, -inf }
 0x30d   : > { %v4568_v59 = vadd.f32 %v10583_v57, %v4529_v60  ;;  %v4070_v18 = vrot.slane %v3943_v50, 1  ;;  %v4065_v31 = vrot.slane %v3940_v46, 1  ;;  %v5363_v47 = vmax.f32 %v5361_v38, %v5362_v25 }
 0x30e   : > { %v4566_v58 = vadd.f32 %v10583_v57, %v4527_v17  ;;  %v6125_v37 = vpack.c.bf16 %v5349_v4, %v5349_v4  ;;  %v5407_v48 = vrot.slane %v5406_v24, 4  ;;  %v4302_v35 = vmul.f32 %v7158_v49, %v9698_v15 }
 0x30f   : > { %v5370_v8 = vmax.f32 %v5368_v12, %v5369_v61  ;;  %v5420_v20 = vsel %vm5006_vm11, %v4924_v16, -inf  ;;  %v4600_v6 = vmax.f32 %v4568_v59, 0.0  ;;  %v5760_v43 = vunpack.c.l.b16 %v6126_v56 }
 0x310   : > { %v4598_v63 = vmax.f32 %v4566_v58, 0.0  ;;  %v5401_v36 = vmax.f32 %v5399_v27, %v5400_v30  ;;  %v5414_v10 = vrot.slane %v5413_v0, 4  ;;  %v11391_v41 = vrot.slane %v11390_v7, 1 }
 0x311   : > { %v4646_v38 = vsel %vm4605_vm10, %v4600_v6, -inf  ;;  %v11393_v29 = vrot.slane %v11392_v40, 1  ;;  %v4299_v45 = vmul.f32 %v7157_v32, %v9698_v15  ;;  %v5408_v33 = vmax.f32 %v5406_v24, %v5407_v48 }
 0x312   : > { %v4066_v54 = vsel %vm1515_vm8, %v11391_v41, %v4065_v31  ;;  %v4645_v19 = vsel %vm4605_vm10, %v4598_v63, -inf  ;;  %v5421_v2 = vrot.slane %v5420_v20, 4  ;;  %v4429_v12 = vrot.slane %v4302_v35, 2 }
 0x313   : > { %v4071_v49 = vsel %vm1515_vm8, %v11393_v29, %v4070_v18  ;;  %v5759_v11 = vunpack.c.l.b16 %v6125_v37  ;;  %v4647_v55 = vmax.f32 %v4645_v19, %v4646_v38  ;;  %v4133_v1 = vadd.f32 %v4066_v54, %v11394_v5 }
 0x314   : > { %v4424_v53 = vrot.slane %v4299_v45, 2  ;;  %v6127_v22 = vpack.c.bf16 %v5363_v47, %v5363_v47  ;;  %v5402_v39 = vrot.slane %v5401_v36, 2  ;;  %v5415_v26 = vmax.f32 %v5413_v0, %v5414_v10 }
 0x315   : > { %v4135_v44 = vadd.f32 %v4071_v49, %v11395_v9  ;;  %v6128_v51 = vpack.c.bf16 %v5370_v8, %v5370_v8  ;;  %v5824_v21 = vsel %vm5775_vm12, %v5760_v43, %v5759_v11  ;;  %v4891_v23 = vcombine.high %v4647_v55, %v4647_v55 }
 0x316   : > { %v4898_v28 = vrot.slane %v4647_v55, %v9797_v13  ;;  %v5409_v15 = vrot.slane %v5408_v33, 2  ;;  %v5422_v50 = vmax.f32 %v5420_v20, %v5421_v2  ;;  %v11396_v32 = vrot.slane %v11377_v34, 2 }
 0x317   : > { %v11397_v3 = vrot.slane %v11375_v52, 2  ;;  %v4905_v62 = vrot.slane %v4891_v23, %v9797_v13  ;;  %v5761_v46 = vunpack.c.l.b16 %v6127_v22  ;;  %v5403_v61 = vmax.f32 %v5401_v36, %v5402_v39 }
 0x318   : > { %v4425_v42 = vsel %vm1875_vm9, %v11396_v32, %v4424_v53  ;;  %v4906_v4 = vcombine.high %v4898_v28, %v4898_v28  ;;  %v5371_v25 = vsel %vm5006_vm11, %v4898_v28, -inf  ;;  %v5416_v16 = vrot.slane %v5415_v26, 2 }
 0x319   : > { %v4430_v27 = vsel %vm1875_vm9, %v11397_v3, %v4429_v12  ;;  %v4492_v60 = vadd.f32 %v4425_v42, %v4133_v1  ;;  %v4907_v17 = vcombine.high %v4905_v62, %v4905_v62  ;;  %v5372_v56 = vrot.slane %v5371_v25, 4 }
 0x31a   : > { %v4494_v24 = vadd.f32 %v4430_v27, %v4135_v44  ;;  %v5378_v34 = vsel %vm5006_vm11, %v4906_v4, -inf  ;;  %v5385_v30 = vsel %vm5006_vm11, %v4905_v62, -inf  ;;  %v5762_v59 = vunpack.c.l.b16 %v6128_v51 }
 0x31b   : > { %v5410_v52 = vmax.f32 %v5408_v33, %v5409_v15  ;;  %v5423_v0 = vrot.slane %v5422_v50, 2  ;;  %v5379_v58 = vrot.slane %v5378_v34, 4  ;;  %v5373_v18 = vmax.f32 %v5371_v25, %v5372_v56 }
 0x31c   : > { %v5386_v31 = vrot.slane %v5385_v30, 4  ;;  %v5392_v47 = vsel %vm5006_vm11, %v4907_v17, -inf  ;;  %v4531_v37 = vmul.f32 %v10574_v14, %v4492_v60  ;;  %v5825_v48 = vsel %vm5777_vm13, %v5761_v46, %v5824_v21 }
 0x31d   : > { %v5404_v35 = vrot.slane %v5403_v61, 1  ;;  %v5380_v8 = vmax.f32 %v5378_v34, %v5379_v58  ;;  %v5393_v20 = vrot.slane %v5392_v47, 4  ;;  %v5417_v63 = vmax.f32 %v5415_v26, %v5416_v16 }
 0x31e   : > { %v5374_v6 = vrot.slane %v5373_v18, 2  ;;  %v5387_v43 = vmax.f32 %v5385_v30, %v5386_v31  ;;  %v4533_v36 = vmul.f32 %v10574_v14, %v4494_v24  ;;  %v5411_v10 = vrot.slane %v5410_v52, 1 }
 0x31f   : > { %v5381_v7 = vrot.slane %v5380_v8, 2  ;;  %v5394_v41 = vmax.f32 %v5392_v47, %v5393_v20  ;;  %v4570_v54 = vadd.f32 %v10583_v57, %v4531_v37  ;;  %v5424_v19 = vmax.f32 %v5422_v50, %v5423_v0 }
 0x320   : > { %v5375_v38 = vmax.f32 %v5373_v18, %v5374_v6  ;;  %v5388_v40 = vrot.slane %v5387_v43, 2  ;;  %v4572_v29 = vadd.f32 %v10583_v57, %v4533_v36  ;;  %v5405_v49 = vmax.f32 %v5403_v61, %v5404_v35 }
 0x321   : > { %v5382_v45 = vmax.f32 %v5380_v8, %v5381_v7  ;;  %v5395_v33 = vrot.slane %v5394_v41, 2  ;;  %v4602_v2 = vmax.f32 %v4570_v54, 0.0  ;;  %v5418_v12 = vrot.slane %v5417_v63, 1 }
 0x322   : > { %v5376_v11 = vrot.slane %v5375_v38, 1  ;;  %v5389_v55 = vmax.f32 %v5387_v43, %v5388_v40  ;;  %v4604_v5 = vmax.f32 %v4572_v29, 0.0  ;;  %v5412_v1 = vmax.f32 %v5410_v52, %v5411_v10 }
 0x323   : > { %v5383_v14 = vrot.slane %v5382_v45, 1  ;;  %v5396_v53 = vmax.f32 %v5394_v41, %v5395_v33  ;;  %v4651_v22 = vsel %vm4605_vm10, %v4602_v2, -inf  ;;  %v5425_v39 = vrot.slane %v5424_v19, 1 }
 0x324   : > { %v5377_v26 = vmax.f32 %v5375_v38, %v5376_v11  ;;  %v5390_v9 = vrot.slane %v5389_v55, 1  ;;  %v4652_v44 = vsel %vm4605_vm10, %v4604_v5, -inf  ;;  %v5826_v21 = vsel %vm5779_vm14, %v5762_v59, %v5825_v48 }
 0x325   : > { %v5384_v51 = vmax.f32 %v5382_v45, %v5383_v14  ;;  %v5397_v57 = vrot.slane %v5396_v53, 1  ;;  %v4653_v23 = vmax.f32 %v4651_v22, %v4652_v44  ;;  %v5419_v28 = vmax.f32 %v5417_v63, %v5418_v12 }
 0x326   : > { %v6133_v15 = vpack.c.bf16 %v5405_v49, %v5405_v49  ;;  %v5391_v50 = vmax.f32 %v5389_v55, %v5390_v9  ;;  %v6129_v32 = vpack.c.bf16 %v5377_v26, %v5377_v26  ;;  %v5426_v4 = vmax.f32 %v5424_v19, %v5425_v39 }
 0x327   : > { %v5398_v42 = vmax.f32 %v5396_v53, %v5397_v57  ;;  %v6130_v3 = vpack.c.bf16 %v5384_v51, %v5384_v51  ;;  %v4925_v27 = vcombine.high %v4653_v23, %v4653_v23  ;;  %v4932_v62 = vrot.slane %v4653_v23, %v9797_v13 }
 0x328   : > { %v6134_v25 = vpack.c.bf16 %v5412_v1, %v5412_v1  ;;  %v6131_v60 = vpack.c.bf16 %v5391_v50, %v5391_v50  ;;  %v5763_v46 = vunpack.c.l.b16 %v6129_v32  ;;  %v6135_v56 = vpack.c.bf16 %v5419_v28, %v5419_v28 }
 0x329   : > { %v6132_v61 = vpack.c.bf16 %v5398_v42, %v5398_v42  ;;  %v5764_v16 = vunpack.c.l.b16 %v6130_v3  ;;  %v4939_v24 = vrot.slane %v4925_v27, %v9797_v13  ;;  %v4940_v17 = vcombine.high %v4932_v62, %v4932_v62 }
 0x32a   : > { %v5765_v34 = vunpack.c.l.b16 %v6131_v60  ;;  %v5827_v30 = vsel %vm5781_vm15, %v5763_v46, %v5826_v21  ;;  %v5427_v59 = vsel %vm5006_vm11, %v4932_v62, -inf  ;;  %v5768_v31 = vunpack.c.l.b16 %v6134_v25 }
 0x32b   : > { %v5766_v52 = vunpack.c.l.b16 %v6132_v61  ;;  %v5828_v0 = vsel %vm5783_vm0, %v5764_v16, %v5827_v30  ;;  %v4941_v58 = vcombine.high %v4939_v24, %v4939_v24  ;;  %v5428_v18 = vrot.slane %v5427_v59, 4 }
 0x32c   : > { %v5829_v47 = vsel %vm5785_vm1, %v5765_v34, %v5828_v0  ;;  %v5434_v37 = vsel %vm5006_vm11, %v4940_v17, -inf  ;;  %v5441_v13 = vsel %vm5006_vm11, %v4939_v24, -inf  ;;  %v5767_v63 = vunpack.c.l.b16 %v6133_v15 }
 0x32d   : > { %v5830_v48 = vsel %vm5787_vm2, %v5766_v52, %v5829_v47  ;;  %v5429_v35 = vmax.f32 %v5427_v59, %v5428_v18  ;;  %v5435_v8 = vrot.slane %v5434_v37, 4  ;;  %v5442_v20 = vrot.slane %v5441_v13, 4 }
 0x32e   : > { %v5844_v6 = vpack.c.b16 %v5830_v48, %v5830_v48  ;;  %v5448_v43 = vsel %vm5006_vm11, %v4941_v58, -inf  ;;  %v6136_v54 = vpack.c.bf16 %v5426_v4, %v5426_v4  ;;  %v5769_v19 = vunpack.c.l.b16 %v6135_v56 }
 0x32f   : > { %v5430_v36 = vrot.slane %v5429_v35, 2  ;;  %v5436_v10 = vmax.f32 %v5434_v37, %v5435_v8  ;;  %v5443_v7 = vmax.f32 %v5441_v13, %v5442_v20  ;;  %v5449_v41 = vrot.slane %v5448_v43, 4 }
 0x330   : > { %v5831_v38 = vsel %vm5775_vm12, %v5768_v31, %v5767_v63  ;;  %5861 = vst.msk [vmem:[%s10529_s30 + $0x18] sm:$0xf] %vm5854_vm3, %v5844_v6  ;;  %v5770_v55 = vunpack.c.l.b16 %v6136_v54 }
 0x331   : > { %v5431_v40 = vmax.f32 %v5429_v35, %v5430_v36  ;;  %v5437_v29 = vrot.slane %v5436_v10, 2  ;;  %v5444_v49 = vrot.slane %v5443_v7, 2  ;;  %v5450_v45 = vmax.f32 %v5448_v43, %v5449_v41 }
 0x332   : > { %v5832_v5 = vsel %vm5777_vm13, %v5769_v19, %v5831_v38 }
 0x333   : > { %v5432_v33 = vrot.slane %v5431_v40, 1  ;;  %v5438_v2 = vmax.f32 %v5436_v10, %v5437_v29  ;;  %v5445_v12 = vmax.f32 %v5443_v7, %v5444_v49  ;;  %v5451_v11 = vrot.slane %v5450_v45, 2 }
 0x334   : > { %v5833_v51 = vsel %vm5779_vm14, %v5770_v55, %v5832_v5 }
 0x335   : > { %v5433_v1 = vmax.f32 %v5431_v40, %v5432_v33  ;;  %v5439_v14 = vrot.slane %v5438_v2, 1  ;;  %v5446_v53 = vrot.slane %v5445_v12, 1  ;;  %v5452_v22 = vmax.f32 %v5450_v45, %v5451_v11 }
 0x337   : > { %v5440_v39 = vmax.f32 %v5438_v2, %v5439_v14  ;;  %v5447_v26 = vmax.f32 %v5445_v12, %v5446_v53  ;;  %v5453_v9 = vrot.slane %v5452_v22, 1  ;;  %v6137_v44 = vpack.c.bf16 %v5433_v1, %v5433_v1 }
 0x339   : > { %v5454_v57 = vmax.f32 %v5452_v22, %v5453_v9  ;;  %v6138_v21 = vpack.c.bf16 %v5440_v39, %v5440_v39  ;;  %v6139_v23 = vpack.c.bf16 %v5447_v26, %v5447_v26  ;;  %v5771_v28 = vunpack.c.l.b16 %v6137_v44 }
 0x33b   : > { %v6140_v15 = vpack.c.bf16 %v5454_v57, %v5454_v57  ;;  %v5772_v50 = vunpack.c.l.b16 %v6138_v21  ;;  %v5773_v32 = vunpack.c.l.b16 %v6139_v23  ;;  %v5834_v42 = vsel %vm5781_vm15, %v5771_v28, %v5833_v51 }
 0x33d   : > { %v5774_v3 = vunpack.c.l.b16 %v6140_v15  ;;  %v5835_v27 = vsel %vm5783_vm0, %v5772_v50, %v5834_v42 }
 0x33e   : > { %v5836_v62 = vsel %vm5785_vm1, %v5773_v32, %v5835_v27 }
 0x33f   : > { %v5837_v4 = vsel %vm5787_vm2, %v5774_v3, %v5836_v62 }
 0x340   : > { %v5845_v25 = vpack.c.b16 %v5837_v4, %v5837_v4 }
 0x342   : > { %5862 = vst.msk [vmem:[%s10529_s30 + $0x1c] sm:$0xf] %vm5854_vm3, %v5845_v25 }
 0x343   : > { %7176 = shalt.err (!%p7173_p5)
}
 0x344   : > { %s7177_s26 = scalar_lea.hbm %s10646_s13, 512  ;;  %s7181_s5 = scalar_lea.hbm %s10703_s4, 1024 }
 0x345   : > { %p7178_p6 = scmp.ne.s32.totalorder %s10646_s13, %s7177_s26  ;;  %p7182_p10 = scmp.lt.s32.totalorder %s10646_s13, %s10703_s4 }
 0x346   : > { %p7183_p11 = scmp.lt.s32.totalorder %s7181_s5, %s7177_s26 }
 0x347   : > { %p7179_p7 = pnand %p7178_p6, %p7311_p4 }
 0x348   : > { %p7184_p12 = por %p7183_p11, %p7182_p10 }
 0x349   : > { %p7180_p9 = pneg %p7179_p7 }
 0x34b   : > { %p7185_p13 = pnand %p7184_p12, %p7180_p9 }
 0x34d   : > { %7188 = shalt.err (!%p7185_p13)
}
 0x34e   : > { %s7244_s8 = smov 64   ;;  %s7245_s9 = smov 4  }
 0x34f   : > { %6378 = dma.vmem_to_hbm [thread:$0]  (%p7311_p4), %s10648_s10, 512, %s10646_s13, %s10654_s18, %s7244_s8, %s7244_s8, %s7245_s9  }
 0x350 PF: > { %p6384_p0 = scmp.ge.s32.totalorder %s7239_s20, 2  ;;  %s5893_s11 = sand.u32 1, %s7219_s15  }
 0x351   : > { %s5894_s12 = scalar_lea.sflag [#allocation4], %s5893_s11 }
 0x352   : > { %p6381_p1 = pnand %p6384_p0, %p7318_p8 }
 0x354   : > { %p6382_p2 = pneg %p6381_p1 }
 0x356   : > { %7214 = dma.done.wait (%p6382_p2), %s5894_s12, 512  }
 0x357   : > { %7216 = vsyncadd (%p6382_p2), %s5894_s12, 4294966784  ;;  %s17_s20 = sadd.s32 1, %s7239_s20   ;;  %s11398_s15 = smov %s7223_s16 }
 0x358   : > { %p14_p3 = scmp.ge.s32.totalorder %s17_s20, 4   ;;  %s11399_s16 = smov %s7227_s17 }
 0x359   : > { %s11400_s17 = smov %s7324_s28  ;;  %s11401_s18 = smov %s7235_s19 }
 0x35a   : > { %s11402_s19 = smov %s11404_s23  ;;  %16 = sbr.rel (!%p14_p3) target bundleno = 4 (0x4), region = 90 }
 0x35f   :  { %5899 = vsyncpa [#allocation4], 1 }
 0x360   :  { %5901 = vsyncpa [#allocation4 + $0x1], 1 }

</bundles_post_ra>
